<compile_context>
chip_gen: v7x
topology: tpu7x:2x2x1
jax: 0.10.0
libtpu: 0.0.40
codegen_flags: <defaults>
</compile_context>

<pallas_src>
import functools

import jax
import jax.numpy as jnp
import numpy as np
from jax import lax
from jax.experimental import pallas as pl
from jax.experimental.pallas import tpu as pltpu


# ----------------------------- math helpers (traced inside the kernel) ------

def _layernorm(v, g, b, eps=1e-5):
    # v: (N, D) f32, g/b: (1, D) f32  -- all stats in f32 (v5e-safe).
    mu = jnp.mean(v, axis=-1, keepdims=True)
    var = jnp.mean(jnp.square(v - mu), axis=-1, keepdims=True)
    return (v - mu) * lax.rsqrt(var + eps) * g + b


def _mha_block(q_in, kv_in, wq, bq, wk, bk, wv, bv, wo, bo,
               num_heads, dim_k, dim_v):
    """Multi-head attention matching the PyTorch MultiHeadAttention module.

    q_in : (bt, Sq, D) f32      kv_in: (bt, Sk, D) f32
    wq/wk: (D, H*dk)  bf16      wv   : (D, H*dv) bf16
    wo   : (H, dv, D) bf16      biases f32
    returns (bt*Sq, D) f32
    """
    bt, Sq, D = q_in.shape
    _, Sk, _ = kv_in.shape
    f32, bf16 = jnp.float32, jnp.bfloat16

    # Collapse batch*seq into the matmul M dimension (better MXU row fill).
    q2 = q_in.reshape(bt * Sq, D).astype(bf16)
    kv2 = kv_in.reshape(bt * Sk, D).astype(bf16)

    q = jnp.dot(q2, wq, preferred_element_type=f32) + bq      # (bt*Sq, H*dk)
    k = jnp.dot(kv2, wk, preferred_element_type=f32) + bk     # (bt*Sk, H*dk)
    v = jnp.dot(kv2, wv, preferred_element_type=f32) + bv     # (bt*Sk, H*dv)

    # Fold 1/sqrt(dk) into q once (cheap VPU pass over (bt*Sq, H*dk)).
    q = (q * (1.0 / (dim_k ** 0.5))).astype(bf16)
    k = k.astype(bf16)
    v = v.astype(bf16)

    # Per-head attention; the output projection is accumulated per head
    # (wo is partitioned by head) -> no concatenate / lane relayout.
    acc = jnp.zeros((bt * Sq, D), f32)
    for h in range(num_heads):                      # static unroll, H is small
        qh = q[:, h * dim_k:(h + 1) * dim_k].reshape(bt, Sq, dim_k)
        kh = k[:, h * dim_k:(h + 1) * dim_k].reshape(bt, Sk, dim_k)
        vh = v[:, h * dim_v:(h + 1) * dim_v].reshape(bt, Sk, dim_v)

        s = jnp.einsum('bqd,bkd->bqk', qh, kh, preferred_element_type=f32)
        m = jnp.max(s, axis=-1, keepdims=True)
        e = jnp.exp(s - m)
        p = e * pl.reciprocal(jnp.sum(e, axis=-1, keepdims=True), approx=True)
        ctx = jnp.einsum('bqk,bkd->bqd', p.astype(bf16), vh,
                         preferred_element_type=f32)           # (bt, Sq, dv)
        acc = acc + jnp.dot(ctx.reshape(bt * Sq, dim_v).astype(bf16), wo[h],
                            preferred_element_type=f32)
    return acc + bo


# ----------------------------- Pallas kernel ---------------------------------

def decoder_kernel(x_ref, mem_ref,
                   wq1_ref, bq1_ref, wk1_ref, bk1_ref, wv1_ref, bv1_ref,
                   wo1_ref, bo1_ref, g1_ref, be1_ref,
                   wq2_ref, bq2_ref, wk2_ref, bk2_ref, wv2_ref, bv2_ref,
                   wo2_ref, bo2_ref, g2_ref, be2_ref,
                   wf1_ref, bf1_ref, wf2_ref, bf2_ref, g3_ref, be3_ref,
                   out_ref, *, num_heads, dim_k, dim_v):
    layer = pl.program_id(1)               # grid = (batch_tiles, layers)

    # Layer 0: seed the carried hidden state with (x + positional_encoding),
    # pre-added in the wrapper.
    @pl.when(layer == 0)
    def _():
        out_ref[...] = x_ref[...]

    bt, S, D = out_ref.shape
    f32, bf16 = jnp.float32, jnp.bfloat16

    x = out_ref[...]                       # (bt, S, D) f32 carried state
    mem = mem_ref[...]                     # (bt, Sm, D) f32

    # --- self-attention + residual + layernorm (dropout == identity, eval) ---
    a1 = _mha_block(x, x,
                    wq1_ref[0], bq1_ref[0], wk1_ref[0], bk1_ref[0],
                    wv1_ref[0], bv1_ref[0], wo1_ref[0], bo1_ref[0],
                    num_heads, dim_k, dim_v)
    x2d = _layernorm(x.reshape(bt * S, D) + a1, g1_ref[0], be1_ref[0])

    # --- cross-attention + residual + layernorm ---
    a2 = _mha_block(x2d.reshape(bt, S, D), mem,
                    wq2_ref[0], bq2_ref[0], wk2_ref[0], bk2_ref[0],
                    wv2_ref[0], bv2_ref[0], wo2_ref[0], bo2_ref[0],
                    num_heads, dim_k, dim_v)
    x2d = _layernorm(x2d + a2, g2_ref[0], be2_ref[0])

    # --- feed-forward + residual + layernorm ---
    h = jnp.dot(x2d.astype(bf16), wf1_ref[0],
                preferred_element_type=f32) + bf1_ref[0]
    h = jnp.maximum(h, 0.0)
    y = jnp.dot(h.astype(bf16), wf2_ref[0],
                preferred_element_type=f32) + bf2_ref[0]
    x2d = _layernorm(x2d + y, g3_ref[0], be3_ref[0])

    out_ref[...] = x2d.reshape(bt, S, D)


# ----------------------------- wrapper ---------------------------------------

PARAM_ORDER = [
    'wq1', 'bq1', 'wk1', 'bk1', 'wv1', 'bv1', 'wo1', 'bo1', 'g1', 'be1',
    'wq2', 'bq2', 'wk2', 'bk2', 'wv2', 'bv2', 'wo2', 'bo2', 'g2', 'be2',
    'wf1', 'bf1', 'wf2', 'bf2', 'g3', 'be3',
]


def positional_encoding(seq_len, d_model):
    # Matches the PyTorch source exactly: freq 10000**(2*i/d), sin on even i.
    pos = jnp.arange(seq_len, dtype=jnp.float32).reshape(1, seq_len, 1)
    ind = jnp.arange(d_model, dtype=jnp.float32).reshape(1, 1, d_model)
    inner = pos / jnp.power(10000.0, 2.0 * ind / d_model)
    even = (ind % 2) == 0
    return jnp.where(even, jnp.sin(inner), jnp.cos(inner)).astype(jnp.float32)


def _weight_spec(w):
    zeros = (0,) * (w.ndim - 1)
    return pl.BlockSpec((1,) + w.shape[1:], lambda b, l, _z=zeros: (l,) + _z)


def decoder_forward(x, memory, params, *, num_heads, batch_block=1):
    B, S, D = x.shape
    _, Sm, _ = memory.shape
    dim_k = dim_v = D // num_heads
    L = params['wq1'].shape[0]

    bt = batch_block
    assert B % bt == 0, "batch_block must divide batch size"

    x = x.astype(jnp.float32) + positional_encoding(S, D)
    memory = memory.astype(jnp.float32)

    weight_args = [params[n] for n in PARAM_ORDER]

    x_spec = pl.BlockSpec((bt, S, D), lambda b, l: (b, 0, 0))
    mem_spec = pl.BlockSpec((bt, Sm, D), lambda b, l: (b, 0, 0))
    w_specs = [_weight_spec(w) for w in weight_args]
    out_spec = pl.BlockSpec((bt, S, D), lambda b, l: (b, 0, 0))

    kernel = functools.partial(decoder_kernel, num_heads=num_heads,
                               dim_k=dim_k, dim_v=dim_v)

    return pl.pallas_call(
        kernel,
        out_shape=jax.ShapeDtypeStruct((B, S, D), jnp.float32),
        grid_spec=pltpu.PrefetchScalarGridSpec(
            num_scalar_prefetch=0,
            grid=(B // bt, L),
            in_specs=[x_spec, mem_spec] + w_specs,
            out_specs=out_spec,
        ),
        input_output_aliases={0: 0},     # x (+PE) buffer reused for the output
        compiler_params=pltpu.CompilerParams(
            dimension_semantics=("parallel", "arbitrary"),
            vmem_limit_bytes=48 * 1024 * 1024),
    )(x, memory, *weight_args)


# ----------------------------- pure-JAX f32 reference -------------------------

def decoder_reference(x, memory, params, *, num_heads):
    B, S, D = x.shape
    dk = dv = D // num_heads
    L = params['wq1'].shape[0]
    f32 = jnp.float32
    x = x.astype(f32) + positional_encoding(S, D)
    memory = memory.astype(f32)

    def ln(v, g, b, eps=1e-5):
        mu = jnp.mean(v, axis=-1, keepdims=True)
        var = jnp.mean((v - mu) ** 2, axis=-1, keepdims=True)
        return (v - mu) / jnp.sqrt(var + eps) * g + b

    def mha(qin, kvin, wq, bq, wk, bk, wv, bv, wo, bo):
        wq, wk, wv = wq.astype(f32), wk.astype(f32), wv.astype(f32)
        wo2 = wo.astype(f32).reshape(num_heads * dv, D)
        q = jnp.einsum('bsd,de->bse', qin, wq) + bq
        k = jnp.einsum('bsd,de->bse', kvin, wk) + bk
        v = jnp.einsum('bsd,de->bse', kvin, wv) + bv
        outs = []
        for h in range(num_heads):
            qh = q[..., h * dk:(h + 1) * dk]
            kh = k[..., h * dk:(h + 1) * dk]
            vh = v[..., h * dv:(h + 1) * dv]
            s = jnp.einsum('bqd,bkd->bqk', qh, kh) / (dk ** 0.5)
            p = jax.nn.softmax(s, axis=-1)
            outs.append(jnp.einsum('bqk,bkd->bqd', p, vh))
        cat = jnp.concatenate(outs, axis=-1)
        return jnp.einsum('bse,ed->bsd', cat, wo2) + bo

    for l in range(L):
        a1 = mha(x, x, params['wq1'][l], params['bq1'][l], params['wk1'][l],
                 params['bk1'][l], params['wv1'][l], params['bv1'][l],
                 params['wo1'][l], params['bo1'][l])
        x = ln(x + a1, params['g1'][l], params['be1'][l])
        a2 = mha(x, memory, params['wq2'][l], params['bq2'][l],
                 params['wk2'][l], params['bk2'][l], params['wv2'][l],
                 params['bv2'][l], params['wo2'][l], params['bo2'][l])
        x = ln(x + a2, params['g2'][l], params['be2'][l])
        h = jnp.maximum(x @ params['wf1'][l].astype(f32) + params['bf1'][l], 0.0)
        y = h @ params['wf2'][l].astype(f32) + params['bf2'][l]
        x = ln(x + y, params['g3'][l], params['be3'][l])
    return x


# ----------------------------- params ----------------------------------------

def init_params(key, num_layers, dim_model, dim_ff, num_heads):
    dk = dv = dim_model // num_heads
    hk, hv = num_heads * dk, num_heads * dv
    L = num_layers
    keys = iter(jax.random.split(key, 32))

    def w(shape, scale=0.05):      # matmul weights -> bf16 (MXU operands)
        return (scale * jax.random.normal(next(keys), shape,
                                          dtype=jnp.float32)).astype(jnp.bfloat16)

    def b(shape, scale=0.05):      # biases stay f32 (added post-accumulation)
        return (scale * jax.random.normal(next(keys), shape,
                                          dtype=jnp.float32)).astype(jnp.float32)

    ones = jnp.ones((L, 1, dim_model), jnp.float32)
    zeros = jnp.zeros((L, 1, dim_model), jnp.float32)

    return {
        'wq1': w((L, dim_model, hk)), 'bq1': b((L, 1, hk)),
        'wk1': w((L, dim_model, hk)), 'bk1': b((L, 1, hk)),
        'wv1': w((L, dim_model, hv)), 'bv1': b((L, 1, hv)),
        'wo1': w((L, num_heads, dv, dim_model)), 'bo1': b((L, 1, dim_model)),
        'g1': ones, 'be1': zeros,
        'wq2': w((L, dim_model, hk)), 'bq2': b((L, 1, hk)),
        'wk2': w((L, dim_model, hk)), 'bk2': b((L, 1, hk)),
        'wv2': w((L, dim_model, hv)), 'bv2': b((L, 1, hv)),
        'wo2': w((L, num_heads, dv, dim_model)), 'bo2': b((L, 1, dim_model)),
        'g2': ones, 'be2': zeros,
        'wf1': w((L, dim_model, dim_ff)), 'bf1': b((L, 1, dim_ff)),
        'wf2': w((L, dim_ff, dim_model)), 'bf2': b((L, 1, dim_model)),
        'g3': ones, 'be3': zeros,
    }


# ----------------------------- main -------------------------------------------

if __name__ == "__main__":
    # Small config (module defaults scaled down), lane-dense model dim:
    B, S, Sm = 2, 8, 8
    dim_model, dim_ff, num_heads, num_layers = 128, 256, 4, 2

    key = jax.random.PRNGKey(0)
    kx, km, kp = jax.random.split(key, 3)
    x = jax.random.normal(kx, (B, S, dim_model), dtype=jnp.float32)
    memory = jax.random.normal(km, (B, Sm, dim_model), dtype=jnp.float32)
    params = init_params(kp, num_layers, dim_model, dim_ff, num_heads)

    fwd = jax.jit(functools.partial(decoder_forward, num_heads=num_heads))
    out = jax.block_until_ready(fwd(x, memory, params))

    ref = jax.block_until_ready(
        decoder_reference(x, memory, params, num_heads=num_heads))
    # bf16 matmul operands + approx reciprocal inside the kernel vs f32 ref:
    np.testing.assert_allclose(np.asarray(out), np.asarray(ref),
                               rtol=5e-2, atol=5e-2)

    print("KERNEL_OK")
</pallas_src>

<mosaic_0001>
module attributes {stable_mosaic.version = 11 : i64} {
  func.func @decoder_kernel(%arg0: i32, %arg1: i32, %arg2: memref<1x8x128xf32, #tpu.memory_space<vmem>>, %arg3: memref<1x8x128xf32, #tpu.memory_space<vmem>>, %arg4: memref<1x128x128xbf16, #tpu.memory_space<vmem>>, %arg5: memref<1x1x128xf32, #tpu.memory_space<vmem>>, %arg6: memref<1x128x128xbf16, #tpu.memory_space<vmem>>, %arg7: memref<1x1x128xf32, #tpu.memory_space<vmem>>, %arg8: memref<1x128x128xbf16, #tpu.memory_space<vmem>>, %arg9: memref<1x1x128xf32, #tpu.memory_space<vmem>>, %arg10: memref<1x4x32x128xbf16, #tpu.memory_space<vmem>>, %arg11: memref<1x1x128xf32, #tpu.memory_space<vmem>>, %arg12: memref<1x1x128xf32, #tpu.memory_space<vmem>>, %arg13: memref<1x1x128xf32, #tpu.memory_space<vmem>>, %arg14: memref<1x128x128xbf16, #tpu.memory_space<vmem>>, %arg15: memref<1x1x128xf32, #tpu.memory_space<vmem>>, %arg16: memref<1x128x128xbf16, #tpu.memory_space<vmem>>, %arg17: memref<1x1x128xf32, #tpu.memory_space<vmem>>, %arg18: memref<1x128x128xbf16, #tpu.memory_space<vmem>>, %arg19: memref<1x1x128xf32, #tpu.memory_space<vmem>>, %arg20: memref<1x4x32x128xbf16, #tpu.memory_space<vmem>>, %arg21: memref<1x1x128xf32, #tpu.memory_space<vmem>>, %arg22: memref<1x1x128xf32, #tpu.memory_space<vmem>>, %arg23: memref<1x1x128xf32, #tpu.memory_space<vmem>>, %arg24: memref<1x128x256xbf16, #tpu.memory_space<vmem>>, %arg25: memref<1x1x256xf32, #tpu.memory_space<vmem>>, %arg26: memref<1x256x128xbf16, #tpu.memory_space<vmem>>, %arg27: memref<1x1x128xf32, #tpu.memory_space<vmem>>, %arg28: memref<1x1x128xf32, #tpu.memory_space<vmem>>, %arg29: memref<1x1x128xf32, #tpu.memory_space<vmem>>, %arg30: memref<1x8x128xf32, #tpu.memory_space<vmem>>) attributes {dimension_semantics = [#tpu.dimension_semantics<parallel>, #tpu.dimension_semantics<arbitrary>], iteration_bounds = array<i64: 2, 2>, scalar_prefetch = 0 : i64, scratch_operands = 0 : i64, tpu.core_type = #tpu.core_type<tc>, window_params = [{transform_indices = @transform_0, window_bounds = array<i64: 1, 8, 128>}, {transform_indices = @transform_1, window_bounds = array<i64: 1, 8, 128>}, {transform_indices = @transform_2, window_bounds = array<i64: 1, 128, 128>}, {transform_indices = @transform_3, window_bounds = array<i64: 1, 1, 128>}, {transform_indices = @transform_4, window_bounds = array<i64: 1, 128, 128>}, {transform_indices = @transform_5, window_bounds = array<i64: 1, 1, 128>}, {transform_indices = @transform_6, window_bounds = array<i64: 1, 128, 128>}, {transform_indices = @transform_7, window_bounds = array<i64: 1, 1, 128>}, {transform_indices = @transform_8, window_bounds = array<i64: 1, 4, 32, 128>}, {transform_indices = @transform_9, window_bounds = array<i64: 1, 1, 128>}, {transform_indices = @transform_10, window_bounds = array<i64: 1, 1, 128>}, {transform_indices = @transform_11, window_bounds = array<i64: 1, 1, 128>}, {transform_indices = @transform_12, window_bounds = array<i64: 1, 128, 128>}, {transform_indices = @transform_13, window_bounds = array<i64: 1, 1, 128>}, {transform_indices = @transform_14, window_bounds = array<i64: 1, 128, 128>}, {transform_indices = @transform_15, window_bounds = array<i64: 1, 1, 128>}, {transform_indices = @transform_16, window_bounds = array<i64: 1, 128, 128>}, {transform_indices = @transform_17, window_bounds = array<i64: 1, 1, 128>}, {transform_indices = @transform_18, window_bounds = array<i64: 1, 4, 32, 128>}, {transform_indices = @transform_19, window_bounds = array<i64: 1, 1, 128>}, {transform_indices = @transform_20, window_bounds = array<i64: 1, 1, 128>}, {transform_indices = @transform_21, window_bounds = array<i64: 1, 1, 128>}, {transform_indices = @transform_22, window_bounds = array<i64: 1, 128, 256>}, {transform_indices = @transform_23, window_bounds = array<i64: 1, 1, 256>}, {transform_indices = @transform_24, window_bounds = array<i64: 1, 256, 128>}, {transform_indices = @transform_25, window_bounds = array<i64: 1, 1, 128>}, {transform_indices = @transform_26, window_bounds = array<i64: 1, 1, 128>}, {transform_indices = @transform_27, window_bounds = array<i64: 1, 1, 128>}, {transform_indices = @transform_28, window_bounds = array<i64: 1, 8, 128>}]} {
    %c0_i32 = arith.constant 0 : i32
    %0 = arith.cmpi eq, %arg1, %c0_i32 : i32
    %1 = arith.extui %0 : i1 to i32
    %c0_i32_0 = arith.constant 0 : i32
    %2 = arith.cmpi ne, %1, %c0_i32_0 : i32
    scf.if %2 {
      %c0_156 = arith.constant 0 : index
      %c0_157 = arith.constant 0 : index
      %c0_158 = arith.constant 0 : index
      %382 = vector.load %arg2[%c0_156, %c0_157, %c0_158] : memref<1x8x128xf32, #tpu.memory_space<vmem>>, vector<1x8x128xf32>
      %c0_159 = arith.constant 0 : index
      %c0_160 = arith.constant 0 : index
      %c0_161 = arith.constant 0 : index
      %383 = vector.load %arg30[%c0_159, %c0_160, %c0_161] : memref<1x8x128xf32, #tpu.memory_space<vmem>>, vector<1x8x128xf32>
      tpu.vector_store %arg30[%c0_159, %c0_160, %c0_161], %382 {strides = array<i32>} : memref<1x8x128xf32, #tpu.memory_space<vmem>>, vector<1x8x128xf32>,
    } else {
    }
    %c0 = arith.constant 0 : index
    %c0_1 = arith.constant 0 : index
    %c0_2 = arith.constant 0 : index
    %3 = vector.load %arg30[%c0, %c0_1, %c0_2] : memref<1x8x128xf32, #tpu.memory_space<vmem>>, vector<1x8x128xf32>
    %c0_3 = arith.constant 0 : index
    %c0_4 = arith.constant 0 : index
    %c0_5 = arith.constant 0 : index
    %4 = vector.load %arg3[%c0_3, %c0_4, %c0_5] : memref<1x8x128xf32, #tpu.memory_space<vmem>>, vector<1x8x128xf32>
    %c0_6 = arith.constant 0 : index
    %c0_7 = arith.constant 0 : index
    %c0_8 = arith.constant 0 : index
    %5 = vector.load %arg4[%c0_6, %c0_7, %c0_8] : memref<1x128x128xbf16, #tpu.memory_space<vmem>>, vector<1x128x128xbf16>
    %6 = vector.shape_cast %5 : vector<1x128x128xbf16> to vector<128x128xbf16>
    %c0_9 = arith.constant 0 : index
    %c0_10 = arith.constant 0 : index
    %c0_11 = arith.constant 0 : index
    %7 = vector.load %arg5[%c0_9, %c0_10, %c0_11] : memref<1x1x128xf32, #tpu.memory_space<vmem>>, vector<1x1x128xf32>
    %8 = vector.shape_cast %7 : vector<1x1x128xf32> to vector<1x128xf32>
    %c0_12 = arith.constant 0 : index
    %c0_13 = arith.constant 0 : index
    %c0_14 = arith.constant 0 : index
    %9 = vector.load %arg6[%c0_12, %c0_13, %c0_14] : memref<1x128x128xbf16, #tpu.memory_space<vmem>>, vector<1x128x128xbf16>
    %10 = vector.shape_cast %9 : vector<1x128x128xbf16> to vector<128x128xbf16>
    %c0_15 = arith.constant 0 : index
    %c0_16 = arith.constant 0 : index
    %c0_17 = arith.constant 0 : index
    %11 = vector.load %arg7[%c0_15, %c0_16, %c0_17] : memref<1x1x128xf32, #tpu.memory_space<vmem>>, vector<1x1x128xf32>
    %12 = vector.shape_cast %11 : vector<1x1x128xf32> to vector<1x128xf32>
    %c0_18 = arith.constant 0 : index
    %c0_19 = arith.constant 0 : index
    %c0_20 = arith.constant 0 : index
    %13 = vector.load %arg8[%c0_18, %c0_19, %c0_20] : memref<1x128x128xbf16, #tpu.memory_space<vmem>>, vector<1x128x128xbf16>
    %14 = vector.shape_cast %13 : vector<1x128x128xbf16> to vector<128x128xbf16>
    %c0_21 = arith.constant 0 : index
    %c0_22 = arith.constant 0 : index
    %c0_23 = arith.constant 0 : index
    %15 = vector.load %arg9[%c0_21, %c0_22, %c0_23] : memref<1x1x128xf32, #tpu.memory_space<vmem>>, vector<1x1x128xf32>
    %16 = vector.shape_cast %15 : vector<1x1x128xf32> to vector<1x128xf32>
    %c0_24 = arith.constant 0 : index
    %c0_25 = arith.constant 0 : index
    %c0_26 = arith.constant 0 : index
    %c0_27 = arith.constant 0 : index
    %17 = vector.load %arg10[%c0_24, %c0_25, %c0_26, %c0_27] : memref<1x4x32x128xbf16, #tpu.memory_space<vmem>>, vector<1x4x32x128xbf16>
    %18 = vector.shape_cast %17 : vector<1x4x32x128xbf16> to vector<4x32x128xbf16>
    %c0_28 = arith.constant 0 : index
    %c0_29 = arith.constant 0 : index
    %c0_30 = arith.constant 0 : index
    %19 = vector.load %arg11[%c0_28, %c0_29, %c0_30] : memref<1x1x128xf32, #tpu.memory_space<vmem>>, vector<1x1x128xf32>
    %20 = vector.shape_cast %19 : vector<1x1x128xf32> to vector<1x128xf32>
    %21 = vector.shape_cast %3 : vector<1x8x128xf32> to vector<8x128xf32>
    %22 = arith.truncf %21 : vector<8x128xf32> to vector<8x128xbf16>
    %23 = vector.shape_cast %3 : vector<1x8x128xf32> to vector<8x128xf32>
    %24 = arith.truncf %23 : vector<8x128xf32> to vector<8x128xbf16>
    %cst = arith.constant dense<0.000000e+00> : vector<8x128xf32>
    %25 = tpu.matmul %22, %6, %cst {dimension_numbers = #tpu.dot_dimension_numbers<[1], [0], [0], [1], [0, 0, 1, 1], [], []>} : vector<8x128xbf16>, vector<128x128xbf16>, vector<8x128xf32> -> vector<8x128xf32>
    %26 = vector.broadcast %8 : vector<1x128xf32> to vector<8x128xf32>
    %27 = arith.addf %25, %26 : vector<8x128xf32>
    %cst_31 = arith.constant dense<0.000000e+00> : vector<8x128xf32>
    %28 = tpu.matmul %24, %10, %cst_31 {dimension_numbers = #tpu.dot_dimension_numbers<[1], [0], [0], [1], [0, 0, 1, 1], [], []>} : vector<8x128xbf16>, vector<128x128xbf16>, vector<8x128xf32> -> vector<8x128xf32>
    %29 = vector.broadcast %12 : vector<1x128xf32> to vector<8x128xf32>
    %30 = arith.addf %28, %29 : vector<8x128xf32>
    %cst_32 = arith.constant dense<0.000000e+00> : vector<8x128xf32>
    %31 = tpu.matmul %24, %14, %cst_32 {dimension_numbers = #tpu.dot_dimension_numbers<[1], [0], [0], [1], [0, 0, 1, 1], [], []>} : vector<8x128xbf16>, vector<128x128xbf16>, vector<8x128xf32> -> vector<8x128xf32>
    %32 = vector.broadcast %16 : vector<1x128xf32> to vector<8x128xf32>
    %33 = arith.addf %31, %32 : vector<8x128xf32>
    %cst_33 = arith.constant 0.176776692 : f32
    %34 = vector.broadcast %cst_33 : f32 to vector<8x128xf32>
    %35 = arith.mulf %27, %34 : vector<8x128xf32>
    %36 = arith.truncf %35 : vector<8x128xf32> to vector<8x128xbf16>
    %37 = arith.truncf %30 : vector<8x128xf32> to vector<8x128xbf16>
    %38 = arith.truncf %33 : vector<8x128xf32> to vector<8x128xbf16>
    %cst_34 = arith.constant 0.000000e+00 : f32
    %39 = vector.broadcast %cst_34 : f32 to vector<8x128xf32>
    %40 = vector.extract_strided_slice %36 {offsets = [0, 0], sizes = [8, 32], strides = [1, 1]} : vector<8x128xbf16> to vector<8x32xbf16>
    %41 = vector.shape_cast %40 : vector<8x32xbf16> to vector<1x8x32xbf16>
    %42 = vector.extract_strided_slice %37 {offsets = [0, 0], sizes = [8, 32], strides = [1, 1]} : vector<8x128xbf16> to vector<8x32xbf16>
    %43 = vector.shape_cast %42 : vector<8x32xbf16> to vector<1x8x32xbf16>
    %44 = vector.extract_strided_slice %38 {offsets = [0, 0], sizes = [8, 32], strides = [1, 1]} : vector<8x128xbf16> to vector<8x32xbf16>
    %45 = vector.shape_cast %44 : vector<8x32xbf16> to vector<1x8x32xbf16>
    "tpu.trace_start"() <{level = 10 : i32, message = "bqd,bkd->bqk"}> : () -> ()
    %cst_35 = arith.constant dense<0.000000e+00> : vector<1x8x8xf32>
    %46 = tpu.matmul %41, %43, %cst_35 {dimension_numbers = #tpu.dot_dimension_numbers<[2], [2], [1], [1], [0, 0, 0, 1, 1, 1], [0], [0]>} : vector<1x8x32xbf16>, vector<1x8x32xbf16>, vector<1x8x8xf32> -> vector<1x8x8xf32>
    "tpu.trace_stop"() : () -> ()
    %cst_36 = arith.constant dense<0xFF800000> : vector<1x8xf32>
    %47 = vector.multi_reduction <maximumf>, %46, %cst_36 [2] : vector<1x8x8xf32> to vector<1x8xf32>
    %48 = vector.shape_cast %47 : vector<1x8xf32> to vector<1x8x1xf32>
    %49 = vector.broadcast %48 : vector<1x8x1xf32> to vector<1x8x8xf32>
    %50 = arith.subf %46, %49 : vector<1x8x8xf32>
    %51 = math.exp %50 : vector<1x8x8xf32>
    %cst_37 = arith.constant dense<0.000000e+00> : vector<1x8xf32>
    %52 = vector.multi_reduction <add>, %51, %cst_37 [2] : vector<1x8x8xf32> to vector<1x8xf32>
    %53 = vector.shape_cast %52 : vector<1x8xf32> to vector<1x8x1xf32>
    %54 = tpu.reciprocal %53 {approx = true} : vector<1x8x1xf32> -> vector<1x8x1xf32>
    %55 = vector.broadcast %54 : vector<1x8x1xf32> to vector<1x8x8xf32>
    %56 = arith.mulf %51, %55 : vector<1x8x8xf32>
    %57 = arith.truncf %56 : vector<1x8x8xf32> to vector<1x8x8xbf16>
    "tpu.trace_start"() <{level = 10 : i32, message = "bqk,bkd->bqd"}> : () -> ()
    %cst_38 = arith.constant dense<0.000000e+00> : vector<1x8x32xf32>
    %58 = tpu.matmul %57, %45, %cst_38 {dimension_numbers = #tpu.dot_dimension_numbers<[2], [1], [1], [2], [0, 0, 0, 1, 1, 2], [0], [0]>} : vector<1x8x8xbf16>, vector<1x8x32xbf16>, vector<1x8x32xf32> -> vector<1x8x32xf32>
    "tpu.trace_stop"() : () -> ()
    %59 = vector.shape_cast %58 : vector<1x8x32xf32> to vector<8x32xf32>
    %60 = arith.truncf %59 : vector<8x32xf32> to vector<8x32xbf16>
    %61 = vector.extract_strided_slice %18 {offsets = [0, 0, 0], sizes = [1, 32, 128], strides = [1, 1, 1]} : vector<4x32x128xbf16> to vector<1x32x128xbf16>
    %62 = vector.shape_cast %61 : vector<1x32x128xbf16> to vector<32x128xbf16>
    %cst_39 = arith.constant dense<0.000000e+00> : vector<8x128xf32>
    %63 = tpu.matmul %60, %62, %cst_39 {dimension_numbers = #tpu.dot_dimension_numbers<[1], [0], [0], [1], [0, 0, 1, 1], [], []>} : vector<8x32xbf16>, vector<32x128xbf16>, vector<8x128xf32> -> vector<8x128xf32>
    %64 = arith.addf %39, %63 : vector<8x128xf32>
    %65 = vector.extract_strided_slice %36 {offsets = [0, 32], sizes = [8, 32], strides = [1, 1]} : vector<8x128xbf16> to vector<8x32xbf16>
    %66 = vector.shape_cast %65 : vector<8x32xbf16> to vector<1x8x32xbf16>
    %67 = vector.extract_strided_slice %37 {offsets = [0, 32], sizes = [8, 32], strides = [1, 1]} : vector<8x128xbf16> to vector<8x32xbf16>
    %68 = vector.shape_cast %67 : vector<8x32xbf16> to vector<1x8x32xbf16>
    %69 = vector.extract_strided_slice %38 {offsets = [0, 32], sizes = [8, 32], strides = [1, 1]} : vector<8x128xbf16> to vector<8x32xbf16>
    %70 = vector.shape_cast %69 : vector<8x32xbf16> to vector<1x8x32xbf16>
    "tpu.trace_start"() <{level = 10 : i32, message = "bqd,bkd->bqk"}> : () -> ()
    %cst_40 = arith.constant dense<0.000000e+00> : vector<1x8x8xf32>
    %71 = tpu.matmul %66, %68, %cst_40 {dimension_numbers = #tpu.dot_dimension_numbers<[2], [2], [1], [1], [0, 0, 0, 1, 1, 1], [0], [0]>} : vector<1x8x32xbf16>, vector<1x8x32xbf16>, vector<1x8x8xf32> -> vector<1x8x8xf32>
    "tpu.trace_stop"() : () -> ()
    %cst_41 = arith.constant dense<0xFF800000> : vector<1x8xf32>
    %72 = vector.multi_reduction <maximumf>, %71, %cst_41 [2] : vector<1x8x8xf32> to vector<1x8xf32>
    %73 = vector.shape_cast %72 : vector<1x8xf32> to vector<1x8x1xf32>
    %74 = vector.broadcast %73 : vector<1x8x1xf32> to vector<1x8x8xf32>
    %75 = arith.subf %71, %74 : vector<1x8x8xf32>
    %76 = math.exp %75 : vector<1x8x8xf32>
    %cst_42 = arith.constant dense<0.000000e+00> : vector<1x8xf32>
    %77 = vector.multi_reduction <add>, %76, %cst_42 [2] : vector<1x8x8xf32> to vector<1x8xf32>
    %78 = vector.shape_cast %77 : vector<1x8xf32> to vector<1x8x1xf32>
    %79 = tpu.reciprocal %78 {approx = true} : vector<1x8x1xf32> -> vector<1x8x1xf32>
    %80 = vector.broadcast %79 : vector<1x8x1xf32> to vector<1x8x8xf32>
    %81 = arith.mulf %76, %80 : vector<1x8x8xf32>
    %82 = arith.truncf %81 : vector<1x8x8xf32> to vector<1x8x8xbf16>
    "tpu.trace_start"() <{level = 10 : i32, message = "bqk,bkd->bqd"}> : () -> ()
    %cst_43 = arith.constant dense<0.000000e+00> : vector<1x8x32xf32>
    %83 = tpu.matmul %82, %70, %cst_43 {dimension_numbers = #tpu.dot_dimension_numbers<[2], [1], [1], [2], [0, 0, 0, 1, 1, 2], [0], [0]>} : vector<1x8x8xbf16>, vector<1x8x32xbf16>, vector<1x8x32xf32> -> vector<1x8x32xf32>
    "tpu.trace_stop"() : () -> ()
    %84 = vector.shape_cast %83 : vector<1x8x32xf32> to vector<8x32xf32>
    %85 = arith.truncf %84 : vector<8x32xf32> to vector<8x32xbf16>
    %86 = vector.extract_strided_slice %18 {offsets = [1, 0, 0], sizes = [1, 32, 128], strides = [1, 1, 1]} : vector<4x32x128xbf16> to vector<1x32x128xbf16>
    %87 = vector.shape_cast %86 : vector<1x32x128xbf16> to vector<32x128xbf16>
    %cst_44 = arith.constant dense<0.000000e+00> : vector<8x128xf32>
    %88 = tpu.matmul %85, %87, %cst_44 {dimension_numbers = #tpu.dot_dimension_numbers<[1], [0], [0], [1], [0, 0, 1, 1], [], []>} : vector<8x32xbf16>, vector<32x128xbf16>, vector<8x128xf32> -> vector<8x128xf32>
    %89 = arith.addf %64, %88 : vector<8x128xf32>
    %90 = vector.extract_strided_slice %36 {offsets = [0, 64], sizes = [8, 32], strides = [1, 1]} : vector<8x128xbf16> to vector<8x32xbf16>
    %91 = vector.shape_cast %90 : vector<8x32xbf16> to vector<1x8x32xbf16>
    %92 = vector.extract_strided_slice %37 {offsets = [0, 64], sizes = [8, 32], strides = [1, 1]} : vector<8x128xbf16> to vector<8x32xbf16>
    %93 = vector.shape_cast %92 : vector<8x32xbf16> to vector<1x8x32xbf16>
    %94 = vector.extract_strided_slice %38 {offsets = [0, 64], sizes = [8, 32], strides = [1, 1]} : vector<8x128xbf16> to vector<8x32xbf16>
    %95 = vector.shape_cast %94 : vector<8x32xbf16> to vector<1x8x32xbf16>
    "tpu.trace_start"() <{level = 10 : i32, message = "bqd,bkd->bqk"}> : () -> ()
    %cst_45 = arith.constant dense<0.000000e+00> : vector<1x8x8xf32>
    %96 = tpu.matmul %91, %93, %cst_45 {dimension_numbers = #tpu.dot_dimension_numbers<[2], [2], [1], [1], [0, 0, 0, 1, 1, 1], [0], [0]>} : vector<1x8x32xbf16>, vector<1x8x32xbf16>, vector<1x8x8xf32> -> vector<1x8x8xf32>
    "tpu.trace_stop"() : () -> ()
    %cst_46 = arith.constant dense<0xFF800000> : vector<1x8xf32>
    %97 = vector.multi_reduction <maximumf>, %96, %cst_46 [2] : vector<1x8x8xf32> to vector<1x8xf32>
    %98 = vector.shape_cast %97 : vector<1x8xf32> to vector<1x8x1xf32>
    %99 = vector.broadcast %98 : vector<1x8x1xf32> to vector<1x8x8xf32>
    %100 = arith.subf %96, %99 : vector<1x8x8xf32>
    %101 = math.exp %100 : vector<1x8x8xf32>
    %cst_47 = arith.constant dense<0.000000e+00> : vector<1x8xf32>
    %102 = vector.multi_reduction <add>, %101, %cst_47 [2] : vector<1x8x8xf32> to vector<1x8xf32>
    %103 = vector.shape_cast %102 : vector<1x8xf32> to vector<1x8x1xf32>
    %104 = tpu.reciprocal %103 {approx = true} : vector<1x8x1xf32> -> vector<1x8x1xf32>
    %105 = vector.broadcast %104 : vector<1x8x1xf32> to vector<1x8x8xf32>
    %106 = arith.mulf %101, %105 : vector<1x8x8xf32>
    %107 = arith.truncf %106 : vector<1x8x8xf32> to vector<1x8x8xbf16>
    "tpu.trace_start"() <{level = 10 : i32, message = "bqk,bkd->bqd"}> : () -> ()
    %cst_48 = arith.constant dense<0.000000e+00> : vector<1x8x32xf32>
    %108 = tpu.matmul %107, %95, %cst_48 {dimension_numbers = #tpu.dot_dimension_numbers<[2], [1], [1], [2], [0, 0, 0, 1, 1, 2], [0], [0]>} : vector<1x8x8xbf16>, vector<1x8x32xbf16>, vector<1x8x32xf32> -> vector<1x8x32xf32>
    "tpu.trace_stop"() : () -> ()
    %109 = vector.shape_cast %108 : vector<1x8x32xf32> to vector<8x32xf32>
    %110 = arith.truncf %109 : vector<8x32xf32> to vector<8x32xbf16>
    %111 = vector.extract_strided_slice %18 {offsets = [2, 0, 0], sizes = [1, 32, 128], strides = [1, 1, 1]} : vector<4x32x128xbf16> to vector<1x32x128xbf16>
    %112 = vector.shape_cast %111 : vector<1x32x128xbf16> to vector<32x128xbf16>
    %cst_49 = arith.constant dense<0.000000e+00> : vector<8x128xf32>
    %113 = tpu.matmul %110, %112, %cst_49 {dimension_numbers = #tpu.dot_dimension_numbers<[1], [0], [0], [1], [0, 0, 1, 1], [], []>} : vector<8x32xbf16>, vector<32x128xbf16>, vector<8x128xf32> -> vector<8x128xf32>
    %114 = arith.addf %89, %113 : vector<8x128xf32>
    %115 = vector.extract_strided_slice %36 {offsets = [0, 96], sizes = [8, 32], strides = [1, 1]} : vector<8x128xbf16> to vector<8x32xbf16>
    %116 = vector.shape_cast %115 : vector<8x32xbf16> to vector<1x8x32xbf16>
    %117 = vector.extract_strided_slice %37 {offsets = [0, 96], sizes = [8, 32], strides = [1, 1]} : vector<8x128xbf16> to vector<8x32xbf16>
    %118 = vector.shape_cast %117 : vector<8x32xbf16> to vector<1x8x32xbf16>
    %119 = vector.extract_strided_slice %38 {offsets = [0, 96], sizes = [8, 32], strides = [1, 1]} : vector<8x128xbf16> to vector<8x32xbf16>
    %120 = vector.shape_cast %119 : vector<8x32xbf16> to vector<1x8x32xbf16>
    "tpu.trace_start"() <{level = 10 : i32, message = "bqd,bkd->bqk"}> : () -> ()
    %cst_50 = arith.constant dense<0.000000e+00> : vector<1x8x8xf32>
    %121 = tpu.matmul %116, %118, %cst_50 {dimension_numbers = #tpu.dot_dimension_numbers<[2], [2], [1], [1], [0, 0, 0, 1, 1, 1], [0], [0]>} : vector<1x8x32xbf16>, vector<1x8x32xbf16>, vector<1x8x8xf32> -> vector<1x8x8xf32>
    "tpu.trace_stop"() : () -> ()
    %cst_51 = arith.constant dense<0xFF800000> : vector<1x8xf32>
    %122 = vector.multi_reduction <maximumf>, %121, %cst_51 [2] : vector<1x8x8xf32> to vector<1x8xf32>
    %123 = vector.shape_cast %122 : vector<1x8xf32> to vector<1x8x1xf32>
    %124 = vector.broadcast %123 : vector<1x8x1xf32> to vector<1x8x8xf32>
    %125 = arith.subf %121, %124 : vector<1x8x8xf32>
    %126 = math.exp %125 : vector<1x8x8xf32>
    %cst_52 = arith.constant dense<0.000000e+00> : vector<1x8xf32>
    %127 = vector.multi_reduction <add>, %126, %cst_52 [2] : vector<1x8x8xf32> to vector<1x8xf32>
    %128 = vector.shape_cast %127 : vector<1x8xf32> to vector<1x8x1xf32>
    %129 = tpu.reciprocal %128 {approx = true} : vector<1x8x1xf32> -> vector<1x8x1xf32>
    %130 = vector.broadcast %129 : vector<1x8x1xf32> to vector<1x8x8xf32>
    %131 = arith.mulf %126, %130 : vector<1x8x8xf32>
    %132 = arith.truncf %131 : vector<1x8x8xf32> to vector<1x8x8xbf16>
    "tpu.trace_start"() <{level = 10 : i32, message = "bqk,bkd->bqd"}> : () -> ()
    %cst_53 = arith.constant dense<0.000000e+00> : vector<1x8x32xf32>
    %133 = tpu.matmul %132, %120, %cst_53 {dimension_numbers = #tpu.dot_dimension_numbers<[2], [1], [1], [2], [0, 0, 0, 1, 1, 2], [0], [0]>} : vector<1x8x8xbf16>, vector<1x8x32xbf16>, vector<1x8x32xf32> -> vector<1x8x32xf32>
    "tpu.trace_stop"() : () -> ()
    %134 = vector.shape_cast %133 : vector<1x8x32xf32> to vector<8x32xf32>
    %135 = arith.truncf %134 : vector<8x32xf32> to vector<8x32xbf16>
    %136 = vector.extract_strided_slice %18 {offsets = [3, 0, 0], sizes = [1, 32, 128], strides = [1, 1, 1]} : vector<4x32x128xbf16> to vector<1x32x128xbf16>
    %137 = vector.shape_cast %136 : vector<1x32x128xbf16> to vector<32x128xbf16>
    %cst_54 = arith.constant dense<0.000000e+00> : vector<8x128xf32>
    %138 = tpu.matmul %135, %137, %cst_54 {dimension_numbers = #tpu.dot_dimension_numbers<[1], [0], [0], [1], [0, 0, 1, 1], [], []>} : vector<8x32xbf16>, vector<32x128xbf16>, vector<8x128xf32> -> vector<8x128xf32>
    %139 = arith.addf %114, %138 : vector<8x128xf32>
    %140 = vector.broadcast %20 : vector<1x128xf32> to vector<8x128xf32>
    %141 = arith.addf %139, %140 : vector<8x128xf32>
    %142 = vector.shape_cast %3 : vector<1x8x128xf32> to vector<8x128xf32>
    %143 = arith.addf %142, %141 : vector<8x128xf32>
    %c0_55 = arith.constant 0 : index
    %c0_56 = arith.constant 0 : index
    %c0_57 = arith.constant 0 : index
    %144 = vector.load %arg12[%c0_55, %c0_56, %c0_57] : memref<1x1x128xf32, #tpu.memory_space<vmem>>, vector<1x1x128xf32>
    %145 = vector.shape_cast %144 : vector<1x1x128xf32> to vector<1x128xf32>
    %c0_58 = arith.constant 0 : index
    %c0_59 = arith.constant 0 : index
    %c0_60 = arith.constant 0 : index
    %146 = vector.load %arg13[%c0_58, %c0_59, %c0_60] : memref<1x1x128xf32, #tpu.memory_space<vmem>>, vector<1x1x128xf32>
    %147 = vector.shape_cast %146 : vector<1x1x128xf32> to vector<1x128xf32>
    %cst_61 = arith.constant dense<0.000000e+00> : vector<8xf32>
    %148 = vector.multi_reduction <add>, %143, %cst_61 [1] : vector<8x128xf32> to vector<8xf32>
    %149 = vector.shape_cast %148 : vector<8xf32> to vector<8x1xf32>
    %cst_62 = arith.constant 1.280000e+02 : f32
    %150 = vector.broadcast %cst_62 : f32 to vector<8x1xf32>
    %151 = arith.divf %149, %150 : vector<8x1xf32>
    %152 = vector.broadcast %151 : vector<8x1xf32> to vector<8x128xf32>
    %153 = arith.subf %143, %152 : vector<8x128xf32>
    %154 = arith.mulf %153, %153 : vector<8x128xf32>
    %cst_63 = arith.constant dense<0.000000e+00> : vector<8xf32>
    %155 = vector.multi_reduction <add>, %154, %cst_63 [1] : vector<8x128xf32> to vector<8xf32>
    %156 = vector.shape_cast %155 : vector<8xf32> to vector<8x1xf32>
    %cst_64 = arith.constant 1.280000e+02 : f32
    %157 = vector.broadcast %cst_64 : f32 to vector<8x1xf32>
    %158 = arith.divf %156, %157 : vector<8x1xf32>
    %159 = vector.broadcast %151 : vector<8x1xf32> to vector<8x128xf32>
    %160 = arith.subf %143, %159 : vector<8x128xf32>
    %cst_65 = arith.constant 9.99999974E-6 : f32
    %161 = vector.broadcast %cst_65 : f32 to vector<8x1xf32>
    %162 = arith.addf %158, %161 : vector<8x1xf32>
    %163 = math.rsqrt %162 : vector<8x1xf32>
    %164 = vector.broadcast %163 : vector<8x1xf32> to vector<8x128xf32>
    %165 = arith.mulf %160, %164 : vector<8x128xf32>
    %166 = vector.broadcast %145 : vector<1x128xf32> to vector<8x128xf32>
    %167 = arith.mulf %165, %166 : vector<8x128xf32>
    %168 = vector.broadcast %147 : vector<1x128xf32> to vector<8x128xf32>
    %169 = arith.addf %167, %168 : vector<8x128xf32>
    %170 = vector.shape_cast %169 : vector<8x128xf32> to vector<1x8x128xf32>
    %c0_66 = arith.constant 0 : index
    %c0_67 = arith.constant 0 : index
    %c0_68 = arith.constant 0 : index
    %171 = vector.load %arg14[%c0_66, %c0_67, %c0_68] : memref<1x128x128xbf16, #tpu.memory_space<vmem>>, vector<1x128x128xbf16>
    %172 = vector.shape_cast %171 : vector<1x128x128xbf16> to vector<128x128xbf16>
    %c0_69 = arith.constant 0 : index
    %c0_70 = arith.constant 0 : index
    %c0_71 = arith.constant 0 : index
    %173 = vector.load %arg15[%c0_69, %c0_70, %c0_71] : memref<1x1x128xf32, #tpu.memory_space<vmem>>, vector<1x1x128xf32>
    %174 = vector.shape_cast %173 : vector<1x1x128xf32> to vector<1x128xf32>
    %c0_72 = arith.constant 0 : index
    %c0_73 = arith.constant 0 : index
    %c0_74 = arith.constant 0 : index
    %175 = vector.load %arg16[%c0_72, %c0_73, %c0_74] : memref<1x128x128xbf16, #tpu.memory_space<vmem>>, vector<1x128x128xbf16>
    %176 = vector.shape_cast %175 : vector<1x128x128xbf16> to vector<128x128xbf16>
    %c0_75 = arith.constant 0 : index
    %c0_76 = arith.constant 0 : index
    %c0_77 = arith.constant 0 : index
    %177 = vector.load %arg17[%c0_75, %c0_76, %c0_77] : memref<1x1x128xf32, #tpu.memory_space<vmem>>, vector<1x1x128xf32>
    %178 = vector.shape_cast %177 : vector<1x1x128xf32> to vector<1x128xf32>
    %c0_78 = arith.constant 0 : index
    %c0_79 = arith.constant 0 : index
    %c0_80 = arith.constant 0 : index
    %179 = vector.load %arg18[%c0_78, %c0_79, %c0_80] : memref<1x128x128xbf16, #tpu.memory_space<vmem>>, vector<1x128x128xbf16>
    %180 = vector.shape_cast %179 : vector<1x128x128xbf16> to vector<128x128xbf16>
    %c0_81 = arith.constant 0 : index
    %c0_82 = arith.constant 0 : index
    %c0_83 = arith.constant 0 : index
    %181 = vector.load %arg19[%c0_81, %c0_82, %c0_83] : memref<1x1x128xf32, #tpu.memory_space<vmem>>, vector<1x1x128xf32>
    %182 = vector.shape_cast %181 : vector<1x1x128xf32> to vector<1x128xf32>
    %c0_84 = arith.constant 0 : index
    %c0_85 = arith.constant 0 : index
    %c0_86 = arith.constant 0 : index
    %c0_87 = arith.constant 0 : index
    %183 = vector.load %arg20[%c0_84, %c0_85, %c0_86, %c0_87] : memref<1x4x32x128xbf16, #tpu.memory_space<vmem>>, vector<1x4x32x128xbf16>
    %184 = vector.shape_cast %183 : vector<1x4x32x128xbf16> to vector<4x32x128xbf16>
    %c0_88 = arith.constant 0 : index
    %c0_89 = arith.constant 0 : index
    %c0_90 = arith.constant 0 : index
    %185 = vector.load %arg21[%c0_88, %c0_89, %c0_90] : memref<1x1x128xf32, #tpu.memory_space<vmem>>, vector<1x1x128xf32>
    %186 = vector.shape_cast %185 : vector<1x1x128xf32> to vector<1x128xf32>
    %187 = vector.shape_cast %170 : vector<1x8x128xf32> to vector<8x128xf32>
    %188 = arith.truncf %187 : vector<8x128xf32> to vector<8x128xbf16>
    %189 = vector.shape_cast %4 : vector<1x8x128xf32> to vector<8x128xf32>
    %190 = arith.truncf %189 : vector<8x128xf32> to vector<8x128xbf16>
    %cst_91 = arith.constant dense<0.000000e+00> : vector<8x128xf32>
    %191 = tpu.matmul %188, %172, %cst_91 {dimension_numbers = #tpu.dot_dimension_numbers<[1], [0], [0], [1], [0, 0, 1, 1], [], []>} : vector<8x128xbf16>, vector<128x128xbf16>, vector<8x128xf32> -> vector<8x128xf32>
    %192 = vector.broadcast %174 : vector<1x128xf32> to vector<8x128xf32>
    %193 = arith.addf %191, %192 : vector<8x128xf32>
    %cst_92 = arith.constant dense<0.000000e+00> : vector<8x128xf32>
    %194 = tpu.matmul %190, %176, %cst_92 {dimension_numbers = #tpu.dot_dimension_numbers<[1], [0], [0], [1], [0, 0, 1, 1], [], []>} : vector<8x128xbf16>, vector<128x128xbf16>, vector<8x128xf32> -> vector<8x128xf32>
    %195 = vector.broadcast %178 : vector<1x128xf32> to vector<8x128xf32>
    %196 = arith.addf %194, %195 : vector<8x128xf32>
    %cst_93 = arith.constant dense<0.000000e+00> : vector<8x128xf32>
    %197 = tpu.matmul %190, %180, %cst_93 {dimension_numbers = #tpu.dot_dimension_numbers<[1], [0], [0], [1], [0, 0, 1, 1], [], []>} : vector<8x128xbf16>, vector<128x128xbf16>, vector<8x128xf32> -> vector<8x128xf32>
    %198 = vector.broadcast %182 : vector<1x128xf32> to vector<8x128xf32>
    %199 = arith.addf %197, %198 : vector<8x128xf32>
    %cst_94 = arith.constant 0.176776692 : f32
    %200 = vector.broadcast %cst_94 : f32 to vector<8x128xf32>
    %201 = arith.mulf %193, %200 : vector<8x128xf32>
    %202 = arith.truncf %201 : vector<8x128xf32> to vector<8x128xbf16>
    %203 = arith.truncf %196 : vector<8x128xf32> to vector<8x128xbf16>
    %204 = arith.truncf %199 : vector<8x128xf32> to vector<8x128xbf16>
    %cst_95 = arith.constant 0.000000e+00 : f32
    %205 = vector.broadcast %cst_95 : f32 to vector<8x128xf32>
    %206 = vector.extract_strided_slice %202 {offsets = [0, 0], sizes = [8, 32], strides = [1, 1]} : vector<8x128xbf16> to vector<8x32xbf16>
    %207 = vector.shape_cast %206 : vector<8x32xbf16> to vector<1x8x32xbf16>
    %208 = vector.extract_strided_slice %203 {offsets = [0, 0], sizes = [8, 32], strides = [1, 1]} : vector<8x128xbf16> to vector<8x32xbf16>
    %209 = vector.shape_cast %208 : vector<8x32xbf16> to vector<1x8x32xbf16>
    %210 = vector.extract_strided_slice %204 {offsets = [0, 0], sizes = [8, 32], strides = [1, 1]} : vector<8x128xbf16> to vector<8x32xbf16>
    %211 = vector.shape_cast %210 : vector<8x32xbf16> to vector<1x8x32xbf16>
    "tpu.trace_start"() <{level = 10 : i32, message = "bqd,bkd->bqk"}> : () -> ()
    %cst_96 = arith.constant dense<0.000000e+00> : vector<1x8x8xf32>
    %212 = tpu.matmul %207, %209, %cst_96 {dimension_numbers = #tpu.dot_dimension_numbers<[2], [2], [1], [1], [0, 0, 0, 1, 1, 1], [0], [0]>} : vector<1x8x32xbf16>, vector<1x8x32xbf16>, vector<1x8x8xf32> -> vector<1x8x8xf32>
    "tpu.trace_stop"() : () -> ()
    %cst_97 = arith.constant dense<0xFF800000> : vector<1x8xf32>
    %213 = vector.multi_reduction <maximumf>, %212, %cst_97 [2] : vector<1x8x8xf32> to vector<1x8xf32>
    %214 = vector.shape_cast %213 : vector<1x8xf32> to vector<1x8x1xf32>
    %215 = vector.broadcast %214 : vector<1x8x1xf32> to vector<1x8x8xf32>
    %216 = arith.subf %212, %215 : vector<1x8x8xf32>
    %217 = math.exp %216 : vector<1x8x8xf32>
    %cst_98 = arith.constant dense<0.000000e+00> : vector<1x8xf32>
    %218 = vector.multi_reduction <add>, %217, %cst_98 [2] : vector<1x8x8xf32> to vector<1x8xf32>
    %219 = vector.shape_cast %218 : vector<1x8xf32> to vector<1x8x1xf32>
    %220 = tpu.reciprocal %219 {approx = true} : vector<1x8x1xf32> -> vector<1x8x1xf32>
    %221 = vector.broadcast %220 : vector<1x8x1xf32> to vector<1x8x8xf32>
    %222 = arith.mulf %217, %221 : vector<1x8x8xf32>
    %223 = arith.truncf %222 : vector<1x8x8xf32> to vector<1x8x8xbf16>
    "tpu.trace_start"() <{level = 10 : i32, message = "bqk,bkd->bqd"}> : () -> ()
    %cst_99 = arith.constant dense<0.000000e+00> : vector<1x8x32xf32>
    %224 = tpu.matmul %223, %211, %cst_99 {dimension_numbers = #tpu.dot_dimension_numbers<[2], [1], [1], [2], [0, 0, 0, 1, 1, 2], [0], [0]>} : vector<1x8x8xbf16>, vector<1x8x32xbf16>, vector<1x8x32xf32> -> vector<1x8x32xf32>
    "tpu.trace_stop"() : () -> ()
    %225 = vector.shape_cast %224 : vector<1x8x32xf32> to vector<8x32xf32>
    %226 = arith.truncf %225 : vector<8x32xf32> to vector<8x32xbf16>
    %227 = vector.extract_strided_slice %184 {offsets = [0, 0, 0], sizes = [1, 32, 128], strides = [1, 1, 1]} : vector<4x32x128xbf16> to vector<1x32x128xbf16>
    %228 = vector.shape_cast %227 : vector<1x32x128xbf16> to vector<32x128xbf16>
    %cst_100 = arith.constant dense<0.000000e+00> : vector<8x128xf32>
    %229 = tpu.matmul %226, %228, %cst_100 {dimension_numbers = #tpu.dot_dimension_numbers<[1], [0], [0], [1], [0, 0, 1, 1], [], []>} : vector<8x32xbf16>, vector<32x128xbf16>, vector<8x128xf32> -> vector<8x128xf32>
    %230 = arith.addf %205, %229 : vector<8x128xf32>
    %231 = vector.extract_strided_slice %202 {offsets = [0, 32], sizes = [8, 32], strides = [1, 1]} : vector<8x128xbf16> to vector<8x32xbf16>
    %232 = vector.shape_cast %231 : vector<8x32xbf16> to vector<1x8x32xbf16>
    %233 = vector.extract_strided_slice %203 {offsets = [0, 32], sizes = [8, 32], strides = [1, 1]} : vector<8x128xbf16> to vector<8x32xbf16>
    %234 = vector.shape_cast %233 : vector<8x32xbf16> to vector<1x8x32xbf16>
    %235 = vector.extract_strided_slice %204 {offsets = [0, 32], sizes = [8, 32], strides = [1, 1]} : vector<8x128xbf16> to vector<8x32xbf16>
    %236 = vector.shape_cast %235 : vector<8x32xbf16> to vector<1x8x32xbf16>
    "tpu.trace_start"() <{level = 10 : i32, message = "bqd,bkd->bqk"}> : () -> ()
    %cst_101 = arith.constant dense<0.000000e+00> : vector<1x8x8xf32>
    %237 = tpu.matmul %232, %234, %cst_101 {dimension_numbers = #tpu.dot_dimension_numbers<[2], [2], [1], [1], [0, 0, 0, 1, 1, 1], [0], [0]>} : vector<1x8x32xbf16>, vector<1x8x32xbf16>, vector<1x8x8xf32> -> vector<1x8x8xf32>
    "tpu.trace_stop"() : () -> ()
    %cst_102 = arith.constant dense<0xFF800000> : vector<1x8xf32>
    %238 = vector.multi_reduction <maximumf>, %237, %cst_102 [2] : vector<1x8x8xf32> to vector<1x8xf32>
    %239 = vector.shape_cast %238 : vector<1x8xf32> to vector<1x8x1xf32>
    %240 = vector.broadcast %239 : vector<1x8x1xf32> to vector<1x8x8xf32>
    %241 = arith.subf %237, %240 : vector<1x8x8xf32>
    %242 = math.exp %241 : vector<1x8x8xf32>
    %cst_103 = arith.constant dense<0.000000e+00> : vector<1x8xf32>
    %243 = vector.multi_reduction <add>, %242, %cst_103 [2] : vector<1x8x8xf32> to vector<1x8xf32>
    %244 = vector.shape_cast %243 : vector<1x8xf32> to vector<1x8x1xf32>
    %245 = tpu.reciprocal %244 {approx = true} : vector<1x8x1xf32> -> vector<1x8x1xf32>
    %246 = vector.broadcast %245 : vector<1x8x1xf32> to vector<1x8x8xf32>
    %247 = arith.mulf %242, %246 : vector<1x8x8xf32>
    %248 = arith.truncf %247 : vector<1x8x8xf32> to vector<1x8x8xbf16>
    "tpu.trace_start"() <{level = 10 : i32, message = "bqk,bkd->bqd"}> : () -> ()
    %cst_104 = arith.constant dense<0.000000e+00> : vector<1x8x32xf32>
    %249 = tpu.matmul %248, %236, %cst_104 {dimension_numbers = #tpu.dot_dimension_numbers<[2], [1], [1], [2], [0, 0, 0, 1, 1, 2], [0], [0]>} : vector<1x8x8xbf16>, vector<1x8x32xbf16>, vector<1x8x32xf32> -> vector<1x8x32xf32>
    "tpu.trace_stop"() : () -> ()
    %250 = vector.shape_cast %249 : vector<1x8x32xf32> to vector<8x32xf32>
    %251 = arith.truncf %250 : vector<8x32xf32> to vector<8x32xbf16>
    %252 = vector.extract_strided_slice %184 {offsets = [1, 0, 0], sizes = [1, 32, 128], strides = [1, 1, 1]} : vector<4x32x128xbf16> to vector<1x32x128xbf16>
    %253 = vector.shape_cast %252 : vector<1x32x128xbf16> to vector<32x128xbf16>
    %cst_105 = arith.constant dense<0.000000e+00> : vector<8x128xf32>
    %254 = tpu.matmul %251, %253, %cst_105 {dimension_numbers = #tpu.dot_dimension_numbers<[1], [0], [0], [1], [0, 0, 1, 1], [], []>} : vector<8x32xbf16>, vector<32x128xbf16>, vector<8x128xf32> -> vector<8x128xf32>
    %255 = arith.addf %230, %254 : vector<8x128xf32>
    %256 = vector.extract_strided_slice %202 {offsets = [0, 64], sizes = [8, 32], strides = [1, 1]} : vector<8x128xbf16> to vector<8x32xbf16>
    %257 = vector.shape_cast %256 : vector<8x32xbf16> to vector<1x8x32xbf16>
    %258 = vector.extract_strided_slice %203 {offsets = [0, 64], sizes = [8, 32], strides = [1, 1]} : vector<8x128xbf16> to vector<8x32xbf16>
    %259 = vector.shape_cast %258 : vector<8x32xbf16> to vector<1x8x32xbf16>
    %260 = vector.extract_strided_slice %204 {offsets = [0, 64], sizes = [8, 32], strides = [1, 1]} : vector<8x128xbf16> to vector<8x32xbf16>
    %261 = vector.shape_cast %260 : vector<8x32xbf16> to vector<1x8x32xbf16>
    "tpu.trace_start"() <{level = 10 : i32, message = "bqd,bkd->bqk"}> : () -> ()
    %cst_106 = arith.constant dense<0.000000e+00> : vector<1x8x8xf32>
    %262 = tpu.matmul %257, %259, %cst_106 {dimension_numbers = #tpu.dot_dimension_numbers<[2], [2], [1], [1], [0, 0, 0, 1, 1, 1], [0], [0]>} : vector<1x8x32xbf16>, vector<1x8x32xbf16>, vector<1x8x8xf32> -> vector<1x8x8xf32>
    "tpu.trace_stop"() : () -> ()
    %cst_107 = arith.constant dense<0xFF800000> : vector<1x8xf32>
    %263 = vector.multi_reduction <maximumf>, %262, %cst_107 [2] : vector<1x8x8xf32> to vector<1x8xf32>
    %264 = vector.shape_cast %263 : vector<1x8xf32> to vector<1x8x1xf32>
    %265 = vector.broadcast %264 : vector<1x8x1xf32> to vector<1x8x8xf32>
    %266 = arith.subf %262, %265 : vector<1x8x8xf32>
    %267 = math.exp %266 : vector<1x8x8xf32>
    %cst_108 = arith.constant dense<0.000000e+00> : vector<1x8xf32>
    %268 = vector.multi_reduction <add>, %267, %cst_108 [2] : vector<1x8x8xf32> to vector<1x8xf32>
    %269 = vector.shape_cast %268 : vector<1x8xf32> to vector<1x8x1xf32>
    %270 = tpu.reciprocal %269 {approx = true} : vector<1x8x1xf32> -> vector<1x8x1xf32>
    %271 = vector.broadcast %270 : vector<1x8x1xf32> to vector<1x8x8xf32>
    %272 = arith.mulf %267, %271 : vector<1x8x8xf32>
    %273 = arith.truncf %272 : vector<1x8x8xf32> to vector<1x8x8xbf16>
    "tpu.trace_start"() <{level = 10 : i32, message = "bqk,bkd->bqd"}> : () -> ()
    %cst_109 = arith.constant dense<0.000000e+00> : vector<1x8x32xf32>
    %274 = tpu.matmul %273, %261, %cst_109 {dimension_numbers = #tpu.dot_dimension_numbers<[2], [1], [1], [2], [0, 0, 0, 1, 1, 2], [0], [0]>} : vector<1x8x8xbf16>, vector<1x8x32xbf16>, vector<1x8x32xf32> -> vector<1x8x32xf32>
    "tpu.trace_stop"() : () -> ()
    %275 = vector.shape_cast %274 : vector<1x8x32xf32> to vector<8x32xf32>
    %276 = arith.truncf %275 : vector<8x32xf32> to vector<8x32xbf16>
    %277 = vector.extract_strided_slice %184 {offsets = [2, 0, 0], sizes = [1, 32, 128], strides = [1, 1, 1]} : vector<4x32x128xbf16> to vector<1x32x128xbf16>
    %278 = vector.shape_cast %277 : vector<1x32x128xbf16> to vector<32x128xbf16>
    %cst_110 = arith.constant dense<0.000000e+00> : vector<8x128xf32>
    %279 = tpu.matmul %276, %278, %cst_110 {dimension_numbers = #tpu.dot_dimension_numbers<[1], [0], [0], [1], [0, 0, 1, 1], [], []>} : vector<8x32xbf16>, vector<32x128xbf16>, vector<8x128xf32> -> vector<8x128xf32>
    %280 = arith.addf %255, %279 : vector<8x128xf32>
    %281 = vector.extract_strided_slice %202 {offsets = [0, 96], sizes = [8, 32], strides = [1, 1]} : vector<8x128xbf16> to vector<8x32xbf16>
    %282 = vector.shape_cast %281 : vector<8x32xbf16> to vector<1x8x32xbf16>
    %283 = vector.extract_strided_slice %203 {offsets = [0, 96], sizes = [8, 32], strides = [1, 1]} : vector<8x128xbf16> to vector<8x32xbf16>
    %284 = vector.shape_cast %283 : vector<8x32xbf16> to vector<1x8x32xbf16>
    %285 = vector.extract_strided_slice %204 {offsets = [0, 96], sizes = [8, 32], strides = [1, 1]} : vector<8x128xbf16> to vector<8x32xbf16>
    %286 = vector.shape_cast %285 : vector<8x32xbf16> to vector<1x8x32xbf16>
    "tpu.trace_start"() <{level = 10 : i32, message = "bqd,bkd->bqk"}> : () -> ()
    %cst_111 = arith.constant dense<0.000000e+00> : vector<1x8x8xf32>
    %287 = tpu.matmul %282, %284, %cst_111 {dimension_numbers = #tpu.dot_dimension_numbers<[2], [2], [1], [1], [0, 0, 0, 1, 1, 1], [0], [0]>} : vector<1x8x32xbf16>, vector<1x8x32xbf16>, vector<1x8x8xf32> -> vector<1x8x8xf32>
    "tpu.trace_stop"() : () -> ()
    %cst_112 = arith.constant dense<0xFF800000> : vector<1x8xf32>
    %288 = vector.multi_reduction <maximumf>, %287, %cst_112 [2] : vector<1x8x8xf32> to vector<1x8xf32>
    %289 = vector.shape_cast %288 : vector<1x8xf32> to vector<1x8x1xf32>
    %290 = vector.broadcast %289 : vector<1x8x1xf32> to vector<1x8x8xf32>
    %291 = arith.subf %287, %290 : vector<1x8x8xf32>
    %292 = math.exp %291 : vector<1x8x8xf32>
    %cst_113 = arith.constant dense<0.000000e+00> : vector<1x8xf32>
    %293 = vector.multi_reduction <add>, %292, %cst_113 [2] : vector<1x8x8xf32> to vector<1x8xf32>
    %294 = vector.shape_cast %293 : vector<1x8xf32> to vector<1x8x1xf32>
    %295 = tpu.reciprocal %294 {approx = true} : vector<1x8x1xf32> -> vector<1x8x1xf32>
    %296 = vector.broadcast %295 : vector<1x8x1xf32> to vector<1x8x8xf32>
    %297 = arith.mulf %292, %296 : vector<1x8x8xf32>
    %298 = arith.truncf %297 : vector<1x8x8xf32> to vector<1x8x8xbf16>
    "tpu.trace_start"() <{level = 10 : i32, message = "bqk,bkd->bqd"}> : () -> ()
    %cst_114 = arith.constant dense<0.000000e+00> : vector<1x8x32xf32>
    %299 = tpu.matmul %298, %286, %cst_114 {dimension_numbers = #tpu.dot_dimension_numbers<[2], [1], [1], [2], [0, 0, 0, 1, 1, 2], [0], [0]>} : vector<1x8x8xbf16>, vector<1x8x32xbf16>, vector<1x8x32xf32> -> vector<1x8x32xf32>
    "tpu.trace_stop"() : () -> ()
    %300 = vector.shape_cast %299 : vector<1x8x32xf32> to vector<8x32xf32>
    %301 = arith.truncf %300 : vector<8x32xf32> to vector<8x32xbf16>
    %302 = vector.extract_strided_slice %184 {offsets = [3, 0, 0], sizes = [1, 32, 128], strides = [1, 1, 1]} : vector<4x32x128xbf16> to vector<1x32x128xbf16>
    %303 = vector.shape_cast %302 : vector<1x32x128xbf16> to vector<32x128xbf16>
    %cst_115 = arith.constant dense<0.000000e+00> : vector<8x128xf32>
    %304 = tpu.matmul %301, %303, %cst_115 {dimension_numbers = #tpu.dot_dimension_numbers<[1], [0], [0], [1], [0, 0, 1, 1], [], []>} : vector<8x32xbf16>, vector<32x128xbf16>, vector<8x128xf32> -> vector<8x128xf32>
    %305 = arith.addf %280, %304 : vector<8x128xf32>
    %306 = vector.broadcast %186 : vector<1x128xf32> to vector<8x128xf32>
    %307 = arith.addf %305, %306 : vector<8x128xf32>
    %308 = arith.addf %169, %307 : vector<8x128xf32>
    %c0_116 = arith.constant 0 : index
    %c0_117 = arith.constant 0 : index
    %c0_118 = arith.constant 0 : index
    %309 = vector.load %arg22[%c0_116, %c0_117, %c0_118] : memref<1x1x128xf32, #tpu.memory_space<vmem>>, vector<1x1x128xf32>
    %310 = vector.shape_cast %309 : vector<1x1x128xf32> to vector<1x128xf32>
    %c0_119 = arith.constant 0 : index
    %c0_120 = arith.constant 0 : index
    %c0_121 = arith.constant 0 : index
    %311 = vector.load %arg23[%c0_119, %c0_120, %c0_121] : memref<1x1x128xf32, #tpu.memory_space<vmem>>, vector<1x1x128xf32>
    %312 = vector.shape_cast %311 : vector<1x1x128xf32> to vector<1x128xf32>
    %cst_122 = arith.constant dense<0.000000e+00> : vector<8xf32>
    %313 = vector.multi_reduction <add>, %308, %cst_122 [1] : vector<8x128xf32> to vector<8xf32>
    %314 = vector.shape_cast %313 : vector<8xf32> to vector<8x1xf32>
    %cst_123 = arith.constant 1.280000e+02 : f32
    %315 = vector.broadcast %cst_123 : f32 to vector<8x1xf32>
    %316 = arith.divf %314, %315 : vector<8x1xf32>
    %317 = vector.broadcast %316 : vector<8x1xf32> to vector<8x128xf32>
    %318 = arith.subf %308, %317 : vector<8x128xf32>
    %319 = arith.mulf %318, %318 : vector<8x128xf32>
    %cst_124 = arith.constant dense<0.000000e+00> : vector<8xf32>
    %320 = vector.multi_reduction <add>, %319, %cst_124 [1] : vector<8x128xf32> to vector<8xf32>
    %321 = vector.shape_cast %320 : vector<8xf32> to vector<8x1xf32>
    %cst_125 = arith.constant 1.280000e+02 : f32
    %322 = vector.broadcast %cst_125 : f32 to vector<8x1xf32>
    %323 = arith.divf %321, %322 : vector<8x1xf32>
    %324 = vector.broadcast %316 : vector<8x1xf32> to vector<8x128xf32>
    %325 = arith.subf %308, %324 : vector<8x128xf32>
    %cst_126 = arith.constant 9.99999974E-6 : f32
    %326 = vector.broadcast %cst_126 : f32 to vector<8x1xf32>
    %327 = arith.addf %323, %326 : vector<8x1xf32>
    %328 = math.rsqrt %327 : vector<8x1xf32>
    %329 = vector.broadcast %328 : vector<8x1xf32> to vector<8x128xf32>
    %330 = arith.mulf %325, %329 : vector<8x128xf32>
    %331 = vector.broadcast %310 : vector<1x128xf32> to vector<8x128xf32>
    %332 = arith.mulf %330, %331 : vector<8x128xf32>
    %333 = vector.broadcast %312 : vector<1x128xf32> to vector<8x128xf32>
    %334 = arith.addf %332, %333 : vector<8x128xf32>
    %335 = arith.truncf %334 : vector<8x128xf32> to vector<8x128xbf16>
    %c0_127 = arith.constant 0 : index
    %c0_128 = arith.constant 0 : index
    %c0_129 = arith.constant 0 : index
    %336 = vector.load %arg24[%c0_127, %c0_128, %c0_129] : memref<1x128x256xbf16, #tpu.memory_space<vmem>>, vector<1x128x256xbf16>
    %337 = vector.shape_cast %336 : vector<1x128x256xbf16> to vector<128x256xbf16>
    %cst_130 = arith.constant dense<0.000000e+00> : vector<8x256xf32>
    %338 = tpu.matmul %335, %337, %cst_130 {dimension_numbers = #tpu.dot_dimension_numbers<[1], [0], [0], [1], [0, 0, 1, 1], [], []>} : vector<8x128xbf16>, vector<128x256xbf16>, vector<8x256xf32> -> vector<8x256xf32>
    %c0_131 = arith.constant 0 : index
    %c0_132 = arith.constant 0 : index
    %c0_133 = arith.constant 0 : index
    %339 = vector.load %arg25[%c0_131, %c0_132, %c0_133] : memref<1x1x256xf32, #tpu.memory_space<vmem>>, vector<1x1x256xf32>
    %340 = vector.shape_cast %339 : vector<1x1x256xf32> to vector<1x256xf32>
    %341 = vector.broadcast %340 : vector<1x256xf32> to vector<8x256xf32>
    %342 = arith.addf %338, %341 : vector<8x256xf32>
    %cst_134 = arith.constant 0.000000e+00 : f32
    %343 = vector.broadcast %cst_134 : f32 to vector<8x256xf32>
    %344 = arith.maximumf %342, %343 : vector<8x256xf32>
    %345 = arith.truncf %344 : vector<8x256xf32> to vector<8x256xbf16>
    %c0_135 = arith.constant 0 : index
    %c0_136 = arith.constant 0 : index
    %c0_137 = arith.constant 0 : index
    %346 = vector.load %arg26[%c0_135, %c0_136, %c0_137] : memref<1x256x128xbf16, #tpu.memory_space<vmem>>, vector<1x256x128xbf16>
    %347 = vector.shape_cast %346 : vector<1x256x128xbf16> to vector<256x128xbf16>
    %cst_138 = arith.constant dense<0.000000e+00> : vector<8x128xf32>
    %348 = tpu.matmul %345, %347, %cst_138 {dimension_numbers = #tpu.dot_dimension_numbers<[1], [0], [0], [1], [0, 0, 1, 1], [], []>} : vector<8x256xbf16>, vector<256x128xbf16>, vector<8x128xf32> -> vector<8x128xf32>
    %c0_139 = arith.constant 0 : index
    %c0_140 = arith.constant 0 : index
    %c0_141 = arith.constant 0 : index
    %349 = vector.load %arg27[%c0_139, %c0_140, %c0_141] : memref<1x1x128xf32, #tpu.memory_space<vmem>>, vector<1x1x128xf32>
    %350 = vector.shape_cast %349 : vector<1x1x128xf32> to vector<1x128xf32>
    %351 = vector.broadcast %350 : vector<1x128xf32> to vector<8x128xf32>
    %352 = arith.addf %348, %351 : vector<8x128xf32>
    %353 = arith.addf %334, %352 : vector<8x128xf32>
    %c0_142 = arith.constant 0 : index
    %c0_143 = arith.constant 0 : index
    %c0_144 = arith.constant 0 : index
    %354 = vector.load %arg28[%c0_142, %c0_143, %c0_144] : memref<1x1x128xf32, #tpu.memory_space<vmem>>, vector<1x1x128xf32>
    %355 = vector.shape_cast %354 : vector<1x1x128xf32> to vector<1x128xf32>
    %c0_145 = arith.constant 0 : index
    %c0_146 = arith.constant 0 : index
    %c0_147 = arith.constant 0 : index
    %356 = vector.load %arg29[%c0_145, %c0_146, %c0_147] : memref<1x1x128xf32, #tpu.memory_space<vmem>>, vector<1x1x128xf32>
    %357 = vector.shape_cast %356 : vector<1x1x128xf32> to vector<1x128xf32>
    %cst_148 = arith.constant dense<0.000000e+00> : vector<8xf32>
    %358 = vector.multi_reduction <add>, %353, %cst_148 [1] : vector<8x128xf32> to vector<8xf32>
    %359 = vector.shape_cast %358 : vector<8xf32> to vector<8x1xf32>
    %cst_149 = arith.constant 1.280000e+02 : f32
    %360 = vector.broadcast %cst_149 : f32 to vector<8x1xf32>
    %361 = arith.divf %359, %360 : vector<8x1xf32>
    %362 = vector.broadcast %361 : vector<8x1xf32> to vector<8x128xf32>
    %363 = arith.subf %353, %362 : vector<8x128xf32>
    %364 = arith.mulf %363, %363 : vector<8x128xf32>
    %cst_150 = arith.constant dense<0.000000e+00> : vector<8xf32>
    %365 = vector.multi_reduction <add>, %364, %cst_150 [1] : vector<8x128xf32> to vector<8xf32>
    %366 = vector.shape_cast %365 : vector<8xf32> to vector<8x1xf32>
    %cst_151 = arith.constant 1.280000e+02 : f32
    %367 = vector.broadcast %cst_151 : f32 to vector<8x1xf32>
    %368 = arith.divf %366, %367 : vector<8x1xf32>
    %369 = vector.broadcast %361 : vector<8x1xf32> to vector<8x128xf32>
    %370 = arith.subf %353, %369 : vector<8x128xf32>
    %cst_152 = arith.constant 9.99999974E-6 : f32
    %371 = vector.broadcast %cst_152 : f32 to vector<8x1xf32>
    %372 = arith.addf %368, %371 : vector<8x1xf32>
    %373 = math.rsqrt %372 : vector<8x1xf32>
    %374 = vector.broadcast %373 : vector<8x1xf32> to vector<8x128xf32>
    %375 = arith.mulf %370, %374 : vector<8x128xf32>
    %376 = vector.broadcast %355 : vector<1x128xf32> to vector<8x128xf32>
    %377 = arith.mulf %375, %376 : vector<8x128xf32>
    %378 = vector.broadcast %357 : vector<1x128xf32> to vector<8x128xf32>
    %379 = arith.addf %377, %378 : vector<8x128xf32>
    %380 = vector.shape_cast %379 : vector<8x128xf32> to vector<1x8x128xf32>
    %c0_153 = arith.constant 0 : index
    %c0_154 = arith.constant 0 : index
    %c0_155 = arith.constant 0 : index
    %381 = vector.load %arg30[%c0_153, %c0_154, %c0_155] : memref<1x8x128xf32, #tpu.memory_space<vmem>>, vector<1x8x128xf32>
    tpu.vector_store %arg30[%c0_153, %c0_154, %c0_155], %380 {strides = array<i32>} : memref<1x8x128xf32, #tpu.memory_space<vmem>>, vector<1x8x128xf32>,
    return
  }
  func.func @transform_0(%arg0: i32, %arg1: i32) -> (i32, i32, i32) {
    %c0_i32 = arith.constant 0 : i32
    %c0_i32_0 = arith.constant 0 : i32
    %c0_i32_1 = arith.constant 0 : i32
    return %arg0, %c0_i32, %c0_i32_0 : i32, i32, i32
  }
  func.func @transform_1(%arg0: i32, %arg1: i32) -> (i32, i32, i32) {
    %c0_i32 = arith.constant 0 : i32
    %c0_i32_0 = arith.constant 0 : i32
    %c0_i32_1 = arith.constant 0 : i32
    return %arg0, %c0_i32, %c0_i32_0 : i32, i32, i32
  }
  func.func @transform_2(%arg0: i32, %arg1: i32) -> (i32, i32, i32) {
    %c0_i32 = arith.constant 0 : i32
    %c0_i32_0 = arith.constant 0 : i32
    %c0_i32_1 = arith.constant 0 : i32
    return %arg1, %c0_i32, %c0_i32_0 : i32, i32, i32
  }
  func.func @transform_3(%arg0: i32, %arg1: i32) -> (i32, i32, i32) {
    %c0_i32 = arith.constant 0 : i32
    %c0_i32_0 = arith.constant 0 : i32
    %c0_i32_1 = arith.constant 0 : i32
    return %arg1, %c0_i32, %c0_i32_0 : i32, i32, i32
  }
  func.func @transform_4(%arg0: i32, %arg1: i32) -> (i32, i32, i32) {
    %c0_i32 = arith.constant 0 : i32
    %c0_i32_0 = arith.constant 0 : i32
    %c0_i32_1 = arith.constant 0 : i32
    return %arg1, %c0_i32, %c0_i32_0 : i32, i32, i32
  }
  func.func @transform_5(%arg0: i32, %arg1: i32) -> (i32, i32, i32) {
    %c0_i32 = arith.constant 0 : i32
    %c0_i32_0 = arith.constant 0 : i32
    %c0_i32_1 = arith.constant 0 : i32
    return %arg1, %c0_i32, %c0_i32_0 : i32, i32, i32
  }
  func.func @transform_6(%arg0: i32, %arg1: i32) -> (i32, i32, i32) {
    %c0_i32 = arith.constant 0 : i32
    %c0_i32_0 = arith.constant 0 : i32
    %c0_i32_1 = arith.constant 0 : i32
    return %arg1, %c0_i32, %c0_i32_0 : i32, i32, i32
  }
  func.func @transform_7(%arg0: i32, %arg1: i32) -> (i32, i32, i32) {
    %c0_i32 = arith.constant 0 : i32
    %c0_i32_0 = arith.constant 0 : i32
    %c0_i32_1 = arith.constant 0 : i32
    return %arg1, %c0_i32, %c0_i32_0 : i32, i32, i32
  }
  func.func @transform_8(%arg0: i32, %arg1: i32) -> (i32, i32, i32, i32) {
    %c0_i32 = arith.constant 0 : i32
    %c0_i32_0 = arith.constant 0 : i32
    %c0_i32_1 = arith.constant 0 : i32
    %c0_i32_2 = arith.constant 0 : i32
    return %arg1, %c0_i32, %c0_i32_0, %c0_i32_1 : i32, i32, i32, i32
  }
  func.func @transform_9(%arg0: i32, %arg1: i32) -> (i32, i32, i32) {
    %c0_i32 = arith.constant 0 : i32
    %c0_i32_0 = arith.constant 0 : i32
    %c0_i32_1 = arith.constant 0 : i32
    return %arg1, %c0_i32, %c0_i32_0 : i32, i32, i32
  }
  func.func @transform_10(%arg0: i32, %arg1: i32) -> (i32, i32, i32) {
    %c0_i32 = arith.constant 0 : i32
    %c0_i32_0 = arith.constant 0 : i32
    %c0_i32_1 = arith.constant 0 : i32
    return %arg1, %c0_i32, %c0_i32_0 : i32, i32, i32
  }
  func.func @transform_11(%arg0: i32, %arg1: i32) -> (i32, i32, i32) {
    %c0_i32 = arith.constant 0 : i32
    %c0_i32_0 = arith.constant 0 : i32
    %c0_i32_1 = arith.constant 0 : i32
    return %arg1, %c0_i32, %c0_i32_0 : i32, i32, i32
  }
  func.func @transform_12(%arg0: i32, %arg1: i32) -> (i32, i32, i32) {
    %c0_i32 = arith.constant 0 : i32
    %c0_i32_0 = arith.constant 0 : i32
    %c0_i32_1 = arith.constant 0 : i32
    return %arg1, %c0_i32, %c0_i32_0 : i32, i32, i32
  }
  func.func @transform_13(%arg0: i32, %arg1: i32) -> (i32, i32, i32) {
    %c0_i32 = arith.constant 0 : i32
    %c0_i32_0 = arith.constant 0 : i32
    %c0_i32_1 = arith.constant 0 : i32
    return %arg1, %c0_i32, %c0_i32_0 : i32, i32, i32
  }
  func.func @transform_14(%arg0: i32, %arg1: i32) -> (i32, i32, i32) {
    %c0_i32 = arith.constant 0 : i32
    %c0_i32_0 = arith.constant 0 : i32
    %c0_i32_1 = arith.constant 0 : i32
    return %arg1, %c0_i32, %c0_i32_0 : i32, i32, i32
  }
  func.func @transform_15(%arg0: i32, %arg1: i32) -> (i32, i32, i32) {
    %c0_i32 = arith.constant 0 : i32
    %c0_i32_0 = arith.constant 0 : i32
    %c0_i32_1 = arith.constant 0 : i32
    return %arg1, %c0_i32, %c0_i32_0 : i32, i32, i32
  }
  func.func @transform_16(%arg0: i32, %arg1: i32) -> (i32, i32, i32) {
    %c0_i32 = arith.constant 0 : i32
    %c0_i32_0 = arith.constant 0 : i32
    %c0_i32_1 = arith.constant 0 : i32
    return %arg1, %c0_i32, %c0_i32_0 : i32, i32, i32
  }
  func.func @transform_17(%arg0: i32, %arg1: i32) -> (i32, i32, i32) {
    %c0_i32 = arith.constant 0 : i32
    %c0_i32_0 = arith.constant 0 : i32
    %c0_i32_1 = arith.constant 0 : i32
    return %arg1, %c0_i32, %c0_i32_0 : i32, i32, i32
  }
  func.func @transform_18(%arg0: i32, %arg1: i32) -> (i32, i32, i32, i32) {
    %c0_i32 = arith.constant 0 : i32
    %c0_i32_0 = arith.constant 0 : i32
    %c0_i32_1 = arith.constant 0 : i32
    %c0_i32_2 = arith.constant 0 : i32
    return %arg1, %c0_i32, %c0_i32_0, %c0_i32_1 : i32, i32, i32, i32
  }
  func.func @transform_19(%arg0: i32, %arg1: i32) -> (i32, i32, i32) {
    %c0_i32 = arith.constant 0 : i32
    %c0_i32_0 = arith.constant 0 : i32
    %c0_i32_1 = arith.constant 0 : i32
    return %arg1, %c0_i32, %c0_i32_0 : i32, i32, i32
  }
  func.func @transform_20(%arg0: i32, %arg1: i32) -> (i32, i32, i32) {
    %c0_i32 = arith.constant 0 : i32
    %c0_i32_0 = arith.constant 0 : i32
    %c0_i32_1 = arith.constant 0 : i32
    return %arg1, %c0_i32, %c0_i32_0 : i32, i32, i32
  }
  func.func @transform_21(%arg0: i32, %arg1: i32) -> (i32, i32, i32) {
    %c0_i32 = arith.constant 0 : i32
    %c0_i32_0 = arith.constant 0 : i32
    %c0_i32_1 = arith.constant 0 : i32
    return %arg1, %c0_i32, %c0_i32_0 : i32, i32, i32
  }
  func.func @transform_22(%arg0: i32, %arg1: i32) -> (i32, i32, i32) {
    %c0_i32 = arith.constant 0 : i32
    %c0_i32_0 = arith.constant 0 : i32
    %c0_i32_1 = arith.constant 0 : i32
    return %arg1, %c0_i32, %c0_i32_0 : i32, i32, i32
  }
  func.func @transform_23(%arg0: i32, %arg1: i32) -> (i32, i32, i32) {
    %c0_i32 = arith.constant 0 : i32
    %c0_i32_0 = arith.constant 0 : i32
    %c0_i32_1 = arith.constant 0 : i32
    return %arg1, %c0_i32, %c0_i32_0 : i32, i32, i32
  }
  func.func @transform_24(%arg0: i32, %arg1: i32) -> (i32, i32, i32) {
    %c0_i32 = arith.constant 0 : i32
    %c0_i32_0 = arith.constant 0 : i32
    %c0_i32_1 = arith.constant 0 : i32
    return %arg1, %c0_i32, %c0_i32_0 : i32, i32, i32
  }
  func.func @transform_25(%arg0: i32, %arg1: i32) -> (i32, i32, i32) {
    %c0_i32 = arith.constant 0 : i32
    %c0_i32_0 = arith.constant 0 : i32
    %c0_i32_1 = arith.constant 0 : i32
    return %arg1, %c0_i32, %c0_i32_0 : i32, i32, i32
  }
  func.func @transform_26(%arg0: i32, %arg1: i32) -> (i32, i32, i32) {
    %c0_i32 = arith.constant 0 : i32
    %c0_i32_0 = arith.constant 0 : i32
    %c0_i32_1 = arith.constant 0 : i32
    return %arg1, %c0_i32, %c0_i32_0 : i32, i32, i32
  }
  func.func @transform_27(%arg0: i32, %arg1: i32) -> (i32, i32, i32) {
    %c0_i32 = arith.constant 0 : i32
    %c0_i32_0 = arith.constant 0 : i32
    %c0_i32_1 = arith.constant 0 : i32
    return %arg1, %c0_i32, %c0_i32_0 : i32, i32, i32
  }
  func.func @transform_28(%arg0: i32, %arg1: i32) -> (i32, i32, i32) {
    %c0_i32 = arith.constant 0 : i32
    %c0_i32_0 = arith.constant 0 : i32
    %c0_i32_1 = arith.constant 0 : i32
    return %arg0, %c0_i32, %c0_i32_0 : i32, i32, i32
  }
}

</mosaic_0001>

<bundles_post_ra>
// kernel: decoder_forward.1
= control target key start
LH: loop header
LB: loop body
LE: loop exit
PB: predicated region body
PF: predicated region fallthrough
CT: control target
= control target key end

     0   :  { %s8330_s0 = inlined_call_operand.hbm [shape: f32[2,8,128], index: 0, kind: input, shape index: {}, may-alias: {0,28}]   ;;  %s8331_s1 = inlined_call_operand.vmem [shape: f32[2,8,128], index: 1, kind: input, shape index: {}]   ;;  %s8332_s2 = inlined_call_operand.vmem [shape: bf16[2,128,128], index: 2, kind: input, shape index: {}]   ;;  %s8333_s3 = inlined_call_operand.hbm [shape: f32[2,1,128], index: 3, kind: input, shape index: {}]   ;;  %s8334_s4 = inlined_call_operand.hbm [shape: bf16[2,128,128], index: 4, kind: input, shape index: {}]   ;;  %s8335_s5 = inlined_call_operand.hbm [shape: f32[2,1,128], index: 5, kind: input, shape index: {}]   ;;  %s8336_s6 = inlined_call_operand.hbm [shape: bf16[2,128,128], index: 6, kind: input, shape index: {}]   ;;  %s8337_s7 = inlined_call_operand.hbm [shape: f32[2,1,128], index: 7, kind: input, shape index: {}]   ;;  %s8338_s8 = inlined_call_operand.hbm [shape: bf16[2,4,32,128], index: 8, kind: input, shape index: {}]   ;;  %s8339_s9 = inlined_call_operand.hbm [shape: f32[2,1,128], index: 9, kind: input, shape index: {}]   ;;  %s8340_s10 = inlined_call_operand.hbm [shape: f32[2,1,128], index: 10, kind: input, shape index: {}]   ;;  %s8341_s11 = inlined_call_operand.hbm [shape: f32[2,1,128], index: 11, kind: input, shape index: {}]   ;;  %s8342_s12 = inlined_call_operand.hbm [shape: bf16[2,128,128], index: 12, kind: input, shape index: {}]   ;;  %s8343_s13 = inlined_call_operand.hbm [shape: f32[2,1,128], index: 13, kind: input, shape index: {}]   ;;  %s8344_s14 = inlined_call_operand.hbm [shape: bf16[2,128,128], index: 14, kind: input, shape index: {}]   ;;  %s8345_s15 = inlined_call_operand.hbm [shape: f32[2,1,128], index: 15, kind: input, shape index: {}]   ;;  %s8346_s16 = inlined_call_operand.hbm [shape: bf16[2,128,128], index: 16, kind: input, shape index: {}]   ;;  %s8347_s17 = inlined_call_operand.hbm [shape: f32[2,1,128], index: 17, kind: input, shape index: {}]   ;;  %s8348_s18 = inlined_call_operand.hbm [shape: bf16[2,4,32,128], index: 18, kind: input, shape index: {}]   ;;  %s8349_s19 = inlined_call_operand.hbm [shape: f32[2,1,128], index: 19, kind: input, shape index: {}]   ;;  %s8350_s20 = inlined_call_operand.hbm [shape: f32[2,1,128], index: 20, kind: input, shape index: {}]   ;;  %s8351_s21 = inlined_call_operand.hbm [shape: f32[2,1,128], index: 21, kind: input, shape index: {}]   ;;  %s8352_s22 = inlined_call_operand.hbm [shape: bf16[2,128,256], index: 22, kind: input, shape index: {}]   ;;  %s8353_s23 = inlined_call_operand.vmem [shape: f32[2,1,256], index: 23, kind: input, shape index: {}]   ;;  %s8354_s24 = inlined_call_operand.hbm [shape: bf16[2,256,128], index: 24, kind: input, shape index: {}]   ;;  %s8355_s25 = inlined_call_operand.hbm [shape: f32[2,1,128], index: 25, kind: input, shape index: {}]   ;;  %s8356_s26 = inlined_call_operand.hbm [shape: f32[2,1,128], index: 26, kind: input, shape index: {}]   ;;  %s8357_s27 = inlined_call_operand.hbm [shape: f32[2,1,128], index: 27, kind: input, shape index: {}]   ;;  %s8358_s28 = inlined_call_operand.hbm [shape: f32[2,8,128], index: 28, kind: output, shape index: {}, may-alias: {0,28}]  }
   0x1   :  { %8435 = sst [smem:[#allocation76_spill]] %s8330_s0 }
   0x2   :  { %8436 = sst [smem:[#allocation77_spill]] %s8331_s1 }
   0x3   :  { %8437 = sst [smem:[#allocation78_spill]] %s8332_s2 }
   0x4   :  { %8438 = sst [smem:[#allocation79_spill]] %s8333_s3 }
   0x5   :  { %8439 = sst [smem:[#allocation80_spill]] %s8334_s4 }
   0x6   :  { %8440 = sst [smem:[#allocation81_spill]] %s8335_s5 }
   0x7   :  { %8441 = sst [smem:[#allocation82_spill]] %s8336_s6 }
   0x8   :  { %8442 = sst [smem:[#allocation83_spill]] %s8337_s7 }
   0x9   :  { %8443 = sst [smem:[#allocation84_spill]] %s8338_s8 }
   0xa   :  { %8444 = sst [smem:[#allocation85_spill]] %s8339_s9 }
   0xb   :  { %8445 = sst [smem:[#allocation86_spill]] %s8340_s10 }
   0xc   :  { %8446 = sst [smem:[#allocation87_spill]] %s8341_s11 }
   0xd   :  { %8447 = sst [smem:[#allocation88_spill]] %s8342_s12 }
   0xe   :  { %8448 = sst [smem:[#allocation89_spill]] %s8343_s13 }
   0xf   :  { %8449 = sst [smem:[#allocation90_spill]] %s8344_s14 }
  0x10   :  { %8450 = sst [smem:[#allocation91_spill]] %s8345_s15 }
  0x11   :  { %8451 = sst [smem:[#allocation92_spill]] %s8346_s16 }
  0x12   :  { %8452 = sst [smem:[#allocation93_spill]] %s8347_s17 }
  0x13   :  { %8453 = sst [smem:[#allocation94_spill]] %s8348_s18 }
  0x14   :  { %8454 = sst [smem:[#allocation95_spill]] %s8349_s19 }
  0x15   :  { %8455 = sst [smem:[#allocation96_spill]] %s8350_s20 }
  0x16   :  { %8456 = sst [smem:[#allocation97_spill]] %s8351_s21 }
  0x17   :  { %8457 = sst [smem:[#allocation98_spill]] %s8352_s22 }
  0x18   :  { %8458 = sst [smem:[#allocation99_spill]] %s8353_s23 }
  0x19   :  { %8459 = sst [smem:[#allocation100_spill]] %s8354_s24 }
  0x1a   :  { %8460 = sst [smem:[#allocation101_spill]] %s8355_s25 }
  0x1b   :  { %8461 = sst [smem:[#allocation102_spill]] %s8356_s26 }
  0x1c   :  { %8462 = sst [smem:[#allocation103_spill]] %s8357_s27 }
  0x1d   :  { %8463 = sst [smem:[#allocation104_spill]] %s8358_s28 }
  0x1e   :  { %33 = vsyncpa [#allocation3], 0 }
  0x1f   :  { %35 = vsyncpa [#allocation3 + $0x1], 0 }
  0x20   :  { %36 = vsyncpa [#allocation6], 0 }
  0x21   :  { %38 = vsyncpa [#allocation6 + $0x1], 0 }
  0x22   :  { %39 = vsyncpa [#allocation9], 0 }
  0x23   :  { %41 = vsyncpa [#allocation9 + $0x1], 0 }
  0x24   :  { %42 = vsyncpa [#allocation12], 0 }
  0x25   :  { %44 = vsyncpa [#allocation12 + $0x1], 0 }
  0x26   :  { %45 = vsyncpa [#allocation15], 0 }
  0x27   :  { %47 = vsyncpa [#allocation15 + $0x1], 0 }
  0x28   :  { %48 = vsyncpa [#allocation18], 0 }
  0x29   :  { %50 = vsyncpa [#allocation18 + $0x1], 0 }
  0x2a   :  { %51 = vsyncpa [#allocation21], 0 }
  0x2b   :  { %53 = vsyncpa [#allocation21 + $0x1], 0 }
  0x2c   :  { %54 = vsyncpa [#allocation24], 0 }
  0x2d   :  { %56 = vsyncpa [#allocation24 + $0x1], 0 }
  0x2e   :  { %57 = vsyncpa [#allocation27], 0 }
  0x2f   :  { %59 = vsyncpa [#allocation27 + $0x1], 0 }
  0x30   :  { %60 = vsyncpa [#allocation30], 0 }
  0x31   :  { %62 = vsyncpa [#allocation30 + $0x1], 0 }
  0x32   :  { %63 = vsyncpa [#allocation33], 0 }
  0x33   :  { %65 = vsyncpa [#allocation33 + $0x1], 0 }
  0x34   :  { %66 = vsyncpa [#allocation36], 0 }
  0x35   :  { %68 = vsyncpa [#allocation36 + $0x1], 0 }
  0x36   :  { %69 = vsyncpa [#allocation39], 0 }
  0x37   :  { %71 = vsyncpa [#allocation39 + $0x1], 0 }
  0x38   :  { %72 = vsyncpa [#allocation4], 0 }
  0x39   :  { %74 = vsyncpa [#allocation4 + $0x1], 0  ;;  %s6817_s8 = smov 0   ;;  %s6819_s5 = smov 0  }
  0x3a   :  { %s6821_s9 = smov 0   ;;  %s6823_s30 = smov 0  }
  0x3b   :  { %s6825_s3 = smov 0   ;;  %s6827_s6 = smov 0  }
  0x3c   :  { %s6829_s10 = smov 0   ;;  %s6831_s0 = smov 0  }
  0x3d   :  { %s6833_s11 = smov 0   ;;  %s6835_s29 = smov 0  }
  0x3e   :  { %s6837_s2 = smov 0  }
  0x3f LB: > { %8464 = sst [smem:[#allocation56_spill]] %s6598_s5  ;;  %s6873_s7 = sadd.s32 4294967295, %s6634_s2   ;;  %s6634_s2 = sphi %s6837_s2, %s80_s2   ;;  %s6630_s29 = sphi %s6835_s29, %s8587_s29   ;;  %s6626_s11 = sphi %s6833_s11, %s8586_s11   ;;  %s6622_s0 = sphi %s6831_s0, %s8585_s0   ;;  %s6618_s10 = sphi %s6829_s10, %s8584_s10   ;;  %s6614_s6 = sphi %s6827_s6, %s8583_s6   ;;  %s6610_s3 = sphi %s6825_s3, %s8582_s3   ;;  %s6606_s30 = sphi %s6823_s30, %s8581_s30   ;;  %s6602_s9 = sphi %s6821_s9, %s8580_s9   ;;  %s6598_s5 = sphi %s6819_s5, %s8579_s5   ;;  %s6594_s8 = sphi %s6817_s8, %s8578_s8  }
  0x40   : > { %8465 = sst [smem:[#allocation57_spill]] %s6602_s9  ;;  %s4842_s12 = sadd.s32 4294967294, %s6634_s2  }
  0x41   : > { %8466 = sst [smem:[#allocation58_spill]] %s6606_s30  ;;  %s89_s1 = sadd.s32 1, %s6626_s11 }
  0x42   : > { %8467 = sst [smem:[#allocation59_spill]] %s6610_s3  ;;  %s92_s4 = sadd.s32 1, %s6630_s29 }
  0x43   : > { %8468 = sst [smem:[#allocation60_spill]] %s6614_s6  ;;  %p90_p0 = scmp.ge.s32.totalorder %s89_s1, 2 }
  0x44   : > { %8469 = sst [smem:[#allocation61_spill]] %s6618_s10  ;;  %s99_s28 = sadd.s32 1, %s6614_s6 }
  0x45   : > { %8470 = sst [smem:[#allocation62_spill]] %s6622_s0  ;;  %p106_p1 = scmp.ne.s32.totalorder %s6614_s6, %s6610_s3 }
  0x46   : > { %8471 = sst [smem:[#allocation63_spill]] %s6626_s11  ;;  %p107_p2 = scmp.eq.s32.totalorder %s6634_s2, 0 }
  0x47   : > { %8472 = sst [smem:[#allocation64_spill]] %s6630_s29  ;;  %s8589_s1 = smov (%p90_p0, %s89_s1), 0 }
  0x48   : > { %8473 = sst [smem:[#allocation65_spill]] %s6634_s2  ;;  %s8591_s4 = smov (!%p90_p0, %s92_s4), %s6630_s29 }
  0x49   : > { %8474 = sst [smem:[#allocation66_spill]] %s6873_s7  ;;  %p6890_p3 = por %p107_p2, %p106_p1 }
  0x4a   : > { %8475 = sst [smem:[#allocation67_spill]] %s8589_s1  ;;  %p8379_p4 = scmp.ne.s32.totalorder %s6610_s3, %s6606_s30 }
  0x4b   : > { %s8476_s23 = scalar_select %p6890_p3, 1, 0 }
  0x4c   : > { %p94_p5 = scmp.ge.s32.totalorder %s8591_s4, 2  ;;  %p113_p6 = scmp.eq.s32.totalorder %s6873_s7, 0 }
  0x4d   : > { %s174_s10 = ssub.s32 %s6626_s11, %s8589_s1  ;;  %s177_s0 = sadd.s32 1, %s6602_s9 }
  0x4e   : > { %s8593_s4 = smov (%p94_p5, %s8591_s4), 0  ;;  %p6907_p7 = por %p113_p6, %p8379_p4 }
  0x4f   : > { %8477 = sst [smem:[#allocation68_spill]] %s8593_s4  ;;  %p175_p8 = scmp.eq.s32.totalorder %s174_s10, 0 }
  0x50   : > { %s8478_s27 = scalar_select %p6907_p7, 1, 0 }
  0x51   : > { %s96_s25 = ssub.s32 %s6630_s29, %s8593_s4  ;;  %p184_p9 = scmp.ne.s32.totalorder %s6602_s9, %s6598_s5 }
  0x52   : > { %8479 = sst [smem:[#allocation69_spill]] %s8478_s27  ;;  %p97_p10 = scmp.eq.s32.totalorder %s96_s25, 0 }
  0x53   : > { %p190_p11 = scmp.ne.s32.totalorder %s6598_s5, %s6594_s8  ;;  %p6925_p12 = por %p184_p9, %p107_p2 }
  0x54   : > { %s6918_s20 = scalar_select %p175_p8, %s6602_s9, %s177_s0  }
  0x55   : > { %s6921_s1 = scalar_select %p97_p10, %s6614_s6, %s99_s28  }
  0x56   : > { %8480 = sst [smem:[#allocation70_spill]] %s6918_s20  ;;  %p6931_p13 = por %p190_p11, %p113_p6 }
  0x57   : > { %8481 = sst [smem:[#allocation71_spill]] %s6921_s1  ;;  %p838_p0 = scmp.eq.s32.totalorder %s6873_s7, 3 }
  0x58   : > { %s8482_s18 = scalar_select %p6925_p12, 1, 0 }
  0x59   : > { %s8483_s16 = scalar_select %p6931_p13, 1, 0 }
  0x5a   : > { %p844_p5 = scmp.eq.s32.totalorder %s4842_s12, 3  ;;  %p6939_p4 = por %p838_p0, %p106_p1 }
  0x5b   : > { %8484 = sst [smem:[#allocation72_spill]] %s8483_s16  ;;  %p8487_p8 = scmp.ne.s32.totalorder %s6610_s3, %s6606_s30 }
  0x5c   : > { %s8485_s25 = scalar_select %p6939_p4, 1, 0 }
  0x5d   : > { %p6946_p10 = por %p844_p5, %p8487_p8  ;;  %p4844_p2 = scmp.ge.s32.totalorder %s6634_s2, 4 }
  0x5e   : > { %8486 = sst [smem:[#allocation73_spill]] %s8485_s25  ;;  %s6952_s8 = sand.u32 (!%p4844_p2), 1, %s6634_s2  }
  0x5f   : > { %s8488_s28 = scalar_select %p6946_p10, 1, 0 }
  0x60   : > { %860 = sbr.rel (%p4844_p2) target bundleno = 769 (0x301), region = 16  ;;  %s6955_s10 = sand.u32 (!%p4844_p2), 1, %s6602_s9  }
  0x61   : > { %8489 = sst [smem:[#allocation74_spill]] %s8488_s28  ;;  %s6958_s0 = sshll.u32 (!%p4844_p2), %s6626_s11, 4 }
  0x62   : > { %s900_s12 = scalar_lea.vmem (!%p4844_p2), [#allocation5], %s6955_s10  ;;  %s8490_s28 = sld [smem:[#allocation79_spill]] (!%p4844_p2) }
  0x63   : > { %s907_s4 = sshll.u32 (!%p4844_p2), %s900_s12, 4  ;;  %s908_s4 = int_to_ptr.vmem [resolvable:$true] %s907_s4 }
  0x68   : > { %s6965_s30 = scalar_lea.hbm %s8490_s28, %s6958_s0  ;;  %s5768_s12 = scalar_lea.hbm %s8490_s28, 32 }
  0x69   : > { %s5764_s16 = scalar_lea.hbm %s6965_s30, 16  ;;  %p5769_p11 = scmp.lt.u32.totalorder %s6965_s30, %s8490_s28 }
  0x6a   : > { %p5765_p1 = scmp.ne.s32.totalorder %s6965_s30, %s5764_s16  ;;  %p5770_p0 = scmp.lt.u32.totalorder %s5768_s12, %s5764_s16 }
  0x6b   : > { %p5772_p8 = scmp.lt.u32.totalorder %s5764_s16, %s6965_s30 }
  0x6c   : > { %p5766_p6 = pnand %p5765_p1, %p6925_p12  ;;  %p5771_p5 = por %p5770_p0, %p5769_p11 }
  0x6e   : > { %p5767_p9 = pneg %p5766_p6  ;;  %p5773_p2 = por %p5772_p8, %p5771_p5 }
  0x70   : > { %p5774_p10 = pnand %p5773_p2, %p5767_p9 }
  0x72   : > { %5777 = shalt.err (!%p5774_p10)
}
  0x73   : > { %s5778_s20 = scalar_lea.vmem %s908_s4, 16  ;;  %s6636_s1 = smov [#allocation5]  }
  0x74   : > { %p5779_p4 = scmp.ne.s32.totalorder %s908_s4, %s5778_s20  ;;  %s5782_s25 = sshll.u32 %s6636_s1, 4  ;;  %s5783_s25 = int_to_ptr.vmem [resolvable:$false] %s5782_s25 }
  0x75   : > { %s5784_s5 = scalar_lea.vmem %s5783_s25, 32  ;;  %p5785_p13 = scmp.lt.s32.totalorder %s908_s4, %s5783_s25 }
  0x76   : > { %p5780_p1 = pnand %p5779_p4, %p6925_p12  ;;  %p5786_p7 = scmp.lt.s32.totalorder %s5784_s5, %s5778_s20 }
  0x78   : > { %p5781_p6 = pneg %p5780_p1  ;;  %p5787_p3 = por %p5786_p7, %p5785_p13 }
  0x7a   : > { %p5788_p0 = pnand %p5787_p3, %p5781_p6 }
  0x7c   : > { %5791 = shalt.err (!%p5788_p0)
}
  0x7d   : > { %s8491_s16 = scalar_lea.sflag [#allocation6], %s6952_s8  ;;  %s8492_s7 = sld [smem:[#allocation81_spill]] }
  0x7e   : > { %5468 = dma.hbm_to_vmem [thread:$0]  (%p6925_p12), %s6965_s30, 16, %s908_s4, %s8491_s16  }
  0x7f   : > { %s938_s25 = scalar_lea.vmem [#allocation8], %s6955_s10 }
  0x80   : > { %s945_s20 = sshll.u32 %s938_s25, 4  ;;  %s946_s20 = int_to_ptr.vmem [resolvable:$true] %s945_s20 }
  0x83   : > { %s6991_s12 = scalar_lea.hbm %s8492_s7, %s6958_s0  ;;  %s5796_s4 = scalar_lea.hbm %s8492_s7, 32 }
  0x84   : > { %s5792_s5 = scalar_lea.hbm %s6991_s12, 16  ;;  %p5797_p13 = scmp.lt.u32.totalorder %s6991_s12, %s8492_s7 }
  0x85   : > { %p5793_p3 = scmp.ne.s32.totalorder %s6991_s12, %s5792_s5  ;;  %p5798_p10 = scmp.lt.u32.totalorder %s5796_s4, %s5792_s5 }
  0x86   : > { %p5800_p11 = scmp.lt.u32.totalorder %s5792_s5, %s6991_s12 }
  0x87   : > { %p5794_p4 = pnand %p5793_p3, %p6925_p12  ;;  %p5799_p9 = por %p5798_p10, %p5797_p13 }
  0x89   : > { %p5795_p7 = pneg %p5794_p4  ;;  %p5801_p5 = por %p5800_p11, %p5799_p9 }
  0x8b   : > { %p5802_p8 = pnand %p5801_p5, %p5795_p7 }
  0x8d   : > { %5805 = shalt.err (!%p5802_p8)
}
  0x8e   : > { %s5806_s9 = scalar_lea.vmem %s946_s20, 16  ;;  %s6637_s25 = smov [#allocation8]  }
  0x8f   : > { %p5807_p2 = scmp.ne.s32.totalorder %s946_s20, %s5806_s9  ;;  %s5810_s1 = sshll.u32 %s6637_s25, 4  ;;  %s5811_s1 = int_to_ptr.vmem [resolvable:$false] %s5810_s1 }
  0x90   : > { %s5812_s28 = scalar_lea.vmem %s5811_s1, 32  ;;  %p5813_p0 = scmp.lt.s32.totalorder %s946_s20, %s5811_s1 }
  0x91   : > { %p5808_p1 = pnand %p5807_p2, %p6925_p12  ;;  %p5814_p3 = scmp.lt.s32.totalorder %s5812_s28, %s5806_s9 }
  0x93   : > { %p5809_p6 = pneg %p5808_p1  ;;  %p5815_p4 = por %p5814_p3, %p5813_p0 }
  0x95   : > { %p5816_p10 = pnand %p5815_p4, %p5809_p6 }
  0x97   : > { %5819 = shalt.err (!%p5816_p10)
}
  0x98   : > { %s8493_s5 = scalar_lea.sflag [#allocation9], %s6952_s8  ;;  %s8494_s16 = sld [smem:[#allocation83_spill]] }
  0x99   : > { %5470 = dma.hbm_to_vmem [thread:$0]  (%p6925_p12), %s6991_s12, 16, %s946_s20, %s8493_s5  }
  0x9a   : > { %s976_s1 = scalar_lea.vmem [#allocation11], %s6955_s10 }
  0x9b   : > { %s983_s9 = sshll.u32 %s976_s1, 4  ;;  %s984_s9 = int_to_ptr.vmem [resolvable:$true] %s983_s9 }
  0x9e   : > { %s7018_s27 = scalar_lea.hbm %s8494_s16, %s6958_s0  ;;  %s5824_s20 = scalar_lea.hbm %s8494_s16, 32 }
  0x9f   : > { %s5820_s28 = scalar_lea.hbm %s7018_s27, 16  ;;  %p5825_p11 = scmp.lt.u32.totalorder %s7018_s27, %s8494_s16 }
  0xa0   : > { %p5821_p7 = scmp.ne.s32.totalorder %s7018_s27, %s5820_s28  ;;  %p5826_p5 = scmp.lt.u32.totalorder %s5824_s20, %s5820_s28 }
  0xa1   : > { %p5828_p2 = scmp.lt.u32.totalorder %s5820_s28, %s7018_s27 }
  0xa2   : > { %p5822_p13 = pnand %p5821_p7, %p6925_p12  ;;  %p5827_p8 = por %p5826_p5, %p5825_p11 }
  0xa4   : > { %p5823_p9 = pneg %p5822_p13  ;;  %p5829_p1 = por %p5828_p2, %p5827_p8 }
  0xa6   : > { %p5830_p6 = pnand %p5829_p1, %p5823_p9 }
  0xa8   : > { %5833 = shalt.err (!%p5830_p6)
}
  0xa9   : > { %s5834_s4 = scalar_lea.vmem %s984_s9, 16  ;;  %s6638_s1 = smov [#allocation11]  }
  0xaa   : > { %p5835_p0 = scmp.ne.s32.totalorder %s984_s9, %s5834_s4  ;;  %s5838_s25 = sshll.u32 %s6638_s1, 4  ;;  %s5839_s25 = int_to_ptr.vmem [resolvable:$false] %s5838_s25 }
  0xab   : > { %s5840_s7 = scalar_lea.vmem %s5839_s25, 32  ;;  %p5841_p10 = scmp.lt.s32.totalorder %s984_s9, %s5839_s25 }
  0xac   : > { %p5836_p3 = pnand %p5835_p0, %p6925_p12  ;;  %p5842_p7 = scmp.lt.s32.totalorder %s5840_s7, %s5834_s4 }
  0xae   : > { %p5837_p4 = pneg %p5836_p3  ;;  %p5843_p13 = por %p5842_p7, %p5841_p10 }
  0xb0   : > { %p5844_p5 = pnand %p5843_p13, %p5837_p4 }
  0xb2   : > { %5847 = shalt.err (!%p5844_p5)
}
  0xb3   : > { %s8495_s28 = scalar_lea.sflag [#allocation12], %s6952_s8  ;;  %s8496_s5 = sld [smem:[#allocation85_spill]] }
  0xb4   : > { %5472 = dma.hbm_to_vmem [thread:$0]  (%p6925_p12), %s7018_s27, 16, %s984_s9, %s8495_s28  }
  0xb5   : > { %s1014_s25 = scalar_lea.vmem [#allocation14], %s6955_s10  ;;  %s8401_s7 = scalar_lea.sflag [#allocation15], %s6952_s8 }
  0xb6   : > { %s1021_s4 = sshll.u32 %s1014_s25, 4  ;;  %s1022_s4 = int_to_ptr.vmem [resolvable:$true] %s1021_s4 }
  0xb9   : > { %s8497_s1 = smov %s8496_s5  ;;  %s7045_s30 = scalar_lea.hbm %s8496_s5, %s6958_s0 }
  0xba   : > { %s5848_s16 = scalar_lea.hbm %s7045_s30, 16  ;;  %s5852_s9 = scalar_lea.hbm %s8497_s1, 32 }
  0xbb   : > { %p5849_p9 = scmp.ne.s32.totalorder %s7045_s30, %s5848_s16  ;;  %p5853_p2 = scmp.lt.u32.totalorder %s7045_s30, %s8497_s1 }
  0xbc   : > { %p5854_p1 = scmp.lt.u32.totalorder %s5852_s9, %s5848_s16  ;;  %p5856_p0 = scmp.lt.u32.totalorder %s5848_s16, %s7045_s30 }
  0xbd   : > { %p5850_p11 = pnand %p5849_p9, %p6925_p12 }
  0xbe   : > { %p5855_p6 = por %p5854_p1, %p5853_p2 }
  0xbf   : > { %p5851_p8 = pneg %p5850_p11 }
  0xc0   : > { %p5857_p3 = por %p5856_p0, %p5855_p6 }
  0xc2   : > { %p5858_p4 = pnand %p5857_p3, %p5851_p8 }
  0xc4   : > { %5861 = shalt.err (!%p5858_p4)
}
  0xc5   : > { %s5862_s20 = scalar_lea.vmem %s1022_s4, 16  ;;  %s6639_s5 = smov [#allocation14]  }
  0xc6   : > { %p5863_p10 = scmp.ne.s32.totalorder %s1022_s4, %s5862_s20  ;;  %s5866_s25 = sshll.u32 %s6639_s5, 4  ;;  %s5867_s25 = int_to_ptr.vmem [resolvable:$false] %s5866_s25 }
  0xc7   : > { %s5868_s3 = scalar_lea.vmem %s5867_s25, 32  ;;  %p5869_p5 = scmp.lt.s32.totalorder %s1022_s4, %s5867_s25 }
  0xc8   : > { %p5864_p7 = pnand %p5863_p10, %p6925_p12  ;;  %p5870_p9 = scmp.lt.s32.totalorder %s5868_s3, %s5862_s20 }
  0xca   : > { %p5865_p13 = pneg %p5864_p7  ;;  %p5871_p11 = por %p5870_p9, %p5869_p5 }
  0xcc   : > { %p5872_p1 = pnand %p5871_p11, %p5865_p13 }
  0xce   : > { %5875 = shalt.err (!%p5872_p1)
}
  0xcf   : > { %5474 = dma.hbm_to_vmem [thread:$0]  (%p6925_p12), %s7045_s30, 16, %s1022_s4, %s8401_s7  }
  0xd0   : > { %s8498_s9 = sld [smem:[#allocation87_spill]]  ;;  %s1048_s20 = scalar_lea.vmem [#allocation17], %s6955_s10 }
  0xd1   : > { %s1055_s5 = sshll.u32 %s1048_s20, 4  ;;  %s8402_s25 = scalar_lea.sflag [#allocation18], %s6952_s8  ;;  %s1056_s5 = int_to_ptr.vmem [resolvable:$true] %s1055_s5 }
  0xd6   : > { %s8499_s28 = smov %s8498_s9  ;;  %s7072_s12 = scalar_lea.hbm %s8498_s9, %s6958_s0 }
  0xd7   : > { %s5876_s3 = scalar_lea.hbm %s7072_s12, 16  ;;  %s5880_s4 = scalar_lea.hbm %s8499_s28, 32 }
  0xd8   : > { %p5877_p8 = scmp.ne.s32.totalorder %s7072_s12, %s5876_s3  ;;  %p5881_p0 = scmp.lt.u32.totalorder %s7072_s12, %s8499_s28 }
  0xd9   : > { %p5882_p3 = scmp.lt.u32.totalorder %s5880_s4, %s5876_s3  ;;  %p5884_p10 = scmp.lt.u32.totalorder %s5876_s3, %s7072_s12 }
  0xda   : > { %p5878_p2 = pnand %p5877_p8, %p6925_p12 }
  0xdb   : > { %p5883_p4 = por %p5882_p3, %p5881_p0 }
  0xdc   : > { %p5879_p6 = pneg %p5878_p2 }
  0xdd   : > { %p5885_p7 = por %p5884_p10, %p5883_p4 }
  0xdf   : > { %p5886_p13 = pnand %p5885_p7, %p5879_p6 }
  0xe1   : > { %5889 = shalt.err (!%p5886_p13)
}
  0xe2   : > { %s5890_s9 = scalar_lea.vmem %s1056_s5, 16  ;;  %s6640_s20 = smov [#allocation17]  }
  0xe3   : > { %p5891_p5 = scmp.ne.s32.totalorder %s1056_s5, %s5890_s9  ;;  %s5894_s7 = sshll.u32 %s6640_s20, 4  ;;  %s5895_s7 = int_to_ptr.vmem [resolvable:$false] %s5894_s7 }
  0xe4   : > { %s5896_s1 = scalar_lea.vmem %s5895_s7, 32  ;;  %p5897_p1 = scmp.lt.s32.totalorder %s1056_s5, %s5895_s7 }
  0xe5   : > { %p5892_p9 = pnand %p5891_p5, %p6925_p12  ;;  %p5898_p8 = scmp.lt.s32.totalorder %s5896_s1, %s5890_s9 }
  0xe7   : > { %p5893_p11 = pneg %p5892_p9  ;;  %p5899_p2 = por %p5898_p8, %p5897_p1 }
  0xe9   : > { %p5900_p0 = pnand %p5899_p2, %p5893_p11 }
  0xeb   : > { %5903 = shalt.err (!%p5900_p0)
}
  0xec   : > { %5476 = dma.hbm_to_vmem [thread:$0]  (%p6925_p12), %s7072_s12, 16, %s1056_s5, %s8402_s25  }
  0xed   : > { %s8500_s13 = sld [smem:[#allocation89_spill]]  ;;  %s1086_s7 = scalar_lea.vmem [#allocation20], %s6955_s10 }
  0xee   : > { %s1093_s16 = sshll.u32 %s1086_s7, 4  ;;  %s8403_s27 = scalar_lea.sflag [#allocation21], %s6952_s8  ;;  %s1094_s16 = int_to_ptr.vmem [resolvable:$true] %s1093_s16 }
  0xf3   : > { %s7099_s4 = scalar_lea.hbm %s8500_s13, %s6958_s0  ;;  %s5908_s5 = scalar_lea.hbm %s8500_s13, 32 }
  0xf4   : > { %s5904_s9 = scalar_lea.hbm %s7099_s4, 16  ;;  %p5909_p10 = scmp.lt.u32.totalorder %s7099_s4, %s8500_s13 }
  0xf5   : > { %p5905_p6 = scmp.ne.s32.totalorder %s7099_s4, %s5904_s9  ;;  %p5910_p7 = scmp.lt.u32.totalorder %s5908_s5, %s5904_s9 }
  0xf6   : > { %p5912_p5 = scmp.lt.u32.totalorder %s5904_s9, %s7099_s4 }
  0xf7   : > { %p5906_p3 = pnand %p5905_p6, %p6925_p12  ;;  %p5911_p13 = por %p5910_p7, %p5909_p10 }
  0xf9   : > { %p5907_p4 = pneg %p5906_p3  ;;  %p5913_p9 = por %p5912_p5, %p5911_p13 }
  0xfb   : > { %p5914_p11 = pnand %p5913_p9, %p5907_p4 }
  0xfd   : > { %5917 = shalt.err (!%p5914_p11)
}
  0xfe   : > { %s5918_s30 = scalar_lea.vmem %s1094_s16, 16  ;;  %s6641_s7 = smov [#allocation20]  }
  0xff   : > { %p5919_p1 = scmp.ne.s32.totalorder %s1094_s16, %s5918_s30  ;;  %s5922_s25 = sshll.u32 %s6641_s7, 4  ;;  %s5923_s25 = int_to_ptr.vmem [resolvable:$false] %s5922_s25 }
 0x100   : > { %s5924_s20 = scalar_lea.vmem %s5923_s25, 32  ;;  %p5925_p0 = scmp.lt.s32.totalorder %s1094_s16, %s5923_s25 }
 0x101   : > { %p5920_p8 = pnand %p5919_p1, %p6925_p12  ;;  %p5926_p6 = scmp.lt.s32.totalorder %s5924_s20, %s5918_s30 }
 0x103   : > { %p5921_p2 = pneg %p5920_p8  ;;  %p5927_p3 = por %p5926_p6, %p5925_p0 }
 0x105   : > { %p5928_p7 = pnand %p5927_p3, %p5921_p2 }
 0x107   : > { %5931 = shalt.err (!%p5928_p7)
}
 0x108   : > { %5478 = dma.hbm_to_vmem [thread:$0]  (%p6925_p12), %s7099_s4, 16, %s1094_s16, %s8403_s27  }
 0x109   : > { %s8501_s15 = sld [smem:[#allocation91_spill]]  ;;  %s1124_s25 = scalar_lea.vmem [#allocation23], %s6955_s10 }
 0x10a   : > { %s1131_s1 = sshll.u32 %s1124_s25, 4  ;;  %s8404_s3 = scalar_lea.sflag [#allocation24], %s6952_s8  ;;  %s1132_s1 = int_to_ptr.vmem [resolvable:$true] %s1131_s1 }
 0x10f   : > { %s7126_s5 = scalar_lea.hbm %s8501_s15, %s6958_s0  ;;  %s5936_s16 = scalar_lea.hbm %s8501_s15, 32 }
 0x110   : > { %s5932_s30 = scalar_lea.hbm %s7126_s5, 16  ;;  %p5937_p5 = scmp.lt.u32.totalorder %s7126_s5, %s8501_s15 }
 0x111   : > { %p5933_p4 = scmp.ne.s32.totalorder %s7126_s5, %s5932_s30  ;;  %p5938_p9 = scmp.lt.u32.totalorder %s5936_s16, %s5932_s30 }
 0x112   : > { %p5940_p1 = scmp.lt.u32.totalorder %s5932_s30, %s7126_s5 }
 0x113   : > { %p5934_p10 = pnand %p5933_p4, %p6925_p12  ;;  %p5939_p11 = por %p5938_p9, %p5937_p5 }
 0x115   : > { %p5935_p13 = pneg %p5934_p10  ;;  %p5941_p8 = por %p5940_p1, %p5939_p11 }
 0x117   : > { %p5942_p2 = pnand %p5941_p8, %p5935_p13 }
 0x119   : > { %5945 = shalt.err (!%p5942_p2)
}
 0x11a   : > { %s5946_s12 = scalar_lea.vmem %s1132_s1, 16  ;;  %s6642_s25 = smov [#allocation23]  }
 0x11b   : > { %p5947_p0 = scmp.ne.s32.totalorder %s1132_s1, %s5946_s12  ;;  %s5950_s27 = sshll.u32 %s6642_s25, 4  ;;  %s5951_s27 = int_to_ptr.vmem [resolvable:$false] %s5950_s27 }
 0x11c   : > { %s5952_s7 = scalar_lea.vmem %s5951_s27, 32  ;;  %p5953_p7 = scmp.lt.s32.totalorder %s1132_s1, %s5951_s27 }
 0x11d   : > { %p5948_p6 = pnand %p5947_p0, %p6925_p12  ;;  %p5954_p4 = scmp.lt.s32.totalorder %s5952_s7, %s5946_s12 }
 0x11f   : > { %p5949_p3 = pneg %p5948_p6  ;;  %p5955_p10 = por %p5954_p4, %p5953_p7 }
 0x121   : > { %p5956_p5 = pnand %p5955_p10, %p5949_p3 }
 0x123   : > { %5959 = shalt.err (!%p5956_p5)
}
 0x124   : > { %5480 = dma.hbm_to_vmem [thread:$0]  (%p6925_p12), %s7126_s5, 16, %s1132_s1, %s8404_s3  }
 0x125   : > { %s8502_s17 = sld [smem:[#allocation93_spill]]  ;;  %s1162_s27 = scalar_lea.vmem [#allocation26], %s6955_s10 }
 0x126   : > { %s1169_s20 = sshll.u32 %s1162_s27, 4  ;;  %s8405_s9 = scalar_lea.sflag [#allocation27], %s6952_s8  ;;  %s1170_s20 = int_to_ptr.vmem [resolvable:$true] %s1169_s20 }
 0x12b   : > { %s7153_s16 = scalar_lea.hbm %s8502_s17, %s6958_s0  ;;  %s5964_s1 = scalar_lea.hbm %s8502_s17, 32 }
 0x12c   : > { %s5960_s12 = scalar_lea.hbm %s7153_s16, 16  ;;  %p5965_p1 = scmp.lt.u32.totalorder %s7153_s16, %s8502_s17 }
 0x12d   : > { %p5961_p13 = scmp.ne.s32.totalorder %s7153_s16, %s5960_s12  ;;  %p5966_p8 = scmp.lt.u32.totalorder %s5964_s1, %s5960_s12 }
 0x12e   : > { %p5968_p0 = scmp.lt.u32.totalorder %s5960_s12, %s7153_s16 }
 0x12f   : > { %p5962_p9 = pnand %p5961_p13, %p6925_p12  ;;  %p5967_p2 = por %p5966_p8, %p5965_p1 }
 0x131   : > { %p5963_p11 = pneg %p5962_p9  ;;  %p5969_p6 = por %p5968_p0, %p5967_p2 }
 0x133   : > { %p5970_p3 = pnand %p5969_p6, %p5963_p11 }
 0x135   : > { %5973 = shalt.err (!%p5970_p3)
}
 0x136   : > { %s5974_s4 = scalar_lea.vmem %s1170_s20, 16  ;;  %s6643_s27 = smov [#allocation26]  }
 0x137   : > { %p5975_p7 = scmp.ne.s32.totalorder %s1170_s20, %s5974_s4  ;;  %s5978_s3 = sshll.u32 %s6643_s27, 4  ;;  %s5979_s3 = int_to_ptr.vmem [resolvable:$false] %s5978_s3 }
 0x138   : > { %s5980_s25 = scalar_lea.vmem %s5979_s3, 32  ;;  %p5981_p5 = scmp.lt.s32.totalorder %s1170_s20, %s5979_s3 }
 0x139   : > { %p5976_p4 = pnand %p5975_p7, %p6925_p12  ;;  %p5982_p13 = scmp.lt.s32.totalorder %s5980_s25, %s5974_s4 }
 0x13b   : > { %p5977_p10 = pneg %p5976_p4  ;;  %p5983_p9 = por %p5982_p13, %p5981_p5 }
 0x13d   : > { %p5984_p1 = pnand %p5983_p9, %p5977_p10 }
 0x13f   : > { %5987 = shalt.err (!%p5984_p1)
}
 0x140   : > { %5482 = dma.hbm_to_vmem [thread:$0]  (%p6925_p12), %s7153_s16, 16, %s1170_s20, %s8405_s9  }
 0x141   : > { %s8503_s19 = sld [smem:[#allocation95_spill]]  ;;  %s1200_s3 = scalar_lea.vmem [#allocation29], %s6955_s10 }
 0x142   : > { %s1207_s7 = sshll.u32 %s1200_s3, 4  ;;  %s8406_s30 = scalar_lea.sflag [#allocation30], %s6952_s8  ;;  %s1208_s7 = int_to_ptr.vmem [resolvable:$true] %s1207_s7 }
 0x147   : > { %s7180_s1 = scalar_lea.hbm %s8503_s19, %s6958_s0  ;;  %s5992_s20 = scalar_lea.hbm %s8503_s19, 32 }
 0x148   : > { %s5988_s4 = scalar_lea.hbm %s7180_s1, 16  ;;  %p5993_p0 = scmp.lt.u32.totalorder %s7180_s1, %s8503_s19 }
 0x149   : > { %p5989_p11 = scmp.ne.s32.totalorder %s7180_s1, %s5988_s4  ;;  %p5994_p6 = scmp.lt.u32.totalorder %s5992_s20, %s5988_s4 }
 0x14a   : > { %p5996_p7 = scmp.lt.u32.totalorder %s5988_s4, %s7180_s1 }
 0x14b   : > { %p5990_p8 = pnand %p5989_p11, %p6925_p12  ;;  %p5995_p3 = por %p5994_p6, %p5993_p0 }
 0x14d   : > { %p5991_p2 = pneg %p5990_p8  ;;  %p5997_p4 = por %p5996_p7, %p5995_p3 }
 0x14f   : > { %p5998_p10 = pnand %p5997_p4, %p5991_p2 }
 0x151   : > { %6001 = shalt.err (!%p5998_p10)
}
 0x152   : > { %s6002_s5 = scalar_lea.vmem %s1208_s7, 16  ;;  %s6644_s3 = smov [#allocation29]  }
 0x153   : > { %p6003_p5 = scmp.ne.s32.totalorder %s1208_s7, %s6002_s5  ;;  %s6006_s9 = sshll.u32 %s6644_s3, 4  ;;  %s6007_s9 = int_to_ptr.vmem [resolvable:$false] %s6006_s9 }
 0x154   : > { %s6008_s27 = scalar_lea.vmem %s6007_s9, 32  ;;  %p6009_p1 = scmp.lt.s32.totalorder %s1208_s7, %s6007_s9 }
 0x155   : > { %p6004_p13 = pnand %p6003_p5, %p6925_p12  ;;  %p6010_p11 = scmp.lt.s32.totalorder %s6008_s27, %s6002_s5 }
 0x157   : > { %p6005_p9 = pneg %p6004_p13  ;;  %p6011_p8 = por %p6010_p11, %p6009_p1 }
 0x159   : > { %p6012_p0 = pnand %p6011_p8, %p6005_p9 }
 0x15b   : > { %6015 = shalt.err (!%p6012_p0)
}
 0x15c   : > { %5484 = dma.hbm_to_vmem [thread:$0]  (%p6925_p12), %s7180_s1, 16, %s1208_s7, %s8406_s30  }
 0x15d   : > { %s8504_s21 = sld [smem:[#allocation97_spill]]  ;;  %s1234_s9 = scalar_lea.vmem [#allocation32], %s6955_s10 }
 0x15e   : > { %s1241_s25 = sshll.u32 %s1234_s9, 4  ;;  %s8407_s12 = scalar_lea.sflag [#allocation33], %s6952_s8  ;;  %s1242_s25 = int_to_ptr.vmem [resolvable:$true] %s1241_s25 }
 0x163   : > { %s7207_s20 = scalar_lea.hbm %s8504_s21, %s6958_s0  ;;  %s6020_s7 = scalar_lea.hbm %s8504_s21, 32 }
 0x164   : > { %s6016_s5 = scalar_lea.hbm %s7207_s20, 16  ;;  %p6021_p7 = scmp.lt.u32.totalorder %s7207_s20, %s8504_s21 }
 0x165   : > { %p6017_p2 = scmp.ne.s32.totalorder %s7207_s20, %s6016_s5  ;;  %p6022_p4 = scmp.lt.u32.totalorder %s6020_s7, %s6016_s5 }
 0x166   : > { %p6024_p5 = scmp.lt.u32.totalorder %s6016_s5, %s7207_s20 }
 0x167   : > { %p6018_p6 = pnand %p6017_p2, %p6925_p12  ;;  %p6023_p10 = por %p6022_p4, %p6021_p7 }
 0x169   : > { %p6019_p3 = pneg %p6018_p6  ;;  %p6025_p13 = por %p6024_p5, %p6023_p10 }
 0x16b   : > { %p6026_p9 = pnand %p6025_p13, %p6019_p3 }
 0x16d   : > { %6029 = shalt.err (!%p6026_p9)
}
 0x16e   : > { %s6030_s16 = scalar_lea.vmem %s1242_s25, 16  ;;  %s6645_s9 = smov [#allocation32]  }
 0x16f   : > { %p6031_p1 = scmp.ne.s32.totalorder %s1242_s25, %s6030_s16  ;;  %s6034_s30 = sshll.u32 %s6645_s9, 4  ;;  %s6035_s30 = int_to_ptr.vmem [resolvable:$false] %s6034_s30 }
 0x170   : > { %s6036_s3 = scalar_lea.vmem %s6035_s30, 32  ;;  %p6037_p0 = scmp.lt.s32.totalorder %s1242_s25, %s6035_s30 }
 0x171   : > { %p6032_p11 = pnand %p6031_p1, %p6925_p12  ;;  %p6038_p2 = scmp.lt.s32.totalorder %s6036_s3, %s6030_s16 }
 0x173   : > { %p6033_p8 = pneg %p6032_p11  ;;  %p6039_p6 = por %p6038_p2, %p6037_p0 }
 0x175   : > { %p6040_p4 = pnand %p6039_p6, %p6033_p8 }
 0x177   : > { %6043 = shalt.err (!%p6040_p4)
}
 0x178   : > { %5486 = dma.hbm_to_vmem [thread:$0]  (%p6925_p12), %s7207_s20, 16, %s1242_s25, %s8407_s12  }
 0x179   : > { %s4880_s5 = sshll.u32 %s6955_s10, 7  ;;  %s5052_s1 = sshll.u32 %s6626_s11, 11 }
 0x17a   : > { %s8505_s22 = sld [smem:[#allocation98_spill]]  ;;  %s7237_s4 = scalar_lea.vmem [#allocation34], %s4880_s5 }
 0x17b   : > { %s8506_s24 = sld [smem:[#allocation100_spill]]  ;;  %s1280_s20 = scalar_lea.vmem [#allocation35], %s4880_s5 }
 0x17c   : > { %s1287_s25 = sshll.u32 %s1280_s20, 4  ;;  %s8408_s7 = scalar_lea.sflag [#allocation36], %s6952_s8  ;;  %s7245_s25 = int_to_ptr.vmem [resolvable:$true] %s1287_s25 }
 0x180   : > { %s7235_s30 = scalar_lea.hbm %s8505_s22, %s5052_s1 }
 0x181   : > { %s7243_s13 = scalar_lea.hbm %s8506_s24, %s5052_s1  ;;  %s6048_s9 = scalar_lea.hbm %s8506_s24, 4096 }
 0x182   : > { %s6044_s27 = scalar_lea.hbm %s7243_s13, 2048  ;;  %p6049_p5 = scmp.lt.u32.totalorder %s7243_s13, %s8506_s24 }
 0x183   : > { %p6045_p3 = scmp.ne.s32.totalorder %s7243_s13, %s6044_s27  ;;  %p6050_p13 = scmp.lt.u32.totalorder %s6048_s9, %s6044_s27 }
 0x184   : > { %p6052_p1 = scmp.lt.u32.totalorder %s6044_s27, %s7243_s13 }
 0x185   : > { %p6046_p7 = pnand %p6045_p3, %p6925_p12  ;;  %p6051_p9 = por %p6050_p13, %p6049_p5 }
 0x187   : > { %p6047_p10 = pneg %p6046_p7  ;;  %p6053_p11 = por %p6052_p1, %p6051_p9 }
 0x189   : > { %p6054_p8 = pnand %p6053_p11, %p6047_p10 }
 0x18b   : > { %6057 = shalt.err (!%p6054_p8)
}
 0x18c   : > { %s6058_s5 = scalar_lea.vmem %s7245_s25, 2048  ;;  %s6646_s12 = smov [#allocation35]  }
 0x18d   : > { %p6059_p0 = scmp.ne.s32.totalorder %s7245_s25, %s6058_s5  ;;  %s6062_s16 = sshll.u32 %s6646_s12, 4  ;;  %s6063_s16 = int_to_ptr.vmem [resolvable:$false] %s6062_s16 }
 0x18e   : > { %s6064_s20 = scalar_lea.vmem %s6063_s16, 4096  ;;  %p6065_p4 = scmp.lt.s32.totalorder %s7245_s25, %s6063_s16 }
 0x18f   : > { %p6060_p2 = pnand %p6059_p0, %p6925_p12  ;;  %p6066_p3 = scmp.lt.s32.totalorder %s6064_s20, %s6058_s5 }
 0x191   : > { %p6061_p6 = pneg %p6060_p2  ;;  %p6067_p7 = por %p6066_p3, %p6065_p4 }
 0x193   : > { %p6068_p5 = pnand %p6067_p7, %p6061_p6 }
 0x195   : > { %6071 = shalt.err (!%p6068_p5)
}
 0x196   : > { %s8409_s27 = smov 64   ;;  %s8411_s9 = smov 4  }
 0x197   : > { %5488 = dma.hbm_to_vmem [thread:$0]  (%p6925_p12), %s7243_s13, 2048, %s7245_s25, %s8408_s7, %s8409_s27, %s8409_s27, %s8411_s9  }
 0x198   : > { %s8507_s26 = sld [smem:[#allocation102_spill]]  ;;  %s1317_s12 = scalar_lea.vmem [#allocation38], %s6955_s10 }
 0x199   : > { %s1324_s16 = sshll.u32 %s1317_s12, 4  ;;  %s864_s20 = sand.u32 1, %s6614_s6   ;;  %s1325_s16 = int_to_ptr.vmem [resolvable:$true] %s1324_s16 }
 0x19a   : > { %s8413_s15 = scalar_lea.sflag [#allocation39], %s6952_s8 }
 0x19e   : > { %s7278_s5 = scalar_lea.hbm %s8507_s26, %s6958_s0  ;;  %s6076_s1 = scalar_lea.hbm %s8507_s26, 32 }
 0x19f   : > { %s6072_s17 = scalar_lea.hbm %s7278_s5, 16  ;;  %p6077_p1 = scmp.lt.u32.totalorder %s7278_s5, %s8507_s26 }
 0x1a0   : > { %p6073_p10 = scmp.ne.s32.totalorder %s7278_s5, %s6072_s17  ;;  %p6078_p11 = scmp.lt.u32.totalorder %s6076_s1, %s6072_s17 }
 0x1a1   : > { %p6080_p0 = scmp.lt.u32.totalorder %s6072_s17, %s7278_s5 }
 0x1a2   : > { %p6074_p13 = pnand %p6073_p10, %p6925_p12  ;;  %p6079_p8 = por %p6078_p11, %p6077_p1 }
 0x1a4   : > { %p6075_p9 = pneg %p6074_p13  ;;  %p6081_p2 = por %p6080_p0, %p6079_p8 }
 0x1a6   : > { %p6082_p6 = pnand %p6081_p2, %p6075_p9 }
 0x1a8   : > { %6085 = shalt.err (!%p6082_p6)
}
 0x1a9   : > { %s6086_s12 = scalar_lea.vmem %s1325_s16, 16  ;;  %s6649_s27 = smov [#allocation38]  }
 0x1aa   : > { %p6087_p4 = scmp.ne.s32.totalorder %s1325_s16, %s6086_s12  ;;  %s6090_s9 = sshll.u32 %s6649_s27, 4  ;;  %s6091_s9 = int_to_ptr.vmem [resolvable:$false] %s6090_s9 }
 0x1ab   : > { %s6092_s13 = scalar_lea.vmem %s6091_s9, 32  ;;  %p6093_p5 = scmp.lt.s32.totalorder %s1325_s16, %s6091_s9 }
 0x1ac   : > { %p6088_p3 = pnand %p6087_p4, %p6925_p12  ;;  %p6094_p10 = scmp.lt.s32.totalorder %s6092_s13, %s6086_s12 }
 0x1ae   : > { %p6089_p7 = pneg %p6088_p3  ;;  %p6095_p13 = por %p6094_p10, %p6093_p5 }
 0x1b0   : > { %p6096_p1 = pnand %p6095_p13, %p6089_p7 }
 0x1b2   : > { %6099 = shalt.err (!%p6096_p1)
}
 0x1b3   : > { %5490 = dma.hbm_to_vmem [thread:$0]  (%p6925_p12), %s7278_s5, 16, %s1325_s16, %s8413_s15  }
 0x1b4   : > { %s4845_s17 = sshll.u32 %s864_s20, 3  ;;  %s4846_s7 = sshll.u32 %s6630_s29, 7 }
 0x1b5   : > { %s8508_s25 = sld [smem:[#allocation76_spill]]  ;;  %s868_s3 = scalar_lea.vmem [#allocation2], %s4845_s17 }
 0x1b6   : > { %s875_s12 = sshll.u32 %s868_s3, 4  ;;  %s7311_s13 = sshll.u32 %s6955_s10, 6  ;;  %s876_s12 = int_to_ptr.vmem [resolvable:$true] %s875_s12 }
 0x1b7   : > { %s865_s19 = scalar_lea.sflag [#allocation3], %s864_s20  ;;  %p8509_p11 = scmp.ne.s32.totalorder %s8476_s23, 0 }
 0x1bb   : > { %s7308_s1 = scalar_lea.hbm %s8508_s25, %s4846_s7  ;;  %s6104_s7 = scalar_lea.hbm %s8508_s25, 256 }
 0x1bc   : > { %s6100_s5 = scalar_lea.hbm %s7308_s1, 128  ;;  %p6105_p2 = scmp.lt.u32.totalorder %s7308_s1, %s8508_s25 }
 0x1bd   : > { %p6101_p9 = scmp.ne.s32.totalorder %s7308_s1, %s6100_s5  ;;  %p6106_p6 = scmp.lt.u32.totalorder %s6104_s7, %s6100_s5 }
 0x1be   : > { %p6108_p3 = scmp.lt.u32.totalorder %s6100_s5, %s7308_s1 }
 0x1bf   : > { %p6102_p8 = pnand %p6101_p9, %p8509_p11  ;;  %p6107_p4 = por %p6106_p6, %p6105_p2 }
 0x1c1   : > { %p6103_p0 = pneg %p6102_p8  ;;  %p6109_p7 = por %p6108_p3, %p6107_p4 }
 0x1c3   : > { %p6110_p5 = pnand %p6109_p7, %p6103_p0 }
 0x1c5   : > { %6113 = shalt.err (!%p6110_p5)
}
 0x1c6   : > { %s6114_s20 = scalar_lea.vmem %s876_s12, 128  ;;  %s6650_s17 = smov [#allocation2]  }
 0x1c7   : > { %p6115_p10 = scmp.ne.s32.totalorder %s876_s12, %s6114_s20  ;;  %s6118_s3 = sshll.u32 %s6650_s17, 4  ;;  %s6119_s3 = int_to_ptr.vmem [resolvable:$false] %s6118_s3 }
 0x1c8   : > { %s6120_s16 = scalar_lea.vmem %s6119_s3, 256  ;;  %p6121_p9 = scmp.lt.s32.totalorder %s876_s12, %s6119_s3 }
 0x1c9   : > { %p6116_p13 = pnand %p6115_p10, %p8509_p11  ;;  %p6122_p8 = scmp.lt.s32.totalorder %s6120_s16, %s6114_s20 }
 0x1cb   : > { %p6117_p1 = pneg %p6116_p13  ;;  %p6123_p12 = por %p6122_p8, %p6121_p9 }
 0x1cd   : > { %p6124_p2 = pnand %p6123_p12, %p6117_p1 }
 0x1cf   : > { %6127 = shalt.err (!%p6124_p2)
}
 0x1d0   : > { %5467 = dma.hbm_to_vmem [thread:$0]  (%p8509_p11), %s7308_s1, 128, %s876_s12, %s865_s19  }
 0x1d1   : > { %s7333_s15 = sshll.u32 %s6626_s11, 10  ;;  %s918_s5 = scalar_lea.vmem [#allocation7], %s7311_s13 }
 0x1d2   : > { %s925_s27 = sshll.u32 %s918_s5, 4  ;;  %s8510_s17 = sld [smem:[#allocation80_spill]]  ;;  %s7342_s27 = int_to_ptr.vmem [resolvable:$true] %s925_s27 }
 0x1d3   : > { %p8511_p0 = scmp.ne.s32.totalorder %s8482_s18, 0 }
 0x1d8   : > { %s7340_s3 = scalar_lea.hbm %s8510_s17, %s7333_s15  ;;  %s6132_s12 = scalar_lea.hbm %s8510_s17, 2048 }
 0x1d9   : > { %s6128_s23 = scalar_lea.hbm %s7340_s3, 1024  ;;  %p6133_p4 = scmp.lt.u32.totalorder %s7340_s3, %s8510_s17 }
 0x1da   : > { %p6129_p12 = scmp.ne.s32.totalorder %s7340_s3, %s6128_s23  ;;  %p6134_p3 = scmp.lt.u32.totalorder %s6132_s12, %s6128_s23 }
 0x1db   : > { %p6136_p5 = scmp.lt.u32.totalorder %s6128_s23, %s7340_s3 }
 0x1dc   : > { %p6130_p11 = pnand %p6129_p12, %p8511_p0  ;;  %p6135_p7 = por %p6134_p3, %p6133_p4 }
 0x1de   : > { %p6131_p6 = pneg %p6130_p11  ;;  %p6137_p10 = por %p6136_p5, %p6135_p7 }
 0x1e0   : > { %p6138_p13 = pnand %p6137_p10, %p6131_p6 }
 0x1e2   : > { %6141 = shalt.err (!%p6138_p13)
}
 0x1e3   : > { %s6142_s5 = scalar_lea.vmem %s7342_s27, 1024  ;;  %s6651_s7 = smov [#allocation7]  }
 0x1e4   : > { %p6143_p1 = scmp.ne.s32.totalorder %s7342_s27, %s6142_s5  ;;  %s6146_s9 = sshll.u32 %s6651_s7, 4  ;;  %s6147_s9 = int_to_ptr.vmem [resolvable:$false] %s6146_s9 }
 0x1e5   : > { %s6148_s19 = scalar_lea.vmem %s6147_s9, 2048  ;;  %p6149_p2 = scmp.lt.s32.totalorder %s7342_s27, %s6147_s9 }
 0x1e6   : > { %p6144_p9 = pnand %p6143_p1, %p8511_p0  ;;  %p6150_p12 = scmp.lt.s32.totalorder %s6148_s19, %s6142_s5 }
 0x1e8   : > { %p6145_p8 = pneg %p6144_p9  ;;  %p6151_p11 = por %p6150_p12, %p6149_p2 }
 0x1ea   : > { %p6152_p4 = pnand %p6151_p11, %p6145_p8 }
 0x1ec   : > { %6155 = shalt.err (!%p6152_p4)
}
 0x1ed   : > { %s8512_s23 = smov 4   ;;  %s8513_s1 = smov 64  }
 0x1ee   : > { %s8514_s12 = scalar_lea.sflag [#allocation6], %s6952_s8  ;;  %s8515_s5 = sld [smem:[#allocation82_spill]] }
 0x1ef   : > { %5469 = dma.hbm_to_vmem [thread:$0]  (%p8511_p0), %s7340_s3, 1024, %s7342_s27, %s8514_s12, %s8513_s1, %s8513_s1, %s8512_s23  }
 0x1f0   : > { %s956_s19 = scalar_lea.vmem [#allocation10], %s7311_s13  ;;  %s8517_s25 = sld [smem:[#allocation84_spill]] }
 0x1f1   : > { %s963_s17 = sshll.u32 %s956_s19, 4  ;;  %s7377_s17 = int_to_ptr.vmem [resolvable:$true] %s963_s17 }
 0x1f4   : > { %s8516_s7 = smov %s8515_s5  ;;  %s7374_s9 = scalar_lea.hbm %s8515_s5, %s7333_s15 }
 0x1f5   : > { %s6156_s28 = scalar_lea.hbm %s7374_s9, 1024  ;;  %s6160_s12 = scalar_lea.hbm %s8516_s7, 2048 }
 0x1f6   : > { %s7383_s26 = scalar_lea.hbm %s8517_s25, %s7333_s15  ;;  %p6157_p6 = scmp.ne.s32.totalorder %s7374_s9, %s6156_s28 }
 0x1f7   : > { %p6161_p5 = scmp.lt.u32.totalorder %s7374_s9, %s8516_s7  ;;  %p6162_p10 = scmp.lt.u32.totalorder %s6160_s12, %s6156_s28 }
 0x1f8   : > { %p6158_p3 = pnand %p6157_p6, %p8511_p0  ;;  %p6164_p1 = scmp.lt.u32.totalorder %s6156_s28, %s7374_s9 }
 0x1f9   : > { %p6163_p13 = por %p6162_p10, %p6161_p5 }
 0x1fa   : > { %p6159_p7 = pneg %p6158_p3 }
 0x1fb   : > { %p6165_p9 = por %p6164_p1, %p6163_p13 }
 0x1fd   : > { %p6166_p8 = pnand %p6165_p9, %p6159_p7 }
 0x1ff   : > { %6169 = shalt.err (!%p6166_p8)
}
 0x200   : > { %s6170_s21 = scalar_lea.vmem %s7377_s17, 1024  ;;  %s6652_s24 = smov [#allocation10]  }
 0x201   : > { %p6171_p2 = scmp.ne.s32.totalorder %s7377_s17, %s6170_s21  ;;  %s6174_s5 = sshll.u32 %s6652_s24, 4  ;;  %s6175_s5 = int_to_ptr.vmem [resolvable:$false] %s6174_s5 }
 0x202   : > { %s6176_s19 = scalar_lea.vmem %s6175_s5, 2048  ;;  %p6177_p4 = scmp.lt.s32.totalorder %s7377_s17, %s6175_s5 }
 0x203   : > { %p6172_p12 = pnand %p6171_p2, %p8511_p0  ;;  %p6178_p6 = scmp.lt.s32.totalorder %s6176_s19, %s6170_s21 }
 0x205   : > { %p6173_p11 = pneg %p6172_p12  ;;  %p6179_p3 = por %p6178_p6, %p6177_p4 }
 0x207   : > { %p6180_p5 = pnand %p6179_p3, %p6173_p11 }
 0x209   : > { %6183 = shalt.err (!%p6180_p5)
}
 0x20a   : > { %s8518_s28 = scalar_lea.sflag [#allocation9], %s6952_s8  ;;  %s994_s27 = scalar_lea.vmem [#allocation13], %s7311_s13 }
 0x20b   : > { %5471 = dma.hbm_to_vmem [thread:$0]  (%p8511_p0), %s7374_s9, 1024, %s7377_s17, %s8518_s28, %s8513_s1, %s8513_s1, %s8512_s23  }
 0x20c   : > { %s1001_s3 = sshll.u32 %s994_s27, 4  ;;  %s8519_s16 = sld [smem:[#allocation86_spill]]  ;;  %s7412_s3 = int_to_ptr.vmem [resolvable:$true] %s1001_s3 }
 0x20d   : > { %s6184_s24 = scalar_lea.hbm %s7383_s26, 1024  ;;  %s6188_s7 = scalar_lea.hbm %s8517_s25, 2048 }
 0x20e   : > { %p6185_p7 = scmp.ne.s32.totalorder %s7383_s26, %s6184_s24  ;;  %p6189_p1 = scmp.lt.u32.totalorder %s7383_s26, %s8517_s25 }
 0x20f   : > { %p6190_p9 = scmp.lt.u32.totalorder %s6188_s7, %s6184_s24  ;;  %p6192_p2 = scmp.lt.u32.totalorder %s6184_s24, %s7383_s26 }
 0x210   : > { %p6186_p10 = pnand %p6185_p7, %p8511_p0 }
 0x211   : > { %p6191_p8 = por %p6190_p9, %p6189_p1 }
 0x212   : > { %s7418_s21 = scalar_lea.hbm %s8519_s16, %s6958_s0  ;;  %p6187_p13 = pneg %p6186_p10 }
 0x213   : > { %p6193_p12 = por %p6192_p2, %p6191_p8 }
 0x215   : > { %p6194_p11 = pnand %p6193_p12, %p6187_p13 }
 0x217   : > { %6197 = shalt.err (!%p6194_p11)
}
 0x218   : > { %s6198_s9 = scalar_lea.vmem %s7412_s3, 1024  ;;  %s6653_s28 = smov [#allocation13]  }
 0x219   : > { %p6199_p4 = scmp.ne.s32.totalorder %s7412_s3, %s6198_s9  ;;  %s6202_s27 = sshll.u32 %s6653_s28, 4  ;;  %s6203_s27 = int_to_ptr.vmem [resolvable:$false] %s6202_s27 }
 0x21a   : > { %s6204_s29 = scalar_lea.vmem %s6203_s27, 2048  ;;  %p6205_p5 = scmp.lt.s32.totalorder %s7412_s3, %s6203_s27 }
 0x21b   : > { %p6200_p6 = pnand %p6199_p4, %p8511_p0  ;;  %p6206_p7 = scmp.lt.s32.totalorder %s6204_s29, %s6198_s9 }
 0x21d   : > { %p6201_p3 = pneg %p6200_p6  ;;  %p6207_p10 = por %p6206_p7, %p6205_p5 }
 0x21f   : > { %p6208_p1 = pnand %p6207_p10, %p6201_p3 }
 0x221   : > { %6211 = shalt.err (!%p6208_p1)
}
 0x222   : > { %s8520_s7 = scalar_lea.sflag [#allocation12], %s6952_s8  ;;  %s1031_s12 = scalar_lea.vmem [#allocation16], %s6955_s10 }
 0x223   : > { %5473 = dma.hbm_to_vmem [thread:$0]  (%p8511_p0), %s7383_s26, 1024, %s7412_s3, %s8520_s7, %s8513_s1, %s8513_s1, %s8512_s23  }
 0x224   : > { %s1038_s20 = sshll.u32 %s1031_s12, 4  ;;  %s8521_s19 = sld [smem:[#allocation88_spill]]  ;;  %s1039_s20 = int_to_ptr.vmem [resolvable:$true] %s1038_s20 }
 0x225   : > { %s6212_s9 = scalar_lea.hbm %s7418_s21, 16  ;;  %s6216_s29 = scalar_lea.hbm %s8519_s16, 32 }
 0x226   : > { %p6213_p13 = scmp.ne.s32.totalorder %s7418_s21, %s6212_s9  ;;  %p6217_p2 = scmp.lt.u32.totalorder %s7418_s21, %s8519_s16 }
 0x227   : > { %p6218_p12 = scmp.lt.u32.totalorder %s6216_s29, %s6212_s9  ;;  %p6220_p4 = scmp.lt.u32.totalorder %s6212_s9, %s7418_s21 }
 0x228   : > { %p6214_p9 = pnand %p6213_p13, %p8511_p0 }
 0x229   : > { %p6219_p11 = por %p6218_p12, %p6217_p2 }
 0x22a   : > { %s7451_s17 = scalar_lea.hbm %s8521_s19, %s7333_s15  ;;  %p6215_p8 = pneg %p6214_p9 }
 0x22b   : > { %p6221_p6 = por %p6220_p4, %p6219_p11 }
 0x22d   : > { %p6222_p3 = pnand %p6221_p6, %p6215_p8 }
 0x22f   : > { %6225 = shalt.err (!%p6222_p3)
}
 0x230   : > { %s6226_s26 = scalar_lea.vmem %s1039_s20, 16  ;;  %s6654_s3 = smov [#allocation16]  }
 0x231   : > { %p6227_p5 = scmp.ne.s32.totalorder %s1039_s20, %s6226_s26  ;;  %s6230_s7 = sshll.u32 %s6654_s3, 4  ;;  %s6231_s7 = int_to_ptr.vmem [resolvable:$false] %s6230_s7 }
 0x232   : > { %s6232_s12 = scalar_lea.vmem %s6231_s7, 32  ;;  %p6233_p1 = scmp.lt.s32.totalorder %s1039_s20, %s6231_s7 }
 0x233   : > { %p6228_p7 = pnand %p6227_p5, %p8511_p0  ;;  %p6234_p13 = scmp.lt.s32.totalorder %s6232_s12, %s6226_s26 }
 0x235   : > { %p6229_p10 = pneg %p6228_p7  ;;  %p6235_p9 = por %p6234_p13, %p6233_p1 }
 0x237   : > { %p6236_p2 = pnand %p6235_p9, %p6229_p10 }
 0x239   : > { %6239 = shalt.err (!%p6236_p2)
}
 0x23a   : > { %s8522_s11 = scalar_lea.sflag [#allocation15], %s6952_s8  ;;  %s1066_s25 = scalar_lea.vmem [#allocation19], %s7311_s13 }
 0x23b   : > { %5475 = dma.hbm_to_vmem [thread:$0]  (%p8511_p0), %s7418_s21, 16, %s1039_s20, %s8522_s11  }
 0x23c   : > { %s1073_s24 = sshll.u32 %s1066_s25, 4  ;;  %s8523_s14 = sld [smem:[#allocation90_spill]]  ;;  %s7473_s24 = int_to_ptr.vmem [resolvable:$true] %s1073_s24 }
 0x23d   : > { %s6240_s27 = scalar_lea.hbm %s7451_s17, 1024  ;;  %s6244_s3 = scalar_lea.hbm %s8521_s19, 2048 }
 0x23e   : > { %p6241_p8 = scmp.ne.s32.totalorder %s7451_s17, %s6240_s27  ;;  %p6245_p4 = scmp.lt.u32.totalorder %s7451_s17, %s8521_s19 }
 0x23f   : > { %p6246_p6 = scmp.lt.u32.totalorder %s6244_s3, %s6240_s27  ;;  %p6248_p5 = scmp.lt.u32.totalorder %s6240_s27, %s7451_s17 }
 0x240   : > { %p6242_p12 = pnand %p6241_p8, %p8511_p0 }
 0x241   : > { %p6247_p3 = por %p6246_p6, %p6245_p4 }
 0x242   : > { %s7479_s28 = scalar_lea.hbm %s8523_s14, %s7333_s15  ;;  %p6243_p11 = pneg %p6242_p12 }
 0x243   : > { %p6249_p7 = por %p6248_p5, %p6247_p3 }
 0x245   : > { %p6250_p10 = pnand %p6249_p7, %p6243_p11 }
 0x247   : > { %6253 = shalt.err (!%p6250_p10)
}
 0x248   : > { %s6254_s20 = scalar_lea.vmem %s7473_s24, 1024  ;;  %s6655_s12 = smov [#allocation19]  }
 0x249   : > { %p6255_p1 = scmp.ne.s32.totalorder %s7473_s24, %s6254_s20  ;;  %s6258_s11 = sshll.u32 %s6655_s12, 4  ;;  %s6259_s11 = int_to_ptr.vmem [resolvable:$false] %s6258_s11 }
 0x24a   : > { %s6260_s25 = scalar_lea.vmem %s6259_s11, 2048  ;;  %p6261_p2 = scmp.lt.s32.totalorder %s7473_s24, %s6259_s11 }
 0x24b   : > { %p6256_p13 = pnand %p6255_p1, %p8511_p0  ;;  %p6262_p8 = scmp.lt.s32.totalorder %s6260_s25, %s6254_s20 }
 0x24d   : > { %p6257_p9 = pneg %p6256_p13  ;;  %p6263_p12 = por %p6262_p8, %p6261_p2 }
 0x24f   : > { %p6264_p4 = pnand %p6263_p12, %p6257_p9 }
 0x251   : > { %6267 = shalt.err (!%p6264_p4)
}
 0x252   : > { %s8524_s5 = scalar_lea.sflag [#allocation18], %s6952_s8  ;;  %s1104_s9 = scalar_lea.vmem [#allocation22], %s7311_s13 }
 0x253   : > { %5477 = dma.hbm_to_vmem [thread:$0]  (%p8511_p0), %s7451_s17, 1024, %s7473_s24, %s8524_s5, %s8513_s1, %s8513_s1, %s8512_s23  }
 0x254   : > { %s1111_s27 = sshll.u32 %s1104_s9, 4  ;;  %s8525_s3 = sld [smem:[#allocation92_spill]]  ;;  %s7508_s27 = int_to_ptr.vmem [resolvable:$true] %s1111_s27 }
 0x255   : > { %s6268_s20 = scalar_lea.hbm %s7479_s28, 1024  ;;  %s6272_s25 = scalar_lea.hbm %s8523_s14, 2048 }
 0x256   : > { %p6269_p11 = scmp.ne.s32.totalorder %s7479_s28, %s6268_s20  ;;  %p6273_p5 = scmp.lt.u32.totalorder %s7479_s28, %s8523_s14 }
 0x257   : > { %p6274_p7 = scmp.lt.u32.totalorder %s6272_s25, %s6268_s20  ;;  %p6276_p1 = scmp.lt.u32.totalorder %s6268_s20, %s7479_s28 }
 0x258   : > { %p6270_p6 = pnand %p6269_p11, %p8511_p0 }
 0x259   : > { %p6275_p10 = por %p6274_p7, %p6273_p5 }
 0x25a   : > { %s8526_s7 = smov %s8525_s3  ;;  %s7514_s21 = scalar_lea.hbm %s8525_s3, %s7333_s15 }
 0x25b   : > { %p6271_p3 = pneg %p6270_p6  ;;  %p6277_p13 = por %p6276_p1, %p6275_p10 }
 0x25d   : > { %p6278_p9 = pnand %p6277_p13, %p6271_p3 }
 0x25f   : > { %6281 = shalt.err (!%p6278_p9)
}
 0x260   : > { %s6282_s24 = scalar_lea.vmem %s7508_s27, 1024  ;;  %s6656_s5 = smov [#allocation22]  }
 0x261   : > { %p6283_p2 = scmp.ne.s32.totalorder %s7508_s27, %s6282_s24  ;;  %s6286_s9 = sshll.u32 %s6656_s5, 4  ;;  %s6287_s9 = int_to_ptr.vmem [resolvable:$false] %s6286_s9 }
 0x262   : > { %s6288_s16 = scalar_lea.vmem %s6287_s9, 2048  ;;  %p6289_p4 = scmp.lt.s32.totalorder %s7508_s27, %s6287_s9 }
 0x263   : > { %p6284_p8 = pnand %p6283_p2, %p8511_p0  ;;  %p6290_p11 = scmp.lt.s32.totalorder %s6288_s16, %s6282_s24 }
 0x265   : > { %p6285_p12 = pneg %p6284_p8  ;;  %p6291_p6 = por %p6290_p11, %p6289_p4 }
 0x267   : > { %p6292_p5 = pnand %p6291_p6, %p6285_p12 }
 0x269   : > { %6295 = shalt.err (!%p6292_p5)
}
 0x26a   : > { %s8527_s29 = scalar_lea.sflag [#allocation21], %s6952_s8  ;;  %s1142_s26 = scalar_lea.vmem [#allocation25], %s7311_s13 }
 0x26b   : > { %5479 = dma.hbm_to_vmem [thread:$0]  (%p8511_p0), %s7479_s28, 1024, %s7508_s27, %s8527_s29, %s8513_s1, %s8513_s1, %s8512_s23  }
 0x26c   : > { %s1149_s3 = sshll.u32 %s1142_s26, 4  ;;  %s8528_s11 = sld [smem:[#allocation94_spill]]  ;;  %s7543_s3 = int_to_ptr.vmem [resolvable:$true] %s1149_s3 }
 0x26d   : > { %s6296_s24 = scalar_lea.hbm %s7514_s21, 1024  ;;  %s6300_s16 = scalar_lea.hbm %s8526_s7, 2048 }
 0x26e   : > { %p6297_p3 = scmp.ne.s32.totalorder %s7514_s21, %s6296_s24  ;;  %p6301_p1 = scmp.lt.u32.totalorder %s7514_s21, %s8526_s7 }
 0x26f   : > { %p6302_p13 = scmp.lt.u32.totalorder %s6300_s16, %s6296_s24  ;;  %p6304_p2 = scmp.lt.u32.totalorder %s6296_s24, %s7514_s21 }
 0x270   : > { %p6298_p7 = pnand %p6297_p3, %p8511_p0 }
 0x271   : > { %p6303_p9 = por %p6302_p13, %p6301_p1 }
 0x272   : > { %s8529_s25 = smov %s8528_s11  ;;  %s7549_s17 = scalar_lea.hbm %s8528_s11, %s7333_s15 }
 0x273   : > { %p6299_p10 = pneg %p6298_p7  ;;  %p6305_p8 = por %p6304_p2, %p6303_p9 }
 0x275   : > { %p6306_p12 = pnand %p6305_p8, %p6299_p10 }
 0x277   : > { %6309 = shalt.err (!%p6306_p12)
}
 0x278   : > { %s6310_s15 = scalar_lea.vmem %s7543_s3, 1024  ;;  %s6657_s27 = smov [#allocation25]  }
 0x279   : > { %p6311_p4 = scmp.ne.s32.totalorder %s7543_s3, %s6310_s15  ;;  %s6314_s29 = sshll.u32 %s6657_s27, 4  ;;  %s6315_s29 = int_to_ptr.vmem [resolvable:$false] %s6314_s29 }
 0x27a   : > { %s6316_s14 = scalar_lea.vmem %s6315_s29, 2048  ;;  %p6317_p5 = scmp.lt.s32.totalorder %s7543_s3, %s6315_s29 }
 0x27b   : > { %p6312_p11 = pnand %p6311_p4, %p8511_p0  ;;  %p6318_p3 = scmp.lt.s32.totalorder %s6316_s14, %s6310_s15 }
 0x27d   : > { %p6313_p6 = pneg %p6312_p11  ;;  %p6319_p7 = por %p6318_p3, %p6317_p5 }
 0x27f   : > { %p6320_p1 = pnand %p6319_p7, %p6313_p6 }
 0x281   : > { %6323 = shalt.err (!%p6320_p1)
}
 0x282   : > { %s8530_s26 = scalar_lea.sflag [#allocation24], %s6952_s8  ;;  %s1180_s20 = scalar_lea.vmem [#allocation28], %s7311_s13 }
 0x283   : > { %5481 = dma.hbm_to_vmem [thread:$0]  (%p8511_p0), %s7514_s21, 1024, %s7543_s3, %s8530_s26, %s8513_s1, %s8513_s1, %s8512_s23  }
 0x284   : > { %s1187_s12 = sshll.u32 %s1180_s20, 4  ;;  %s8531_s5 = sld [smem:[#allocation96_spill]]  ;;  %s7578_s12 = int_to_ptr.vmem [resolvable:$true] %s1187_s12 }
 0x285   : > { %s6324_s28 = scalar_lea.hbm %s7549_s17, 1024  ;;  %s6328_s29 = scalar_lea.hbm %s8529_s25, 2048 }
 0x286   : > { %p6325_p10 = scmp.ne.s32.totalorder %s7549_s17, %s6324_s28  ;;  %p6329_p2 = scmp.lt.u32.totalorder %s7549_s17, %s8529_s25 }
 0x287   : > { %p6330_p8 = scmp.lt.u32.totalorder %s6328_s29, %s6324_s28  ;;  %p6332_p4 = scmp.lt.u32.totalorder %s6324_s28, %s7549_s17 }
 0x288   : > { %p6326_p13 = pnand %p6325_p10, %p8511_p0 }
 0x289   : > { %p6331_p12 = por %p6330_p8, %p6329_p2 }
 0x28a   : > { %s8532_s16 = smov %s8531_s5  ;;  %s7584_s9 = scalar_lea.hbm %s8531_s5, %s6958_s0 }
 0x28b   : > { %p6327_p9 = pneg %p6326_p13  ;;  %p6333_p11 = por %p6332_p4, %p6331_p12 }
 0x28d   : > { %p6334_p6 = pnand %p6333_p11, %p6327_p9 }
 0x28f   : > { %6337 = shalt.err (!%p6334_p6)
}
 0x290   : > { %s6338_s13 = scalar_lea.vmem %s7578_s12, 1024  ;;  %s6658_s3 = smov [#allocation28]  }
 0x291   : > { %p6339_p5 = scmp.ne.s32.totalorder %s7578_s12, %s6338_s13  ;;  %s6342_s26 = sshll.u32 %s6658_s3, 4  ;;  %s6343_s26 = int_to_ptr.vmem [resolvable:$false] %s6342_s26 }
 0x292   : > { %s6344_s20 = scalar_lea.vmem %s6343_s26, 2048  ;;  %p6345_p1 = scmp.lt.s32.totalorder %s7578_s12, %s6343_s26 }
 0x293   : > { %p6340_p3 = pnand %p6339_p5, %p8511_p0  ;;  %p6346_p10 = scmp.lt.s32.totalorder %s6344_s20, %s6338_s13 }
 0x295   : > { %p6341_p7 = pneg %p6340_p3  ;;  %p6347_p13 = por %p6346_p10, %p6345_p1 }
 0x297   : > { %p6348_p2 = pnand %p6347_p13, %p6341_p7 }
 0x299   : > { %6351 = shalt.err (!%p6348_p2)
}
 0x29a   : > { %s8533_s11 = scalar_lea.sflag [#allocation27], %s6952_s8  ;;  %s1217_s24 = scalar_lea.vmem [#allocation31], %s6955_s10 }
 0x29b   : > { %5483 = dma.hbm_to_vmem [thread:$0]  (%p8511_p0), %s7549_s17, 1024, %s7578_s12, %s8533_s11, %s8513_s1, %s8513_s1, %s8512_s23  }
 0x29c   : > { %s1224_s5 = sshll.u32 %s1217_s24, 4  ;;  %s8534_s28 = sshll.u32 %s7237_s4, 4  ;;  %s7615_s28 = int_to_ptr.vmem [resolvable:$true] %s8534_s28  ;;  %s1225_s5 = int_to_ptr.vmem [resolvable:$true] %s1224_s5 }
 0x29d   : > { %s6352_s15 = scalar_lea.hbm %s7584_s9, 16  ;;  %s6356_s14 = scalar_lea.hbm %s8532_s16, 32 }
 0x29e   : > { %p6353_p9 = scmp.ne.s32.totalorder %s7584_s9, %s6352_s15  ;;  %p6357_p4 = scmp.lt.u32.totalorder %s7584_s9, %s8532_s16 }
 0x29f   : > { %p6358_p11 = scmp.lt.u32.totalorder %s6356_s14, %s6352_s15  ;;  %p6360_p5 = scmp.lt.u32.totalorder %s6352_s15, %s7584_s9 }
 0x2a0   : > { %p6354_p8 = pnand %p6353_p9, %p8511_p0 }
 0x2a1   : > { %p6359_p6 = por %p6358_p11, %p6357_p4 }
 0x2a2   : > { %p6355_p12 = pneg %p6354_p8 }
 0x2a3   : > { %p6361_p3 = por %p6360_p5, %p6359_p6 }
 0x2a5   : > { %p6362_p7 = pnand %p6361_p3, %p6355_p12 }
 0x2a7   : > { %6365 = shalt.err (!%p6362_p7)
}
 0x2a8   : > { %s6366_s4 = scalar_lea.vmem %s1225_s5, 16  ;;  %s6659_s23 = smov [#allocation31]  }
 0x2a9   : > { %p6367_p1 = scmp.ne.s32.totalorder %s1225_s5, %s6366_s4  ;;  %s6370_s1 = sshll.u32 %s6659_s23, 4  ;;  %s6371_s1 = int_to_ptr.vmem [resolvable:$false] %s6370_s1 }
 0x2aa   : > { %s6372_s17 = scalar_lea.vmem %s6371_s1, 32  ;;  %p6373_p2 = scmp.lt.s32.totalorder %s1225_s5, %s6371_s1 }
 0x2ab   : > { %p6368_p10 = pnand %p6367_p1, %p8511_p0  ;;  %p6374_p9 = scmp.lt.s32.totalorder %s6372_s17, %s6366_s4 }
 0x2ad   : > { %p6369_p13 = pneg %p6368_p10  ;;  %p6375_p8 = por %p6374_p9, %p6373_p2 }
 0x2af   : > { %p6376_p4 = pnand %p6375_p8, %p6369_p13 }
 0x2b1   : > { %6379 = shalt.err (!%p6376_p4)
}
 0x2b2   : > { %s8535_s12 = scalar_lea.sflag [#allocation30], %s6952_s8  ;;  %s6380_s3 = scalar_lea.hbm %s7235_s30, 2048 }
 0x2b3   : > { %5485 = dma.hbm_to_vmem [thread:$0]  (%p8511_p0), %s7584_s9, 16, %s1225_s5, %s8535_s12  }
 0x2b4   : > { %p6381_p12 = scmp.ne.s32.totalorder %s7235_s30, %s6380_s3  ;;  %s6384_s11 = scalar_lea.hbm %s8505_s22, 4096 }
 0x2b5   : > { %p6385_p5 = scmp.lt.u32.totalorder %s7235_s30, %s8505_s22  ;;  %p6386_p3 = scmp.lt.u32.totalorder %s6384_s11, %s6380_s3 }
 0x2b6   : > { %p6382_p11 = pnand %p6381_p12, %p8511_p0  ;;  %p6388_p1 = scmp.lt.u32.totalorder %s6380_s3, %s7235_s30 }
 0x2b7   : > { %p6387_p7 = por %p6386_p3, %p6385_p5 }
 0x2b8   : > { %p6383_p6 = pneg %p6382_p11 }
 0x2b9   : > { %p6389_p10 = por %p6388_p1, %p6387_p7 }
 0x2bb   : > { %p6390_p13 = pnand %p6389_p10, %p6383_p6 }
 0x2bd   : > { %6393 = shalt.err (!%p6390_p13)
}
 0x2be   : > { %s6394_s9 = scalar_lea.vmem %s7615_s28, 2048  ;;  %s6660_s5 = smov [#allocation34]  }
 0x2bf   : > { %p6395_p2 = scmp.ne.s32.totalorder %s7615_s28, %s6394_s9  ;;  %s6398_s27 = sshll.u32 %s6660_s5, 4  ;;  %s6399_s27 = int_to_ptr.vmem [resolvable:$false] %s6398_s27 }
 0x2c0   : > { %s6400_s29 = scalar_lea.vmem %s6399_s27, 4096  ;;  %p6401_p4 = scmp.lt.s32.totalorder %s7615_s28, %s6399_s27 }
 0x2c1   : > { %p6396_p9 = pnand %p6395_p2, %p8511_p0  ;;  %p6402_p12 = scmp.lt.s32.totalorder %s6400_s29, %s6394_s9 }
 0x2c3   : > { %p6397_p8 = pneg %p6396_p9  ;;  %p6403_p11 = por %p6402_p12, %p6401_p4 }
 0x2c5   : > { %p6404_p5 = pnand %p6403_p11, %p6397_p8 }
 0x2c7   : > { %6407 = shalt.err (!%p6404_p5)
}
 0x2c8   : > { %s6661_s14 = smov 128   ;;  %s6662_s21 = smov 8  }
 0x2c9   : > { %s8536_s13 = scalar_lea.sflag [#allocation33], %s6952_s8  ;;  %s8537_s1 = sld [smem:[#allocation101_spill]] }
 0x2ca   : > { %5487 = dma.hbm_to_vmem [thread:$0]  (%p8511_p0), %s7235_s30, 2048, %s7615_s28, %s8536_s13, %s6661_s14, %s6661_s14, %s6662_s21  }
 0x2cb   : > { %s1300_s12 = scalar_lea.vmem [#allocation37], %s6955_s10 }
 0x2cc   : > { %s1307_s3 = sshll.u32 %s1300_s12, 4  ;;  %s1308_s3 = int_to_ptr.vmem [resolvable:$true] %s1307_s3 }
 0x2cf   : > { %s7663_s17 = scalar_lea.hbm %s8537_s1, %s6958_s0  ;;  %s6412_s30 = scalar_lea.hbm %s8537_s1, 32 }
 0x2d0   : > { %s6408_s26 = scalar_lea.hbm %s7663_s17, 16  ;;  %p6413_p1 = scmp.lt.u32.totalorder %s7663_s17, %s8537_s1 }
 0x2d1   : > { %p6409_p6 = scmp.ne.s32.totalorder %s7663_s17, %s6408_s26  ;;  %p6414_p10 = scmp.lt.u32.totalorder %s6412_s30, %s6408_s26 }
 0x2d2   : > { %p6416_p2 = scmp.lt.u32.totalorder %s6408_s26, %s7663_s17 }
 0x2d3   : > { %p6410_p3 = pnand %p6409_p6, %p8511_p0  ;;  %p6415_p13 = por %p6414_p10, %p6413_p1 }
 0x2d5   : > { %p6411_p7 = pneg %p6410_p3  ;;  %p6417_p9 = por %p6416_p2, %p6415_p13 }
 0x2d7   : > { %p6418_p8 = pnand %p6417_p9, %p6411_p7 }
 0x2d9   : > { %6421 = shalt.err (!%p6418_p8)
}
 0x2da   : > { %s6422_s15 = scalar_lea.vmem %s1308_s3, 16  ;;  %s6663_s9 = smov [#allocation37]  }
 0x2db   : > { %p6423_p4 = scmp.ne.s32.totalorder %s1308_s3, %s6422_s15  ;;  %s6426_s5 = sshll.u32 %s6663_s9, 4  ;;  %s6427_s5 = int_to_ptr.vmem [resolvable:$false] %s6426_s5 }
 0x2dc   : > { %s6428_s27 = scalar_lea.vmem %s6427_s5, 32  ;;  %p6429_p5 = scmp.lt.s32.totalorder %s1308_s3, %s6427_s5 }
 0x2dd   : > { %p6424_p12 = pnand %p6423_p4, %p8511_p0  ;;  %p6430_p6 = scmp.lt.s32.totalorder %s6428_s27, %s6422_s15 }
 0x2df   : > { %p6425_p11 = pneg %p6424_p12  ;;  %p6431_p3 = por %p6430_p6, %p6429_p5 }
 0x2e1   : > { %p6432_p1 = pnand %p6431_p3, %p6425_p11 }
 0x2e3   : > { %6435 = shalt.err (!%p6432_p1)
}
 0x2e4   : > { %s8538_s29 = scalar_lea.sflag [#allocation36], %s6952_s8  ;;  %s8539_s13 = sld [smem:[#allocation103_spill]] }
 0x2e5   : > { %5489 = dma.hbm_to_vmem [thread:$0]  (%p8511_p0), %s7663_s17, 16, %s1308_s3, %s8538_s29  }
 0x2e6   : > { %s1334_s23 = scalar_lea.vmem [#allocation40], %s6955_s10 }
 0x2e7   : > { %s1341_s12 = sshll.u32 %s1334_s23, 4  ;;  %s1342_s12 = int_to_ptr.vmem [resolvable:$true] %s1341_s12 }
 0x2ea   : > { %s7689_s4 = scalar_lea.hbm %s8539_s13, %s6958_s0  ;;  %s6440_s17 = scalar_lea.hbm %s8539_s13, 32 }
 0x2eb   : > { %s6436_s26 = scalar_lea.hbm %s7689_s4, 16  ;;  %p6441_p2 = scmp.lt.u32.totalorder %s7689_s4, %s8539_s13 }
 0x2ec   : > { %p6437_p7 = scmp.ne.s32.totalorder %s7689_s4, %s6436_s26  ;;  %p6442_p9 = scmp.lt.u32.totalorder %s6440_s17, %s6436_s26 }
 0x2ed   : > { %p6444_p4 = scmp.lt.u32.totalorder %s6436_s26, %s7689_s4 }
 0x2ee   : > { %p6438_p10 = pnand %p6437_p7, %p8511_p0  ;;  %p6443_p8 = por %p6442_p9, %p6441_p2 }
 0x2f0   : > { %p6439_p13 = pneg %p6438_p10  ;;  %p6445_p12 = por %p6444_p4, %p6443_p8 }
 0x2f2   : > { %p6446_p11 = pnand %p6445_p12, %p6439_p13 }
 0x2f4   : > { %6449 = shalt.err (!%p6446_p11)
}
 0x2f5   : > { %s6450_s10 = scalar_lea.vmem %s1342_s12, 16  ;;  %s6664_s0 = smov [#allocation40]  }
 0x2f6   : > { %p6451_p5 = scmp.ne.s32.totalorder %s1342_s12, %s6450_s10  ;;  %s6454_s28 = sshll.u32 %s6664_s0, 4  ;;  %s6455_s28 = int_to_ptr.vmem [resolvable:$false] %s6454_s28 }
 0x2f7   : > { %s6456_s24 = scalar_lea.vmem %s6455_s28, 32  ;;  %p6457_p1 = scmp.lt.s32.totalorder %s1342_s12, %s6455_s28 }
 0x2f8   : > { %p6452_p6 = pnand %p6451_p5, %p8511_p0  ;;  %p6458_p7 = scmp.lt.s32.totalorder %s6456_s24, %s6450_s10 }
 0x2fa   : > { %p6453_p3 = pneg %p6452_p6  ;;  %p6459_p10 = por %p6458_p7, %p6457_p1 }
 0x2fc   : > { %p6460_p2 = pnand %p6459_p10, %p6453_p3 }
 0x2fe   : > { %6463 = shalt.err (!%p6460_p2)
}
 0x2ff   : > { %s8540_s15 = scalar_lea.sflag [#allocation39], %s6952_s8 }
 0x300   : > { %5491 = dma.hbm_to_vmem [thread:$0]  (%p8511_p0), %s7689_s4, 16, %s1342_s12, %s8540_s15  }
 0x301 PF: > { %p4889_p13 = scmp.ge.s32.totalorder %s6634_s2, 1  ;;  %p1346_p9 = scmp.lt.s32.totalorder %s6634_s2, 5 }
 0x303   : > { %p1347_p8 = pnand %p4889_p13, %p1346_p9 }
 0x305   : > { %1350 = sbr.rel (%p1347_p8) target bundleno = 8274 (0x2052), region = 132 }
 0x30c   : > { %s8541_s9 = sld [smem:[#allocation59_spill]]  ;;  %s8542_s5 = sld [smem:[#allocation69_spill]] }
 0x312   : > { %s7714_s27 = sand.u32 1, %s8541_s9   ;;  %p8543_p0 = scmp.ne.s32.totalorder %s8542_s5, 0 }
 0x313   : > { %s8424_s29 = sshll.u32 %s7714_s27, 3  ;;  %s1353_s18 = scalar_lea.sflag [#allocation3], %s7714_s27 }
 0x314   : > { %s7720_s8 = scalar_lea.vmem [#allocation2], %s8424_s29 }
 0x315   : > { %6537 = dma.done.wait (%p8543_p0), %s1353_s18, 128  }
 0x316   : > { %6539 = vsyncadd (%p8543_p0), %s1353_s18, 4294967168  ;;  %s8544_s14 = sld [smem:[#allocation66_spill]]  ;;  %s8545_s21 = sld [smem:[#allocation56_spill]] }
 0x317   : > { %s8546_s4 = sld [smem:[#allocation72_spill]] }
 0x31c   : > { %s7727_s23 = sand.u32 1, %s8544_s14   ;;  %s7730_s12 = sand.u32 1, %s8545_s21  }
 0x31d   : > { %s1362_s26 = scalar_lea.sflag [#allocation6], %s7727_s23  ;;  %p8547_p4 = scmp.ne.s32.totalorder %s8546_s4, 0 }
 0x31f   : > { %6541 = dma.done.wait (%p8547_p4), %s1362_s26, 1040  }
 0x320   : > { %6543 = vsyncadd (%p8547_p4), %s1362_s26, 4294966256  ;;  %s7739_s11 = sshll.u32 %s7730_s12, 6  ;;  %s1379_s3 = scalar_lea.sflag [#allocation9], %s7727_s23 }
 0x321   : > { %s7742_s17 = scalar_lea.vmem [#allocation7], %s7739_s11 }
 0x322   : > { %6545 = dma.done.wait (%p8547_p4), %s1379_s3, 1040  }
 0x323   : > { %6547 = vsyncadd (%p8547_p4), %s1379_s3, 4294966256  ;;  %s7751_s10 = scalar_lea.vmem [#allocation10], %s7739_s11  ;;  %s1396_s0 = scalar_lea.sflag [#allocation12], %s7727_s23 }
 0x324   : > { %6549 = dma.done.wait (%p8547_p4), %s1396_s0, 1040  }
 0x325   : > { %6551 = vsyncadd (%p8547_p4), %s1396_s0, 4294966256  ;;  %s7760_s24 = scalar_lea.vmem [#allocation13], %s7739_s11  ;;  %s1413_s15 = scalar_lea.sflag [#allocation15], %s7727_s23 }
 0x326   : > { %6553 = dma.done.wait (%p8547_p4), %s1413_s15, 32  }
 0x327   : > { %6555 = vsyncadd (%p8547_p4), %s1413_s15, 4294967264  ;;  %s1429_s18 = scalar_lea.sflag [#allocation18], %s7727_s23 }
 0x328   : > { %6557 = dma.done.wait (%p8547_p4), %s1429_s18, 1040  }
 0x329   : > { %6559 = vsyncadd (%p8547_p4), %s1429_s18, 4294966256  ;;  %s7776_s21 = scalar_lea.vmem [#allocation19], %s7739_s11  ;;  %s1446_s26 = scalar_lea.sflag [#allocation21], %s7727_s23 }
 0x32a   : > { %6561 = dma.done.wait (%p8547_p4), %s1446_s26, 1040  }
 0x32b   : > { %6563 = vsyncadd (%p8547_p4), %s1446_s26, 4294966256  ;;  %s7785_s0 = scalar_lea.vmem [#allocation22], %s7739_s11  ;;  %s1463_s15 = scalar_lea.sflag [#allocation24], %s7727_s23 }
 0x32c   : > { %6565 = dma.done.wait (%p8547_p4), %s1463_s15, 1040  }
 0x32d   : > { %6567 = vsyncadd (%p8547_p4), %s1463_s15, 4294966256  ;;  %s7794_s3 = scalar_lea.vmem [#allocation25], %s7739_s11  ;;  %s1480_s26 = scalar_lea.sflag [#allocation27], %s7727_s23 }
 0x32e   : > { %6569 = dma.done.wait (%p8547_p4), %s1480_s26, 1040  }
 0x32f   : > { %6571 = vsyncadd (%p8547_p4), %s1480_s26, 4294966256  ;;  %s7803_s18 = scalar_lea.vmem [#allocation28], %s7739_s11  ;;  %s1497_s15 = scalar_lea.sflag [#allocation30], %s7727_s23 }
 0x330   : > { %6573 = dma.done.wait (%p8547_p4), %s1497_s15, 32  }
 0x331   : > { %6575 = vsyncadd (%p8547_p4), %s1497_s15, 4294967264  ;;  %s1513_s9 = scalar_lea.sflag [#allocation33], %s7727_s23 }
 0x332   : > { %6577 = dma.done.wait (%p8547_p4), %s1513_s9, 2064  }
 0x333   : > { %6579 = vsyncadd (%p8547_p4), %s1513_s9, 4294965232  ;;  %s4898_s11 = sshll.u32 %s7730_s12, 7  ;;  %s1530_s28 = scalar_lea.sflag [#allocation36], %s7727_s23 }
 0x334   : > { %s7819_s5 = scalar_lea.vmem [#allocation34], %s4898_s11  ;;  %s7822_s15 = scalar_lea.vmem [#allocation35], %s4898_s11 }
 0x335   : > { %8548 = sst [smem:[#allocation75_spill]] %s7822_s15 }
 0x336   : > { %6581 = dma.done.wait (%p8547_p4), %s1530_s28, 2064  }
 0x337   : > { %6583 = vsyncadd (%p8547_p4), %s1530_s28, 4294965232  ;;  %s1547_s9 = scalar_lea.sflag [#allocation39], %s7727_s23 }
 0x338   : > { %6585 = dma.done.wait (%p8547_p4), %s1547_s9, 32  }
 0x339   : > { %6587 = vsyncadd (%p8547_p4), %s1547_s9, 4294967264  ;;  %s8549_s20 = sld [smem:[#allocation62_spill]]  ;;  %s8550_s11 = sld [smem:[#allocation61_spill]] }
 0x33a   : > { %s8551_s23 = sld [smem:[#allocation77_spill]]  ;;  %s8552_s9 = sld [smem:[#allocation78_spill]] }
 0x33b   : > { %s8553_s25 = sld [smem:[#allocation99_spill]]  ;;  %s1557_s2 = scalar_lea.vmem [#allocation40], %s7730_s12 }
 0x33c   : > { %s8554_s15 = sshll.u32 %s7714_s27, 3 }
 0x33f   : > { %p1748_p12 = scmp.lt.s32.totalorder %s8549_s20, 1  ;;  %p1752_p11 = scmp.lt.s32.totalorder %s8550_s11, 1 }
 0x340   : > { %p4905_p5 = scmp.ne.s32.totalorder %s8550_s11, 0 }
 0x341   : > { %s8595_s20 = smov (!%p1748_p12, %s8549_s20), 1  ;;  %v1766_v0 = vld [vmem:[%s7720_s8] sm:$0xff] (!%p4905_p5) }
 0x342   : > { %s1753_s28 = scalar_select %p1752_p11, %s8550_s11, 1 }
 0x343   : > { %s4901_s30 = sshll.u32 %s8595_s20, 3  ;;  %s7857_s20 = scalar_lea.vmem [#allocation41], %s8554_s15 }
 0x344   : > { %s7842_s14 = scalar_lea.vmem %s8551_s23, %s4901_s30  ;;  %s5054_s1 = sshll.u32 %s1753_s28, 6  ;;  %1767 = vst [vmem:[%s7857_s20] sm:$0xff] (!%p4905_p5), %v1766_v0 }
 0x345   : > { %s7847_s13 = scalar_lea.vmem %s8552_s9, %s5054_s1  ;;  %s4904_s16 = sshll.u32 %s1753_s28, 1 }
 0x346   : > { %s7852_s6 = scalar_lea.vmem %s8553_s25, %s4904_s16  ;;  %1765 = sbr.rel (%p4905_p5) target bundleno = 845 (0x34d), region = 236 }
 0x34d PF: > { %v5622_v1 = vld [vmem:[%s7742_s17] sm:$0xff]   ;;  %v6665_v2 = vmov 0.0   ;;  %v5623_v3 = vld [vmem:[%s7847_s13] sm:$0xff]   ;;  %vm6666_vm0 = vmmov 0   ;;  %v5625_v5 = vld [vmem:[%s7847_s13 + $0x8] sm:$0xff]   ;;  %s8555_s22 = scalar_lea.vmem [#allocation8], %s7730_s12 }
 0x34e   : > { %5207 = vmatprep.subr.bf16.mxu1 %v6665_v2  ;;  %5187 = vmatprep.subr.bf16.mxu0 %v6665_v2  ;;  %v5624_v4 = vld [vmem:[%s7742_s17 + $0x8] sm:$0xff]   ;;  %v5626_v6 = vld [vmem:[%s7742_s17 + $0x10] sm:$0xff]   ;;  %v5627_v7 = vld [vmem:[%s7847_s13 + $0x10] sm:$0xff]   ;;  %s8556_s19 = scalar_lea.vmem [#allocation5], %s7730_s12  ;;  %vm2125_vm1 = vcmask 261120   ;;  %s6667_s7 = smov 96  }
 0x34f   : > { %5208 = vmatpush3.bf16.msra.mxu1 %v5622_v1  ;;  %5223 = vmatprep.mubr.msk.bf16.mxu1 %vm6666_vm0, %v6665_v2  ;;  %v5628_v8 = vld [vmem:[%s7742_s17 + $0x18] sm:$0xff]   ;;  %v5629_v9 = vld [vmem:[%s7847_s13 + $0x18] sm:$0xff]   ;;  %v5631_v11 = vld [vmem:[%s7847_s13 + $0x20] sm:$0xff]   ;;  %vm2172_vm2 = vcmask 64512   ;;  %s8557_s25 = scalar_lea.vmem [#allocation11], %s7730_s12  ;;  %vm2188_vm3 = vcmask 1043456  }
 0x350   : > { %5209 = vmatprep.subr.bf16.mxu1 %v6665_v2  ;;  %5188 = vmatpush3.bf16.msra.mxu0 %v5623_v3  ;;  %v5630_v10 = vld [vmem:[%s7742_s17 + $0x20] sm:$0xff]   ;;  %v5632_v12 = vld [vmem:[%s7742_s17 + $0x28] sm:$0xff]   ;;  %v5633_v13 = vld [vmem:[%s7847_s13 + $0x28] sm:$0xff]   ;;  %s6668_s16 = smov 64   ;;  %s6669_s1 = smov 32  }
 0x351   : > { %5189 = vmatprep.subr.bf16.mxu0 %v6665_v2  ;;  %5203 = vmatprep.mubr.msk.bf16.mxu0 %vm6666_vm0, %v6665_v2  ;;  %v5634_v14 = vld [vmem:[%s7742_s17 + $0x30] sm:$0xff]   ;;  %v5635_v15 = vld [vmem:[%s7847_s13 + $0x30] sm:$0xff]   ;;  %v5637_v18 = vld [vmem:[%s7847_s13 + $0x38] sm:$0xff]   ;;  %s8558_s13 = scalar_lea.vmem [#allocation14], %s7730_s12  ;;  %s8559_s29 = scalar_lea.vmem [#allocation16], %s7730_s12 }
 0x352   : > { %v5636_v16 = vld [vmem:[%s7742_s17 + $0x38] sm:$0xff]   ;;  %v4915_v20 = vld [vmem:[%s8555_s22] ss:$0 sm:$0xff]  ;;  %v5638_v36 = vld [vmem:[%s7751_s10] sm:$0xff]   ;;  %s8560_s8 = scalar_lea.vmem [#allocation17], %s7730_s12  ;;  %s8561_s17 = scalar_lea.vmem [#allocation23], %s7730_s12 }
 0x353   : > { %5210 = vmatpush3.bf16.msra.mxu1 %v5624_v4  ;;  %v7896_v17 = vld [vmem:[%s7857_s20] sm:$0xff]  ;;  %v4906_v21 = vld [vmem:[%s8556_s19] ss:$0 sm:$0xff]  ;;  %v5640_v38 = vld [vmem:[%s7751_s10 + $0x10] sm:$0xff]   ;;  %s8562_s30 = scalar_lea.vmem [#allocation20], %s7730_s12  ;;  %s4253_s15 = sshll.u32 %s7857_s20, 4  ;;  %s8268_s15 = int_to_ptr.vmem [resolvable:$true] %s4253_s15 }
 0x354   : > { %5211 = vmatprep.subr.bf16.mxu1 %v6665_v2  ;;  %5190 = vmatpush3.bf16.msra.mxu0 %v5625_v5  ;;  %v1838_v19 = vpack.c.bf16 %v7896_v17, %v7896_v17  ;;  %v5639_v37 = vld [vmem:[%s7751_s10 + $0x8] sm:$0xff]   ;;  %v5641_v39 = vld [vmem:[%s7751_s10 + $0x18] sm:$0xff]   ;;  %v5642_v40 = vld [vmem:[%s7751_s10 + $0x20] sm:$0xff]   ;;  %s8572_s23 = sld [smem:[#allocation104_spill]]  ;;  %s4240_s9 = scalar_lea.sflag [#allocation4], %s7714_s27 }
 0x355   : > { %5191 = vmatprep.subr.bf16.mxu0 %v6665_v2  ;;  %v5643_v41 = vld [vmem:[%s7751_s10 + $0x28] sm:$0xff]   ;;  %v5644_v42 = vld [vmem:[%s7751_s10 + $0x30] sm:$0xff]   ;;  %v5645_v43 = vld [vmem:[%s7751_s10 + $0x38] sm:$0xff]   ;;  %s8563_s10 = scalar_lea.vmem [#allocation26], %s7730_s12  ;;  %s6464_s22 = scalar_lea.vmem %s8268_s15, 128 }
 0x356   : > { %v4924_v58 = vld [vmem:[%s8557_s25] ss:$0 sm:$0xff]  ;;  %p6465_p6 = scmp.ne.s32.totalorder %s8268_s15, %s6464_s22 }
 0x357   : > { %5212 = vmatpush3.bf16.msra.mxu1 %v5626_v6 }
 0x358   : > { %5213 = vmatprep.subr.bf16.mxu1 %v6665_v2  ;;  %5192 = vmatpush3.bf16.msra.mxu0 %v5627_v7 }
 0x359   : > { %5193 = vmatprep.subr.bf16.mxu0 %v6665_v2 }
 0x35b   : > { %5214 = vmatpush3.bf16.msra.mxu1 %v5628_v8 }
 0x35c   : > { %5215 = vmatprep.subr.bf16.mxu1 %v6665_v2  ;;  %5194 = vmatpush3.bf16.msra.mxu0 %v5629_v9 }
 0x35d   : > { %5195 = vmatprep.subr.bf16.mxu0 %v6665_v2 }
 0x35f   : > { %5216 = vmatpush3.bf16.msra.mxu1 %v5630_v10 }
 0x360   : > { %5217 = vmatprep.subr.bf16.mxu1 %v6665_v2  ;;  %5196 = vmatpush3.bf16.msra.mxu0 %v5631_v11 }
 0x361   : > { %5197 = vmatprep.subr.bf16.mxu0 %v6665_v2 }
 0x363   : > { %5218 = vmatpush3.bf16.msra.mxu1 %v5632_v12 }
 0x364   : > { %5219 = vmatprep.subr.bf16.mxu1 %v6665_v2  ;;  %5198 = vmatpush3.bf16.msra.mxu0 %v5633_v13 }
 0x365   : > { %5199 = vmatprep.subr.bf16.mxu0 %v6665_v2 }
 0x367   : > { %5220 = vmatpush3.bf16.msra.mxu1 %v5634_v14 }
 0x368   : > { %5221 = vmatprep.subr.bf16.mxu1 %v6665_v2  ;;  %5200 = vmatpush3.bf16.msra.mxu0 %v5635_v15 }
 0x369   : > { %5201 = vmatprep.subr.bf16.mxu0 %v6665_v2 }
 0x36b   : > { %5222 = vmatpush3.bf16.msra.mxu1 %v5636_v16 }
 0x36c   : > { %5202 = vmatpush3.bf16.msra.mxu0 %v5637_v18  ;;  %5247 = vmatprep.subr.bf16.mxu1 %v6665_v2 }
 0x36d   : > { %5227 = vmatprep.subr.bf16.mxu0 %v6665_v2 }
 0x36e   : > { %5224 = vmatmul.mubr.bf16.vlgmr.msra.gmra.mrb[0].mxu1 %v1838_v19 }
 0x36f   : > { %5204 = vmatmul.mubr.bf16.vlgmr.msra.gmra.mrb[0].mxu0 %v1838_v19  ;;  %5249 = vmatprep.mubr.msk.bf16.mxu1 %vm6666_vm0, %v6665_v2 }
 0x370   : > { %5243 = vmatprep.mubr.msk.bf16.mxu0 %vm6666_vm0, %v6665_v2  ;;  %5228 = vmatpush3.bf16.msra.mxu0 %v5638_v36 }
 0x371   : > { %5229 = vmatprep.subr.bf16.mxu0 %v6665_v2 }
 0x374   : > { %5230 = vmatpush3.bf16.msra.mxu0 %v5639_v37 }
 0x375   : > { %5231 = vmatprep.subr.bf16.mxu0 %v6665_v2 }
 0x378   : > { %5232 = vmatpush3.bf16.msra.mxu0 %v5640_v38 }
 0x379   : > { %5233 = vmatprep.subr.bf16.mxu0 %v6665_v2 }
 0x37c   : > { %5234 = vmatpush3.bf16.msra.mxu0 %v5641_v39 }
 0x37d   : > { %5235 = vmatprep.subr.bf16.mxu0 %v6665_v2 }
 0x380   : > { %5236 = vmatpush3.bf16.msra.mxu0 %v5642_v40 }
 0x381   : > { %5237 = vmatprep.subr.bf16.mxu0 %v6665_v2 }
 0x384   : > { %5238 = vmatpush3.bf16.msra.mxu0 %v5643_v41 }
 0x385   : > { %5239 = vmatprep.subr.bf16.mxu0 %v6665_v2 }
 0x388   : > { %5240 = vmatpush3.bf16.msra.mxu0 %v5644_v42 }
 0x389   : > { %5241 = vmatprep.subr.bf16.mxu0 %v6665_v2 }
 0x38c   : > { %5242 = vmatpush3.bf16.msra.mxu0 %v5645_v43 }
 0x38d   : > { %5271 = vmatprep.subr.bf16.mxu0 %v6665_v2 }
 0x38f   : > { %5244 = vmatmul.mubr.bf16.vlgmr.msra.gmra.mrb[4].mxu0 %v1838_v19 }
 0x390   : > { %5275 = vmatprep.mubr.msk.bf16.mxu0 %vm6666_vm0, %v6665_v2 }
 0x441   : > { %v2021_v22 = vpop.f32.mrb[0].mxu1 }
 0x442   : > { %v2022_v23 = vadd.f32 %v4915_v20, %v2021_v22  ;;  %v5225_v24 = vpop.f32.mrb[1].mxu1  ;;  %v1927_v25 = vpop.f32.mrb[0].mxu0 }
 0x443   : > { %v2024_v26 = vpop.f32.mrb[2].mxu1  ;;  %v1928_v27 = vadd.f32 %v4906_v21, %v1927_v25  ;;  %v5205_v28 = vpop.f32.mrb[1].mxu0  ;;  %v5649_v24 = vld [vmem:[%s7760_s24 + $0x18] sm:$0xff]  }
 0x444   : > { %v7913_v29 = vpack.c.bf16 %v2022_v23, %v2022_v23  ;;  %v5226_v30 = vpop.f32.mrb[3].mxu1  ;;  %v1930_v31 = vpop.f32.mrb[2].mxu0  ;;  %v5648_v23 = vld [vmem:[%s7760_s24 + $0x10] sm:$0xff]   ;;  %v5646_v28 = vld [vmem:[%s7760_s24] sm:$0xff]  }
 0x445   : > { %v2121_v32 = vmul.f32 0.17677669, %v1928_v27  ;;  %v5206_v33 = vpop.f32.mrb[3].mxu0  ;;  %5272 = vmatpush3.bf16.msra.mxu0 %v5648_v23  ;;  %v5647_v31 = vld [vmem:[%s7760_s24 + $0x8] sm:$0xff]  }
 0x446   : > { %2237 = vrot.lane.b32.xlu1 %v7913_v29, %s6667_s7  ;;  %v2130_v34 = vsel %vm2125_vm1, %v7913_v29, 0  ;;  %5273 = vmatprep.subr.bf16.mxu0 %v6665_v2 }
 0x447   : > { %v7919_v35 = vpack.c.bf16 %v2121_v32, %v2121_v32  ;;  %5248 = vmatpush3.bf16.xpose.msra.mxu1 %v2130_v34 }
 0x448   : > { %5253 = vmatprep.subr.bf16.mxu1 %v6665_v2 }
 0x449   : > { %5274 = vmatpush3.bf16.msra.mxu0 %v5649_v24 }
 0x44a   : > { %2234 = vrot.lane.b32.xlu1 %v7919_v35, %s6667_s7  ;;  %5287 = vmatprep.subr.bf16.mxu0 %v6665_v2 }
 0x44e   : > { %5250 = vmatmul.mubr.msk.bf16.vlgmr.msra.gmra.mrb[4].mxu1 %vm2125_vm1, %v7919_v35 }
 0x44f   : > { %5255 = vmatprep.mubr.msk.bf16.mxu1 %vm6666_vm0, %v6665_v2 }
 0x462   : > { %v2115_v49 = vpop.f32.mrb[4].mxu0 }
 0x463   : > { %v5245_v50 = vpop.f32.mrb[5].mxu0  ;;  %v2116_v59 = vadd.f32 %v4924_v58, %v2115_v49 }
 0x464   : > { %v2118_v51 = vpop.f32.mrb[6].mxu0 }
 0x465   : > { %v5246_v52 = vpop.f32.mrb[7].mxu0  ;;  %v7950_v60 = vpack.c.bf16 %v2116_v59, %v2116_v59 }
 0x467   : > { %v2190_v61 = vsel %vm2188_vm3, %v7950_v60, 0 }
 0x468   : > { %5254 = vmatpush3.bf16.msra.mxu1 %v2190_v61 }
 0x469   : > { %5259 = vmatprep.subr.bf16.mxu1 %v6665_v2 }
 0x4b8   : > { %v2238_v1 = vpop.permute.xlu1 %2237 }
 0x4b9   : > { %v2243_v4 = vsel %vm2125_vm1, %v2238_v1, 0 }
 0x4bc   : > { %v2235_v5 = vpop.permute.xlu1 %2234 }
 0x521   : > { %v2166_v44 = vpop.f32.mrb[4].mxu1 }
 0x522   : > { %v5251_v45 = vpop.f32.mrb[5].mxu1  ;;  %v2173_v46 = vsel %vm2172_vm2, %v2166_v44, -inf }
 0x523   : > { %2174 = vmax.xlane.f32.xlu0 %v2173_v46  ;;  %v2169_v47 = vpop.f32.mrb[6].mxu1 }
 0x524   : > { %v5252_v48 = vpop.f32.mrb[7].mxu1 }
 0x5b0   : > { %v2175_v53 = vpop.xlane.xlu0 %2174 }
 0x5b1   : > { %v2176_v54 = vsub.f32 %v2166_v44, %v2175_v53 }
 0x5b3   : > { %v2177_v55 = vmul.f32 1.442695, %v2176_v54 }
 0x5b5   : > { %5726 = vpow2.f32 %v2177_v55 }
 0x5bf   : > { %v5727_v56 = vpop.eup %5726 }
 0x5c0   : > { %v2179_v57 = vsel %vm2172_vm2, %v5727_v56, 0.0 }
 0x5c1   : > { %2180 = vadd.xlane.f32.xlu0 %v2179_v57 }
 0x64e   : > { %v2181_v62 = vpop.xlane.xlu0 %2180 }
 0x64f   : > { %5728 = vrcp.f32 %v2181_v62 }
 0x659   : > { %v5729_v63 = vpop.eup %5728 }
 0x65a   : > { %v2183_v0 = vmul.f32 %v5729_v63, %v5727_v56 }
 0x65c   : > { %v2184_v3 = vpack.c.bf16 %v2183_v0, %v2183_v0  ;;  %v5650_v0 = vld [vmem:[%s7760_s24 + $0x20] sm:$0xff]  }
 0x65e   : > { %5256 = vmatmul.mubr.msk.bf16.vlgmr.msra.gmra.mrb[8].mxu1 %vm2172_vm2, %v2184_v3 }
 0x65f   : > { %5260 = vmatpush3.bf16.xpose.msra.mxu1 %v2243_v4  ;;  %5261 = vmatprep.mubr.msk.bf16.mxu1 %vm6666_vm0, %v6665_v2 }
 0x660   : > { %5265 = vmatprep.subr.bf16.mxu1 %v6665_v2 }
 0x666   : > { %5262 = vmatmul.mubr.msk.bf16.vlgmr.msra.gmra.mrb[12].mxu1 %vm2125_vm1, %v2235_v5 }
 0x667   : > { %5267 = vmatprep.mubr.msk.bf16.mxu1 %vm6666_vm0, %v6665_v2 }
 0x731   : > { %v2226_v6 = vpop.f32.mrb[8].mxu1 }
 0x732   : > { %v5257_v7 = vpop.f32.mrb[9].mxu1  ;;  %v2232_v33 = vpack.c.bf16 %v2226_v6, %v2226_v6 }
 0x733   : > { %v2229_v8 = vpop.f32.mrb[10].mxu1 }
 0x734   : > { %v5258_v9 = vpop.f32.mrb[11].mxu1 }
 0x739   : > { %v2279_v10 = vpop.f32.mrb[12].mxu1 }
 0x73a   : > { %v5263_v11 = vpop.f32.mrb[13].mxu1  ;;  %v2285_v12 = vsel %vm2172_vm2, %v2279_v10, -inf }
 0x73b   : > { %2286 = vmax.xlane.f32.xlu0 %v2285_v12  ;;  %v2282_v13 = vpop.f32.mrb[14].mxu1 }
 0x73c   : > { %v5264_v14 = vpop.f32.mrb[15].mxu1 }
 0x751   : > { %2298 = vrot.lane.b32.xlu0 %v7950_v60, %s6667_s7 }
 0x755   : > { %2459 = vrot.lane.b32.xlu0 %v7913_v29, %s6668_s16 }
 0x759   : > { %2457 = vrot.lane.b32.xlu0 %v7919_v35, %s6668_s16 }
 0x7c8   : > { %v2287_v15 = vpop.xlane.xlu0 %2286 }
 0x7c9   : > { %v2288_v16 = vsub.f32 %v2279_v10, %v2287_v15 }
 0x7cb   : > { %v2289_v18 = vmul.f32 1.442695, %v2288_v16 }
 0x7cc   : > { %v2299_v19 = vpop.permute.xlu0 %2298 }
 0x7cd   : > { %5730 = vpow2.f32 %v2289_v18  ;;  %v2304_v20 = vsel %vm2188_vm3, %v2299_v19, 0 }
 0x7ce   : > { %5266 = vmatpush3.bf16.msra.mxu1 %v2304_v20 }
 0x7cf   : > { %5279 = vmatprep.subr.bf16.mxu1 %v6665_v2 }
 0x7d0   : > { %v2460_v36 = vpop.permute.xlu0 %2459 }
 0x7d1   : > { %v2465_v41 = vsel %vm2125_vm1, %v2460_v36, 0 }
 0x7d4   : > { %v2458_v45 = vpop.permute.xlu0 %2457 }
 0x7d7   : > { %v5731_v21 = vpop.eup %5730 }
 0x7d8   : > { %v2291_v22 = vsel %vm2172_vm2, %v5731_v21, 0.0 }
 0x7d9   : > { %2292 = vadd.xlane.f32.xlu1 %v2291_v22 }
 0x7ea   : > { %2519 = vrot.lane.b32.xlu1 %v7950_v60, %s6668_s16 }
 0x866   : > { %v2293_v25 = vpop.xlane.xlu1 %2292 }
 0x867   : > { %5732 = vrcp.f32 %v2293_v25 }
 0x86a   : > { %v2520_v32 = vpop.permute.xlu1 %2519 }
 0x86b   : > { %v2525_v34 = vsel %vm2188_vm3, %v2520_v32, 0 }
 0x871   : > { %v5733_v26 = vpop.eup %5732 }
 0x872   : > { %v2295_v27 = vmul.f32 %v5733_v26, %v5731_v21  ;;  %v5652_v26 = vld [vmem:[%s7760_s24 + $0x30] sm:$0xff]  }
 0x874   : > { %v2296_v30 = vpack.c.bf16 %v2295_v27, %v2295_v27 }
 0x876   : > { %5268 = vmatmul.mubr.msk.bf16.vlgmr.msra.gmra.mrb[16].mxu1 %vm2172_vm2, %v2296_v30 }
 0x877   : > { %5280 = vmatpush3.bf16.msra.mxu1 %v5646_v28  ;;  %5283 = vmatprep.mubr.msk.bf16.mxu1 %vm6666_vm0, %v6665_v2 }
 0x878   : > { %5281 = vmatprep.subr.bf16.mxu1 %v6665_v2 }
 0x87b   : > { %5282 = vmatpush3.bf16.msra.mxu1 %v5647_v31 }
 0x87c   : > { %5293 = vmatprep.subr.bf16.mxu1 %v6665_v2 }
 0x87e   : > { %5284 = vmatmul.mubr.msk.bf16.vlgmr.msra.gmra.mrb[20].mxu1 %vm2125_vm1, %v2232_v33 }
 0x87f   : > { %5294 = vmatpush3.bf16.msra.mxu1 %v2525_v34  ;;  %5295 = vmatprep.mubr.msk.bf16.mxu1 %vm6666_vm0, %v6665_v2 }
 0x880   : > { %5307 = vmatprep.subr.bf16.mxu1 %v6665_v2 }
 0x949   : > { %v2340_v37 = vpop.f32.mrb[16].mxu1 }
 0x94a   : > { %v2346_v38 = vpack.c.bf16 %v2340_v37, %v2340_v37  ;;  %v5269_v39 = vpop.f32.mrb[17].mxu1  ;;  %v5653_v37 = vld [vmem:[%s7760_s24 + $0x38] sm:$0xff]  }
 0x94b   : > { %v2343_v40 = vpop.f32.mrb[18].mxu1 }
 0x94c   : > { %v5270_v42 = vpop.f32.mrb[19].mxu1  ;;  %5276 = vmatmul.mubr.msk.bf16.vlgmr.msra.gmra.mrb[8].mxu0 %vm2125_vm1, %v2346_v38 }
 0x94d   : > { %5288 = vmatpush3.bf16.xpose.msra.mxu0 %v2465_v41  ;;  %5289 = vmatprep.mubr.msk.bf16.mxu0 %vm6666_vm0, %v6665_v2 }
 0x94e   : > { %5299 = vmatprep.subr.bf16.mxu0 %v6665_v2 }
 0x951   : > { %v2451_v43 = vpop.f32.mrb[20].mxu1 }
 0x952   : > { %v5285_v44 = vpop.f32.mrb[21].mxu1 }
 0x953   : > { %v2454_v46 = vpop.f32.mrb[22].mxu1 }
 0x954   : > { %v5286_v47 = vpop.f32.mrb[23].mxu1  ;;  %5290 = vmatmul.mubr.msk.bf16.vlgmr.msra.gmra.mrb[12].mxu0 %vm2125_vm1, %v2458_v45 }
 0x955   : > { %5303 = vmatprep.mubr.msk.bf16.mxu0 %vm6666_vm0, %v6665_v2  ;;  %5300 = vmatpush3.bf16.msra.mxu0 %v5650_v0  ;;  %v5663_v0 = vld [vmem:[%s7776_s21 + $0x18] sm:$0xff]  }
 0x956   : > { %5301 = vmatprep.subr.bf16.mxu0 %v6665_v2 }
 0xa1f   : > { %v2396_v48 = vpop.f32.mrb[8].mxu0 }
 0xa20   : > { %v7999_v49 = vadd.f32 %v2451_v43, %v2396_v48  ;;  %v5277_v50 = vpop.f32.mrb[9].mxu0  ;;  %v4953_v43 = vld [vmem:[%s8558_s13] ss:$0 sm:$0xff] }
 0xa21   : > { %v2399_v51 = vpop.f32.mrb[10].mxu0 }
 0xa22   : > { %v5278_v52 = vpop.f32.mrb[11].mxu0  ;;  %v5654_v51 = vld [vmem:[%s7785_s0] sm:$0xff]  }
 0xa23   : > { %v5657_v52 = vld [vmem:[%s7776_s21] sm:$0xff]  }
 0xa27   : > { %v2501_v53 = vpop.f32.mrb[12].mxu0 }
 0xa28   : > { %v5291_v54 = vpop.f32.mrb[13].mxu0  ;;  %v2507_v55 = vsel %vm2172_vm2, %v2501_v53, -inf }
 0xa29   : > { %2508 = vmax.xlane.f32.xlu0 %v2507_v55  ;;  %v2504_v56 = vpop.f32.mrb[14].mxu0  ;;  %v5659_v54 = vld [vmem:[%s7776_s21 + $0x8] sm:$0xff]   ;;  %v5656_v55 = vld [vmem:[%s7785_s0 + $0x10] sm:$0xff]  }
 0xa2a   : > { %v5292_v57 = vpop.f32.mrb[15].mxu0  ;;  %v5660_v56 = vld [vmem:[%s7785_s0 + $0x20] sm:$0xff]  }
 0xab6   : > { %v2509_v58 = vpop.xlane.xlu0 %2508 }
 0xab7   : > { %v2510_v59 = vsub.f32 %v2501_v53, %v2509_v58  ;;  %v5655_v53 = vld [vmem:[%s7785_s0 + $0x8] sm:$0xff]  }
 0xab9   : > { %v2511_v61 = vmul.f32 1.442695, %v2510_v59 }
 0xabb   : > { %5734 = vpow2.f32 %v2511_v61 }
 0xac5   : > { %v5735_v62 = vpop.eup %5734 }
 0xac6   : > { %v2513_v63 = vsel %vm2172_vm2, %v5735_v62, 0.0 }
 0xac7   : > { %2514 = vadd.xlane.f32.xlu1 %v2513_v63  ;;  %v5662_v63 = vld [vmem:[%s7785_s0 + $0x28] sm:$0xff]  }
 0xad8   : > { %2626 = vrot.lane.b32.xlu1 %v7913_v29, %s6669_s1 }
 0xadc   : > { %2624 = vrot.lane.b32.xlu1 %v7919_v35, %s6669_s1  ;;  %v5651_v35 = vld [vmem:[%s7760_s24 + $0x28] sm:$0xff]   ;;  %s8564_s24 = scalar_lea.vmem [#allocation29], %s7730_s12 }
 0xadd   : > { %5302 = vmatpush3.bf16.msra.mxu0 %v5651_v35  ;;  %v5669_v35 = vld [vmem:[%s7776_s21 + $0x38] sm:$0xff]  }
 0xade   : > { %5313 = vmatprep.subr.bf16.mxu0 %v6665_v2 }
 0xb54   : > { %v2515_v1 = vpop.xlane.xlu1 %2514 }
 0xb55   : > { %5736 = vrcp.f32 %v2515_v1  ;;  %v5664_v1 = vld [vmem:[%s7785_s0 + $0x30] sm:$0xff]  }
 0xb58   : > { %v2627_v5 = vpop.permute.xlu1 %2626 }
 0xb59   : > { %v2632_v7 = vsel %vm2125_vm1, %v2627_v5, 0  ;;  %v5667_v5 = vld [vmem:[%s7776_s21 + $0x28] sm:$0xff]  }
 0xb5c   : > { %v2625_v29 = vpop.permute.xlu1 %2624 }
 0xb5f   : > { %v5737_v3 = vpop.eup %5736 }
 0xb60   : > { %v2517_v4 = vmul.f32 %v5737_v3, %v5735_v62  ;;  %v5661_v62 = vld [vmem:[%s7776_s21 + $0x10] sm:$0xff]   ;;  %v5665_v3 = vld [vmem:[%s7776_s21 + $0x20] sm:$0xff]  }
 0xb62   : > { %v2518_v6 = vpack.c.bf16 %v2517_v4, %v2517_v4  ;;  %v5666_v4 = vld [vmem:[%s7785_s0 + $0x38] sm:$0xff]  }
 0xb64   : > { %5296 = vmatmul.mubr.msk.bf16.vlgmr.msra.gmra.mrb[24].mxu1 %vm2172_vm2, %v2518_v6  ;;  %v1769_v6 = vld [vmem:[%s7842_s14] sm:$0xff]  ;;  %s8565_s14 = sld [smem:[#allocation75_spill]] }
 0xb65   : > { %5308 = vmatpush3.bf16.xpose.msra.mxu1 %v2632_v7  ;;  %5309 = vmatprep.mubr.msk.bf16.mxu1 %vm6666_vm0, %v6665_v2  ;;  %v8069_v7 = vpack.c.bf16 %v1769_v6, %v1769_v6 }
 0xb66   : > { %5319 = vmatprep.subr.bf16.mxu1 %v6665_v2 }
 0xb6c   : > { %5310 = vmatmul.mubr.msk.bf16.vlgmr.msra.gmra.mrb[28].mxu1 %vm2125_vm1, %v2625_v29  ;;  %v5668_v29 = vld [vmem:[%s7776_s21 + $0x30] sm:$0xff]   ;;  %s8567_s21 = scalar_lea.vmem [#allocation32], %s7730_s12 }
 0xb6d   : > { %5323 = vmatprep.mubr.msk.bf16.mxu1 %vm6666_vm0, %v6665_v2  ;;  %5320 = vmatpush3.bf16.msra.mxu1 %v5652_v26 }
 0xb6e   : > { %5321 = vmatprep.subr.bf16.mxu1 %v6665_v2 }
 0xb71   : > { %5322 = vmatpush3.bf16.msra.mxu1 %v5653_v37  ;;  %v5671_v37 = vld [vmem:[%s7794_s3 + $0x8] sm:$0xff]  }
 0xb72   : > { %5347 = vmatprep.subr.bf16.mxu1 %v6665_v2 }
 0xc37   : > { %v2561_v8 = vpop.f32.mrb[24].mxu1 }
 0xc38   : > { %v2567_v9 = vpack.c.bf16 %v2561_v8, %v2561_v8  ;;  %v5297_v10 = vpop.f32.mrb[25].mxu1 }
 0xc39   : > { %v2564_v11 = vpop.f32.mrb[26].mxu1 }
 0xc3a   : > { %v5298_v12 = vpop.f32.mrb[27].mxu1  ;;  %5304 = vmatmul.mubr.msk.bf16.vlgmr.msra.gmra.mrb[16].mxu0 %vm2125_vm1, %v2567_v9 }
 0xc3b   : > { %5315 = vmatprep.mubr.msk.bf16.mxu0 %vm6666_vm0, %v6665_v2  ;;  %v4954_v12 = vld [vmem:[%s8559_s29] ss:$0 sm:$0xff] }
 0xc3f   : > { %v2668_v13 = vpop.f32.mrb[28].mxu1 }
 0xc40   : > { %v5311_v14 = vpop.f32.mrb[29].mxu1  ;;  %v2674_v15 = vsel %vm2172_vm2, %v2668_v13, -inf }
 0xc41   : > { %2675 = vmax.xlane.f32.xlu0 %v2674_v15  ;;  %v2671_v16 = vpop.f32.mrb[30].mxu1  ;;  %v4955_v14 = vld [vmem:[%s8560_s8] ss:$0 sm:$0xff] }
 0xc42   : > { %v5312_v18 = vpop.f32.mrb[31].mxu1 }
 0xc57   : > { %2686 = vrot.lane.b32.xlu0 %v7950_v60, %s6669_s1 }
 0xcce   : > { %v2676_v19 = vpop.xlane.xlu0 %2675 }
 0xccf   : > { %v2677_v20 = vsub.f32 %v2668_v13, %v2676_v19  ;;  %v4965_v19 = vld [vmem:[%s8561_s17] ss:$0 sm:$0xff] }
 0xcd1   : > { %v2678_v21 = vmul.f32 1.442695, %v2677_v20 }
 0xcd2   : > { %v2687_v22 = vpop.permute.xlu0 %2686 }
 0xcd3   : > { %5738 = vpow2.f32 %v2678_v21  ;;  %v2692_v23 = vsel %vm2188_vm3, %v2687_v22, 0 }
 0xcd4   : > { %5314 = vmatpush3.bf16.msra.mxu0 %v2692_v23 }
 0xcd5   : > { %5327 = vmatprep.subr.bf16.mxu0 %v6665_v2 }
 0xcdd   : > { %v5739_v24 = vpop.eup %5738 }
 0xcde   : > { %v2680_v25 = vsel %vm2172_vm2, %v5739_v24, 0.0 }
 0xcdf   : > { %2681 = vadd.xlane.f32.xlu1 %v2680_v25 }
 0xd0d   : > { %v2617_v60 = vpop.f32.mrb[16].mxu0 }
 0xd0e   : > { %v2623_v27 = vadd.f32 %v2617_v60, %v7999_v49  ;;  %v5305_v28 = vpop.f32.mrb[17].mxu0  ;;  %v4956_v60 = vld [vmem:[%s8562_s30] ss:$0 sm:$0xff] }
 0xd0f   : > { %v2620_v30 = vpop.f32.mrb[18].mxu0 }
 0xd10   : > { %v5306_v31 = vpop.f32.mrb[19].mxu0 }
 0xd6c   : > { %v2682_v32 = vpop.xlane.xlu1 %2681 }
 0xd6d   : > { %5740 = vrcp.f32 %v2682_v32 }
 0xd77   : > { %v5741_v33 = vpop.eup %5740 }
 0xd78   : > { %v2684_v34 = vmul.f32 %v5741_v33, %v5739_v24 }
 0xd7a   : > { %v2685_v36 = vpack.c.bf16 %v2684_v34, %v2684_v34 }
 0xd7c   : > { %5316 = vmatmul.mubr.msk.bf16.vlgmr.msra.gmra.mrb[20].mxu0 %vm2172_vm2, %v2685_v36  ;;  %v5670_v36 = vld [vmem:[%s7794_s3] sm:$0xff]  }
 0xd7d   : > { %5343 = vmatprep.mubr.msk.bf16.mxu0 %vm6666_vm0, %v6665_v2  ;;  %5328 = vmatpush3.bf16.msra.mxu0 %v5657_v52 }
 0xd7e   : > { %5329 = vmatprep.subr.bf16.mxu0 %v6665_v2 }
 0xd81   : > { %5330 = vmatpush3.bf16.msra.mxu0 %v5659_v54 }
 0xd82   : > { %5331 = vmatprep.subr.bf16.mxu0 %v6665_v2 }
 0xd85   : > { %5332 = vmatpush3.bf16.msra.mxu0 %v5661_v62 }
 0xd86   : > { %5333 = vmatprep.subr.bf16.mxu0 %v6665_v2 }
 0xd89   : > { %5334 = vmatpush3.bf16.msra.mxu0 %v5663_v0 }
 0xd8a   : > { %5335 = vmatprep.subr.bf16.mxu0 %v6665_v2 }
 0xd8d   : > { %5336 = vmatpush3.bf16.msra.mxu0 %v5665_v3 }
 0xd8e   : > { %5337 = vmatprep.subr.bf16.mxu0 %v6665_v2 }
 0xd91   : > { %5338 = vmatpush3.bf16.msra.mxu0 %v5667_v5 }
 0xd92   : > { %5339 = vmatprep.subr.bf16.mxu0 %v6665_v2 }
 0xd95   : > { %5340 = vmatpush3.bf16.msra.mxu0 %v5668_v29 }
 0xd96   : > { %5341 = vmatprep.subr.bf16.mxu0 %v6665_v2 }
 0xd99   : > { %5342 = vmatpush3.bf16.msra.mxu0 %v5669_v35 }
 0xd9a   : > { %5367 = vmatprep.subr.bf16.mxu0 %v6665_v2 }
 0xe4f   : > { %v2728_v38 = vpop.f32.mrb[20].mxu0 }
 0xe50   : > { %v2734_v39 = vpack.c.bf16 %v2728_v38, %v2728_v38  ;;  %v5317_v40 = vpop.f32.mrb[21].mxu0  ;;  %v5672_v38 = vld [vmem:[%s7794_s3 + $0x10] sm:$0xff]  }
 0xe51   : > { %v2731_v41 = vpop.f32.mrb[22].mxu0  ;;  %v5674_v40 = vld [vmem:[%s7794_s3 + $0x20] sm:$0xff]  }
 0xe52   : > { %v5318_v42 = vpop.f32.mrb[23].mxu0  ;;  %5324 = vmatmul.mubr.msk.bf16.vlgmr.msra.gmra.mrb[32].mxu1 %vm2125_vm1, %v2734_v39  ;;  %v5673_v39 = vld [vmem:[%s7794_s3 + $0x18] sm:$0xff]   ;;  %v5675_v41 = vld [vmem:[%s7794_s3 + $0x28] sm:$0xff]  }
 0xe53   : > { %5363 = vmatprep.mubr.msk.bf16.mxu1 %vm6666_vm0, %v6665_v2  ;;  %5348 = vmatpush3.bf16.msra.mxu1 %v5654_v51  ;;  %v5676_v42 = vld [vmem:[%s7794_s3 + $0x30] sm:$0xff]  }
 0xe54   : > { %5349 = vmatprep.subr.bf16.mxu1 %v6665_v2 }
 0xe57   : > { %5350 = vmatpush3.bf16.msra.mxu1 %v5655_v53 }
 0xe58   : > { %5351 = vmatprep.subr.bf16.mxu1 %v6665_v2 }
 0xe5b   : > { %5352 = vmatpush3.bf16.msra.mxu1 %v5656_v55 }
 0xe5c   : > { %5353 = vmatprep.subr.bf16.mxu1 %v6665_v2 }
 0xf25   : > { %v2784_v44 = vpop.f32.mrb[32].mxu1 }
 0xf26   : > { %v2790_v45 = vadd.f32 %v2784_v44, %v2623_v27  ;;  %v5325_v46 = vpop.f32.mrb[33].mxu1 }
 0xf27   : > { %v2787_v47 = vpop.f32.mrb[34].mxu1 }
 0xf28   : > { %v2797_v48 = vadd.f32 %v4953_v43, %v2790_v45  ;;  %v5326_v49 = vpop.f32.mrb[35].mxu1  ;;  %v5677_v43 = vld [vmem:[%s7794_s3 + $0x38] sm:$0xff]   ;;  %s8568_s3 = scalar_lea.vmem [#allocation37], %s7730_s12 }
 0xf2a   : > { %v2798_v50 = vadd.f32 %v2797_v48, %v7896_v17  ;;  %v5658_v17 = vld [vmem:[%s7785_s0 + $0x18] sm:$0xff]   ;;  %s8570_s0 = sld [smem:[#allocation73_spill]] }
 0xf2b   : > { %5354 = vmatpush3.bf16.msra.mxu1 %v5658_v17 }
 0xf2c   : > { %2801 = vadd.xlane.f32.xlu0 %v2798_v50  ;;  %5355 = vmatprep.subr.bf16.mxu1 %v6665_v2 }
 0xf2f   : > { %5356 = vmatpush3.bf16.msra.mxu1 %v5660_v56 }
 0xf30   : > { %5357 = vmatprep.subr.bf16.mxu1 %v6665_v2  ;;  %p8573_p3 = scmp.ne.s32.totalorder %s8570_s0, 0 }
 0xf32   : > { %p6466_p1 = pnand %p6465_p6, %p8573_p3 }
 0xf33   : > { %5358 = vmatpush3.bf16.msra.mxu1 %v5662_v63 }
 0xf34   : > { %5359 = vmatprep.subr.bf16.mxu1 %v6665_v2  ;;  %p6467_p7 = pneg %p6466_p1 }
 0xf37   : > { %5360 = vmatpush3.bf16.msra.mxu1 %v5664_v1 }
 0xf38   : > { %5361 = vmatprep.subr.bf16.mxu1 %v6665_v2 }
 0xf3b   : > { %5362 = vmatpush3.bf16.msra.mxu1 %v5666_v4 }
 0xf3c   : > { %5387 = vmatprep.subr.bf16.mxu1 %v6665_v2 }
 0xf3e   : > { %5364 = vmatmul.mubr.bf16.vlgmr.msra.gmra.mrb[36].mxu1 %v8069_v7 }
 0xf3f   : > { %5389 = vmatprep.mubr.msk.bf16.mxu1 %vm6666_vm0, %v6665_v2 }
 0xfb9   : > { %v2802_v57 = vpop.xlane.xlu0 %2801 }
 0xfba   : > { %v2804_v58 = vmul.f32 0.0078125, %v2802_v57  ;;  %v4974_v57 = vld [vmem:[%s8563_s10] ss:$0 sm:$0xff] }
 0xfbc   : > { %v2805_v59 = vsub.f32 %v2798_v50, %v2804_v58 }
 0xfbe   : > { %v2806_v61 = vmul.f32 %v2805_v59, %v2805_v59 }
 0xfc0   : > { %2807 = vadd.xlane.f32.xlu1 %v2806_v61 }
0x1011   : > { %v3079_v20 = vpop.f32.mrb[36].mxu1 }
0x1012   : > { %v3080_v21 = vadd.f32 %v4965_v19, %v3079_v20  ;;  %v5365_v22 = vpop.f32.mrb[37].mxu1 }
0x1013   : > { %v3082_v23 = vpop.f32.mrb[38].mxu1  ;;  %v5680_v22 = vld [vmem:[%s7803_s18 + $0x10] sm:$0xff]  }
0x1014   : > { %v5366_v24 = vpop.f32.mrb[39].mxu1  ;;  %v8092_v25 = vpack.c.bf16 %v3080_v21, %v3080_v21  ;;  %v5681_v23 = vld [vmem:[%s7803_s18 + $0x18] sm:$0xff]  }
0x1016   : > { %v3187_v26 = vsel %vm2125_vm1, %v8092_v25, 0 }
0x1017   : > { %5388 = vmatpush3.bf16.xpose.msra.mxu1 %v3187_v26 }
0x1018   : > { %5393 = vmatprep.subr.bf16.mxu1 %v6665_v2 }
0x104d   : > { %v2808_v8 = vpop.xlane.xlu1 %2807 }
0x104e   : > { %v2809_v9 = vmul.f32 0.0078125, %v2808_v8 }
0x1050   : > { %v2810_v10 = vadd.f32 1e-05, %v2809_v9 }
0x1052   : > { %5742 = vrsqrt.f32 %v2810_v10 }
0x105c   : > { %v5743_v11 = vpop.eup %5742 }
0x105d   : > { %v2812_v13 = vmul.f32 %v5743_v11, %v2805_v59 }
0x105f   : > { %v2819_v15 = vmul.f32 %v4954_v12, %v2812_v13 }
0x1061   : > { %v8084_v16 = vadd.f32 %v4955_v14, %v2819_v15 }
0x1063   : > { %v2895_v18 = vpack.c.bf16 %v8084_v16, %v8084_v16 }
0x1065   : > { %5344 = vmatmul.mubr.bf16.vlgmr.msra.gmra.mrb[24].mxu0 %v2895_v18 }
0x1066   : > { %5383 = vmatprep.mubr.msk.bf16.mxu0 %vm6666_vm0, %v6665_v2  ;;  %5368 = vmatpush3.bf16.msra.mxu0 %v5670_v36 }
0x1067   : > { %5369 = vmatprep.subr.bf16.mxu0 %v6665_v2 }
0x106a   : > { %5370 = vmatpush3.bf16.msra.mxu0 %v5671_v37 }
0x106b   : > { %5371 = vmatprep.subr.bf16.mxu0 %v6665_v2 }
0x106e   : > { %5372 = vmatpush3.bf16.msra.mxu0 %v5672_v38 }
0x106f   : > { %5373 = vmatprep.subr.bf16.mxu0 %v6665_v2 }
0x1072   : > { %5374 = vmatpush3.bf16.msra.mxu0 %v5673_v39 }
0x1073   : > { %5375 = vmatprep.subr.bf16.mxu0 %v6665_v2 }
0x1076   : > { %5376 = vmatpush3.bf16.msra.mxu0 %v5674_v40 }
0x1077   : > { %5377 = vmatprep.subr.bf16.mxu0 %v6665_v2 }
0x107a   : > { %5378 = vmatpush3.bf16.msra.mxu0 %v5675_v41 }
0x107b   : > { %5379 = vmatprep.subr.bf16.mxu0 %v6665_v2 }
0x107e   : > { %5380 = vmatpush3.bf16.msra.mxu0 %v5676_v42 }
0x107f   : > { %5381 = vmatprep.subr.bf16.mxu0 %v6665_v2 }
0x1082   : > { %5382 = vmatpush3.bf16.msra.mxu0 %v5677_v43 }
0x1083   : > { %5411 = vmatprep.subr.bf16.mxu0 %v6665_v2 }
0x1085   : > { %5384 = vmatmul.mubr.bf16.vlgmr.msra.gmra.mrb[28].mxu0 %v8069_v7 }
0x1086   : > { %5415 = vmatprep.mubr.msk.bf16.mxu0 %vm6666_vm0, %v6665_v2  ;;  %5412 = vmatpush3.bf16.msra.mxu0 %v5680_v22 }
0x1087   : > { %5413 = vmatprep.subr.bf16.mxu0 %v6665_v2 }
0x108a   : > { %5414 = vmatpush3.bf16.msra.mxu0 %v5681_v23 }
0x108b   : > { %5427 = vmatprep.subr.bf16.mxu0 %v6665_v2 }
0x1138   : > { %v2985_v27 = vpop.f32.mrb[24].mxu0 }
0x1139   : > { %v2986_v28 = vadd.f32 %v4956_v60, %v2985_v27  ;;  %v5345_v30 = vpop.f32.mrb[25].mxu0  ;;  %v5678_v27 = vld [vmem:[%s7803_s18] sm:$0xff]  }
0x113a   : > { %v2988_v31 = vpop.f32.mrb[26].mxu0  ;;  %v5679_v30 = vld [vmem:[%s7803_s18 + $0x8] sm:$0xff]  }
0x113b   : > { %v3179_v32 = vmul.f32 0.17677669, %v2986_v28  ;;  %v5346_v33 = vpop.f32.mrb[27].mxu0 }
0x113d   : > { %v8099_v34 = vpack.c.bf16 %v3179_v32, %v3179_v32 }
0x113f   : > { %3289 = vrot.lane.b32.xlu0 %v8099_v34, %s6667_s7  ;;  %5390 = vmatmul.mubr.msk.bf16.vlgmr.msra.gmra.mrb[40].mxu1 %vm2125_vm1, %v8099_v34 }
0x1140   : > { %5395 = vmatprep.mubr.msk.bf16.mxu1 %vm6666_vm0, %v6665_v2 }
0x1158   : > { %v3173_v49 = vpop.f32.mrb[28].mxu0 }
0x1159   : > { %v5385_v50 = vpop.f32.mrb[29].mxu0  ;;  %v3174_v58 = vadd.f32 %v4974_v57, %v3173_v49 }
0x115a   : > { %v3176_v51 = vpop.f32.mrb[30].mxu0 }
0x115b   : > { %v5386_v52 = vpop.f32.mrb[31].mxu0  ;;  %v8130_v59 = vpack.c.bf16 %v3174_v58, %v3174_v58 }
0x115d   : > { %v3245_v61 = vsel %vm2188_vm3, %v8130_v59, 0 }
0x115e   : > { %5394 = vmatpush3.bf16.msra.mxu1 %v3245_v61 }
0x115f   : > { %5399 = vmatprep.subr.bf16.mxu1 %v6665_v2 }
0x11b1   : > { %v3290_v5 = vpop.permute.xlu0 %3289 }
0x1212   : > { %v3223_v44 = vpop.f32.mrb[40].mxu1 }
0x1213   : > { %v5391_v45 = vpop.f32.mrb[41].mxu1  ;;  %v3229_v46 = vsel %vm2172_vm2, %v3223_v44, -inf }
0x1214   : > { %3230 = vmax.xlane.f32.xlu1 %v3229_v46  ;;  %v3226_v47 = vpop.f32.mrb[42].mxu1 }
0x1215   : > { %v5392_v48 = vpop.f32.mrb[43].mxu1 }
0x12a1   : > { %v3231_v53 = vpop.xlane.xlu1 %3230 }
0x12a2   : > { %v3232_v54 = vsub.f32 %v3223_v44, %v3231_v53 }
0x12a4   : > { %v3233_v55 = vmul.f32 1.442695, %v3232_v54 }
0x12a6   : > { %5744 = vpow2.f32 %v3233_v55 }
0x12b0   : > { %v5745_v17 = vpop.eup %5744 }
0x12b1   : > { %v3235_v56 = vsel %vm2172_vm2, %v5745_v17, 0.0 }
0x12b2   : > { %3236 = vadd.xlane.f32.xlu1 %v3235_v56 }
0x12c3   : > { %3292 = vrot.lane.b32.xlu1 %v8092_v25, %s6667_s7 }
0x133f   : > { %v3237_v62 = vpop.xlane.xlu1 %3236 }
0x1340   : > { %5746 = vrcp.f32 %v3237_v62 }
0x1343   : > { %v3293_v1 = vpop.permute.xlu1 %3292 }
0x1344   : > { %v3298_v4 = vsel %vm2125_vm1, %v3293_v1, 0 }
0x134a   : > { %v5747_v63 = vpop.eup %5746 }
0x134b   : > { %v3239_v0 = vmul.f32 %v5747_v63, %v5745_v17 }
0x134d   : > { %v3240_v3 = vpack.c.bf16 %v3239_v0, %v3239_v0  ;;  %v5682_v0 = vld [vmem:[%s7803_s18 + $0x20] sm:$0xff]  }
0x134f   : > { %5396 = vmatmul.mubr.msk.bf16.vlgmr.msra.gmra.mrb[44].mxu1 %vm2172_vm2, %v3240_v3 }
0x1350   : > { %5400 = vmatpush3.bf16.xpose.msra.mxu1 %v3298_v4  ;;  %5401 = vmatprep.mubr.msk.bf16.mxu1 %vm6666_vm0, %v6665_v2 }
0x1351   : > { %5405 = vmatprep.subr.bf16.mxu1 %v6665_v2 }
0x1357   : > { %5402 = vmatmul.mubr.msk.bf16.vlgmr.msra.gmra.mrb[48].mxu1 %vm2125_vm1, %v3290_v5 }
0x1358   : > { %5407 = vmatprep.mubr.msk.bf16.mxu1 %vm6666_vm0, %v6665_v2 }
0x1422   : > { %v3281_v6 = vpop.f32.mrb[44].mxu1 }
0x1423   : > { %v5397_v7 = vpop.f32.mrb[45].mxu1  ;;  %v3287_v31 = vpack.c.bf16 %v3281_v6, %v3281_v6 }
0x1424   : > { %v3284_v29 = vpop.f32.mrb[46].mxu1  ;;  %v5683_v7 = vld [vmem:[%s7803_s18 + $0x28] sm:$0xff]  }
0x1425   : > { %v5398_v35 = vpop.f32.mrb[47].mxu1 }
0x142a   : > { %v3334_v8 = vpop.f32.mrb[48].mxu1 }
0x142b   : > { %v5403_v9 = vpop.f32.mrb[49].mxu1  ;;  %v3340_v10 = vsel %vm2172_vm2, %v3334_v8, -inf }
0x142c   : > { %3341 = vmax.xlane.f32.xlu1 %v3340_v10  ;;  %v3337_v11 = vpop.f32.mrb[50].mxu1 }
0x142d   : > { %v5404_v12 = vpop.f32.mrb[51].mxu1 }
0x143d   : > { %3353 = vrot.lane.b32.xlu1 %v8130_v59, %s6667_s7 }
0x1441   : > { %3512 = vrot.lane.b32.xlu1 %v8099_v34, %s6668_s16 }
0x14b9   : > { %v3342_v13 = vpop.xlane.xlu1 %3341 }
0x14ba   : > { %v3343_v14 = vsub.f32 %v3334_v8, %v3342_v13 }
0x14bc   : > { %v3344_v15 = vmul.f32 1.442695, %v3343_v14 }
0x14bd   : > { %v3354_v18 = vpop.permute.xlu1 %3353 }
0x14be   : > { %5748 = vpow2.f32 %v3344_v15  ;;  %v3359_v19 = vsel %vm2188_vm3, %v3354_v18, 0 }
0x14bf   : > { %5406 = vmatpush3.bf16.msra.mxu1 %v3359_v19 }
0x14c0   : > { %5419 = vmatprep.subr.bf16.mxu1 %v6665_v2 }
0x14c1   : > { %v3513_v43 = vpop.permute.xlu1 %3512 }
0x14c8   : > { %v5749_v20 = vpop.eup %5748 }
0x14c9   : > { %v3346_v21 = vsel %vm2172_vm2, %v5749_v20, 0.0 }
0x14ca   : > { %3347 = vadd.xlane.f32.xlu0 %v3346_v21 }
0x14e0   : > { %3514 = vrot.lane.b32.xlu0 %v8092_v25, %s6668_s16 }
0x1557   : > { %v3348_v24 = vpop.xlane.xlu0 %3347 }
0x1558   : > { %5750 = vrcp.f32 %v3348_v24 }
0x155b   : > { %v3515_v32 = vpop.permute.xlu0 %3514 }
0x155c   : > { %v3520_v39 = vsel %vm2125_vm1, %v3515_v32, 0 }
0x1562   : > { %v5751_v26 = vpop.eup %5750 }
0x1563   : > { %v3350_v60 = vmul.f32 %v5751_v26, %v5749_v20  ;;  %v5684_v26 = vld [vmem:[%s7803_s18 + $0x30] sm:$0xff]  }
0x1565   : > { %v3351_v28 = vpack.c.bf16 %v3350_v60, %v3350_v60 }
0x1567   : > { %5408 = vmatmul.mubr.msk.bf16.vlgmr.msra.gmra.mrb[52].mxu1 %vm2172_vm2, %v3351_v28 }
0x1568   : > { %5420 = vmatpush3.bf16.msra.mxu1 %v5678_v27  ;;  %5423 = vmatprep.mubr.msk.bf16.mxu1 %vm6666_vm0, %v6665_v2 }
0x1569   : > { %5421 = vmatprep.subr.bf16.mxu1 %v6665_v2 }
0x156c   : > { %5422 = vmatpush3.bf16.msra.mxu1 %v5679_v30 }
0x156d   : > { %5433 = vmatprep.subr.bf16.mxu1 %v6665_v2 }
0x156f   : > { %5424 = vmatmul.mubr.msk.bf16.vlgmr.msra.gmra.mrb[56].mxu1 %vm2125_vm1, %v3287_v31 }
0x1570   : > { %5435 = vmatprep.mubr.msk.bf16.mxu1 %vm6666_vm0, %v6665_v2 }
0x163a   : > { %v3395_v33 = vpop.f32.mrb[52].mxu1 }
0x163b   : > { %v3401_v36 = vpack.c.bf16 %v3395_v33, %v3395_v33  ;;  %v5409_v37 = vpop.f32.mrb[53].mxu1 }
0x163c   : > { %v3398_v38 = vpop.f32.mrb[54].mxu1  ;;  %v5685_v37 = vld [vmem:[%s7803_s18 + $0x38] sm:$0xff]   ;;  %s8571_s18 = scalar_lea.vmem [#allocation38], %s7730_s12 }
0x163d   : > { %v5410_v40 = vpop.f32.mrb[55].mxu1  ;;  %5416 = vmatmul.mubr.msk.bf16.vlgmr.msra.gmra.mrb[32].mxu0 %vm2125_vm1, %v3401_v36 }
0x163e   : > { %5428 = vmatpush3.bf16.xpose.msra.mxu0 %v3520_v39  ;;  %5429 = vmatprep.mubr.msk.bf16.mxu0 %vm6666_vm0, %v6665_v2 }
0x163f   : > { %5439 = vmatprep.subr.bf16.mxu0 %v6665_v2 }
0x1642   : > { %v3506_v41 = vpop.f32.mrb[56].mxu1 }
0x1643   : > { %v5425_v42 = vpop.f32.mrb[57].mxu1 }
0x1644   : > { %v3509_v44 = vpop.f32.mrb[58].mxu1  ;;  %v5003_v42 = vld [vmem:[%s8564_s24] ss:$0 sm:$0xff] }
0x1645   : > { %v5426_v45 = vpop.f32.mrb[59].mxu1  ;;  %5430 = vmatmul.mubr.msk.bf16.vlgmr.msra.gmra.mrb[36].mxu0 %vm2125_vm1, %v3513_v43 }
0x1646   : > { %5443 = vmatprep.mubr.msk.bf16.mxu0 %vm6666_vm0, %v6665_v2  ;;  %5440 = vmatpush3.bf16.msra.mxu0 %v5682_v0  ;;  %v5703_v0 = vld [vmem:[%s7819_s5 + $0x54] ss:$8 sps:$4 sm:$0xff]  }
0x1647   : > { %5441 = vmatprep.subr.bf16.mxu0 %v6665_v2 }
0x164a   : > { %5442 = vmatpush3.bf16.msra.mxu0 %v5683_v7  ;;  %v5711_v7 = vld [vmem:[%s8565_s14] sm:$0xff]  }
0x164b   : > { %5453 = vmatprep.subr.bf16.mxu0 %v6665_v2 }
0x1710   : > { %v3451_v46 = vpop.f32.mrb[32].mxu0 }
0x1711   : > { %v8177_v47 = vadd.f32 %v3506_v41, %v3451_v46  ;;  %v5417_v48 = vpop.f32.mrb[33].mxu0 }
0x1712   : > { %v3454_v49 = vpop.f32.mrb[34].mxu0 }
0x1713   : > { %v5418_v50 = vpop.f32.mrb[35].mxu0 }
0x1714   : > { %v5686_v50 = vld [vmem:[%s7819_s5] ss:$8 sps:$4 sm:$0xff]  }
0x1718   : > { %v3556_v51 = vpop.f32.mrb[36].mxu0 }
0x1719   : > { %v5431_v52 = vpop.f32.mrb[37].mxu0  ;;  %v3562_v53 = vsel %vm2172_vm2, %v3556_v51, -inf }
0x171a   : > { %3563 = vmax.xlane.f32.xlu1 %v3562_v53  ;;  %v3559_v54 = vpop.f32.mrb[38].mxu0  ;;  %v5691_v52 = vld [vmem:[%s7819_s5 + $0x14] ss:$8 sps:$4 sm:$0xff]   ;;  %v5689_v53 = vld [vmem:[%s7819_s5 + $0x10] ss:$8 sps:$4 sm:$0xff]  }
0x171b   : > { %v5432_v55 = vpop.f32.mrb[39].mxu0  ;;  %v5694_v54 = vld [vmem:[%s7819_s5 + $0x24] ss:$8 sps:$4 sm:$0xff]  }
0x171c   : > { %v5692_v55 = vld [vmem:[%s7819_s5 + $0x20] ss:$8 sps:$4 sm:$0xff]  }
0x172b   : > { %3574 = vrot.lane.b32.xlu1 %v8130_v59, %s6668_s16 }
0x172f   : > { %3679 = vrot.lane.b32.xlu1 %v8099_v34, %s6669_s1 }
0x17a7   : > { %v3564_v17 = vpop.xlane.xlu1 %3563 }
0x17a8   : > { %v3565_v56 = vsub.f32 %v3556_v51, %v3564_v17  ;;  %v5688_v51 = vld [vmem:[%s7819_s5 + $0x4] ss:$8 sps:$4 sm:$0xff]  }
0x17aa   : > { %v3566_v57 = vmul.f32 1.442695, %v3565_v56 }
0x17ab   : > { %v3575_v58 = vpop.permute.xlu1 %3574 }
0x17ac   : > { %5752 = vpow2.f32 %v3566_v57  ;;  %v3580_v61 = vsel %vm2188_vm3, %v3575_v58, 0  ;;  %v5697_v58 = vld [vmem:[%s7819_s5 + $0x34] ss:$8 sps:$4 sm:$0xff]  }
0x17ad   : > { %5434 = vmatpush3.bf16.msra.mxu1 %v3580_v61  ;;  %v5695_v61 = vld [vmem:[%s7819_s5 + $0x30] ss:$8 sps:$4 sm:$0xff]  }
0x17ae   : > { %5447 = vmatprep.subr.bf16.mxu1 %v6665_v2 }
0x17b6   : > { %v5753_v62 = vpop.eup %5752 }
0x17b7   : > { %v3568_v63 = vsel %vm2172_vm2, %v5753_v62, 0.0 }
0x17b8   : > { %3569 = vadd.xlane.f32.xlu0 %v3568_v63  ;;  %v5698_v63 = vld [vmem:[%s7819_s5 + $0x40] ss:$8 sps:$4 sm:$0xff]  }
0x17ce   : > { %3681 = vrot.lane.b32.xlu0 %v8092_v25, %s6669_s1  ;;  %v3680_v25 = vpop.permute.xlu1 %3679 }
0x1845   : > { %v3570_v34 = vpop.xlane.xlu0 %3569 }
0x1846   : > { %5754 = vrcp.f32 %v3570_v34  ;;  %v5701_v34 = vld [vmem:[%s7819_s5 + $0x50] ss:$8 sps:$4 sm:$0xff]  }
0x1849   : > { %v3682_v4 = vpop.permute.xlu0 %3681 }
0x184a   : > { %v3687_v6 = vsel %vm2125_vm1, %v3682_v4, 0  ;;  %v5709_v4 = vld [vmem:[%s7819_s5 + $0x74] ss:$8 sps:$4 sm:$0xff]  }
0x1850   : > { %v5755_v1 = vpop.eup %5754 }
0x1851   : > { %v3572_v3 = vmul.f32 %v5755_v1, %v5753_v62  ;;  %v5700_v62 = vld [vmem:[%s7819_s5 + $0x44] ss:$8 sps:$4 sm:$0xff]  }
0x1852   : > { %v5706_v1 = vld [vmem:[%s7819_s5 + $0x64] ss:$8 sps:$4 sm:$0xff]  }
0x1853   : > { %v3573_v5 = vpack.c.bf16 %v3572_v3, %v3572_v3  ;;  %v5704_v3 = vld [vmem:[%s7819_s5 + $0x60] ss:$8 sps:$4 sm:$0xff]  }
0x1855   : > { %5436 = vmatmul.mubr.msk.bf16.vlgmr.msra.gmra.mrb[60].mxu1 %vm2172_vm2, %v3573_v5  ;;  %v5707_v5 = vld [vmem:[%s7819_s5 + $0x70] ss:$8 sps:$4 sm:$0xff]   ;;  %s8566_s5 = scalar_lea.vmem [#allocation31], %s7730_s12 }
0x1856   : > { %5448 = vmatpush3.bf16.xpose.msra.mxu1 %v3687_v6  ;;  %5449 = vmatprep.mubr.msk.bf16.mxu1 %vm6666_vm0, %v6665_v2  ;;  %v6670_v6 = vmov 0  }
0x1857   : > { %5459 = vmatprep.subr.bf16.mxu1 %v6665_v2 }
0x185d   : > { %5450 = vmatmul.mubr.msk.bf16.vlgmr.msra.gmra.mrb[64].mxu1 %vm2125_vm1, %v3680_v25  ;;  %v5710_v25 = vld [vmem:[%s8565_s14 + $0x40] sm:$0xff]  }
0x185e   : > { %5463 = vmatprep.mubr.msk.bf16.mxu1 %vm6666_vm0, %v6665_v2  ;;  %5460 = vmatpush3.bf16.msra.mxu1 %v5684_v26 }
0x185f   : > { %5461 = vmatprep.subr.bf16.mxu1 %v6665_v2 }
0x1862   : > { %5462 = vmatpush3.bf16.msra.mxu1 %v5685_v37  ;;  %v3898_v37 = vld [vmem:[%s7852_s6] sm:$0x3]  ;;  %s8569_s6 = sld [smem:[#allocation62_spill]] }
0x1863   : > { %5165 = vmatprep.subr.bf16.mxu1 %v5710_v25 }
0x1868   : > { %s5042_s26 = sshll.u32 %s8569_s6, 7 }
0x1869   : > { %s8266_s4 = scalar_lea.hbm %s8572_s23, %s5042_s26 }
0x1928   : > { %v3616_v29 = vpop.f32.mrb[60].mxu1 }
0x1929   : > { %v3622_v35 = vpack.c.bf16 %v3616_v29, %v3616_v29  ;;  %v5437_v8 = vpop.f32.mrb[61].mxu1  ;;  %v5712_v29 = vld [vmem:[%s8565_s14 + $0x48] sm:$0xff]  }
0x192a   : > { %v3619_v9 = vpop.f32.mrb[62].mxu1  ;;  %v5714_v8 = vld [vmem:[%s8565_s14 + $0x50] sm:$0xff]  }
0x192b   : > { %v5438_v10 = vpop.f32.mrb[63].mxu1  ;;  %5444 = vmatmul.mubr.msk.bf16.vlgmr.msra.gmra.mrb[40].mxu0 %vm2125_vm1, %v3622_v35  ;;  %v5713_v35 = vld [vmem:[%s8565_s14 + $0x8] sm:$0xff]   ;;  %v5715_v9 = vld [vmem:[%s8565_s14 + $0x10] sm:$0xff]  }
0x192c   : > { %5455 = vmatprep.mubr.msk.bf16.mxu0 %vm6666_vm0, %v6665_v2  ;;  %v5716_v10 = vld [vmem:[%s8565_s14 + $0x58] sm:$0xff]  }
0x1930   : > { %v3723_v11 = vpop.f32.mrb[64].mxu1 }
0x1931   : > { %v5451_v12 = vpop.f32.mrb[65].mxu1  ;;  %v3729_v13 = vsel %vm2172_vm2, %v3723_v11, -inf }
0x1932   : > { %3730 = vmax.xlane.f32.xlu1 %v3729_v13  ;;  %v3726_v14 = vpop.f32.mrb[66].mxu1  ;;  %v5718_v12 = vld [vmem:[%s8565_s14 + $0x60] sm:$0xff]  }
0x1933   : > { %v5452_v15 = vpop.f32.mrb[67].mxu1  ;;  %v5719_v13 = vld [vmem:[%s8565_s14 + $0x20] sm:$0xff]   ;;  %v5720_v14 = vld [vmem:[%s8565_s14 + $0x68] sm:$0xff]  }
0x1934   : > { %v5721_v15 = vld [vmem:[%s8565_s14 + $0x28] sm:$0xff]  }
0x1943   : > { %3741 = vrot.lane.b32.xlu1 %v8130_v59, %s6669_s1 }
0x19bf   : > { %v3731_v18 = vpop.xlane.xlu1 %3730 }
0x19c0   : > { %v3732_v19 = vsub.f32 %v3723_v11, %v3731_v18  ;;  %v5717_v11 = vld [vmem:[%s8565_s14 + $0x18] sm:$0xff]  }
0x19c2   : > { %v3733_v20 = vmul.f32 1.442695, %v3732_v19 }
0x19c3   : > { %v3742_v21 = vpop.permute.xlu1 %3741 }
0x19c4   : > { %5756 = vpow2.f32 %v3733_v20  ;;  %v3747_v22 = vsel %vm2188_vm3, %v3742_v21, 0 }
0x19c5   : > { %5454 = vmatpush3.bf16.msra.mxu0 %v3747_v22  ;;  %v5004_v22 = vld [vmem:[%s8566_s5] ss:$0 sm:$0xff] }
0x19c6   : > { %3990 = vmatprep.subr.bf16.mxu0 %v5688_v51  ;;  %v5022_v51 = vld [vmem:[%s8568_s3] ss:$0 sm:$0xff] }
0x19ce   : > { %v5757_v23 = vpop.eup %5756 }
0x19cf   : > { %v3735_v24 = vsel %vm2172_vm2, %v5757_v23, 0.0 }
0x19d0   : > { %3736 = vadd.xlane.f32.xlu0 %v3735_v24  ;;  %v5005_v24 = vld [vmem:[%s8567_s21] ss:$0 sm:$0xff] }
0x19fe   : > { %v3672_v60 = vpop.f32.mrb[40].mxu0 }
0x19ff   : > { %v3678_v59 = vadd.f32 %v3672_v60, %v8177_v47  ;;  %v5445_v27 = vpop.f32.mrb[41].mxu0 }
0x1a00   : > { %v3675_v28 = vpop.f32.mrb[42].mxu0  ;;  %v5722_v27 = vld [vmem:[%s8565_s14 + $0x70] sm:$0xff]  }
0x1a01   : > { %v5446_v30 = vpop.f32.mrb[43].mxu0  ;;  %v5723_v28 = vld [vmem:[%s8565_s14 + $0x30] sm:$0xff]  }
0x1a02   : > { %v5724_v30 = vld [vmem:[%s8565_s14 + $0x78] sm:$0xff]  }
0x1a5d   : > { %v3737_v31 = vpop.xlane.xlu0 %3736 }
0x1a5e   : > { %5758 = vrcp.f32 %v3737_v31  ;;  %v5725_v31 = vld [vmem:[%s8565_s14 + $0x38] sm:$0xff]  }
0x1a68   : > { %v5759_v32 = vpop.eup %5758 }
0x1a69   : > { %v3739_v33 = vmul.f32 %v5759_v32, %v5757_v23  ;;  %v3900_v32 = vlaneseq }
0x1a6b   : > { %v3740_v36 = vpack.c.bf16 %v3739_v33, %v3739_v33  ;;  %v3901_v33 = vshrl.u32 %v3900_v32, 7 }
0x1a6d   : > { %5456 = vmatmul.mubr.msk.bf16.vlgmr.msra.gmra.mrb[44].mxu0 %vm2172_vm2, %v3740_v36  ;;  %v3902_v36 = vsub.s32 0, %v3901_v33 }
0x1a6e   : > { %3991 = vmatpush1.bf16.msra.mxu0 %v5686_v50  ;;  %4022 = vmatprep.mubr.bf16.mxu0 %v6670_v6 }
0x1a6f   : > { %3992 = vmatprep.subr.bf16.mxu0 %v5691_v52 }
0x1a72   : > { %3993 = vmatpush1.bf16.msra.mxu0 %v5689_v53 }
0x1a73   : > { %3994 = vmatprep.subr.bf16.mxu0 %v5694_v54 }
0x1a76   : > { %3995 = vmatpush1.bf16.msra.mxu0 %v5692_v55 }
0x1a77   : > { %3996 = vmatprep.subr.bf16.mxu0 %v5697_v58 }
0x1a7a   : > { %3997 = vmatpush1.bf16.msra.mxu0 %v5695_v61 }
0x1a7b   : > { %3998 = vmatprep.subr.bf16.mxu0 %v5700_v62 }
0x1a7e   : > { %3999 = vmatpush1.bf16.msra.mxu0 %v5698_v63 }
0x1a7f   : > { %4000 = vmatprep.subr.bf16.mxu0 %v5703_v0 }
0x1a82   : > { %4001 = vmatpush1.bf16.msra.mxu0 %v5701_v34 }
0x1a83   : > { %4002 = vmatprep.subr.bf16.mxu0 %v5706_v1  ;;  %v5039_v1 = vld [vmem:[%s8571_s18] ss:$0 sm:$0xff] }
0x1a86   : > { %4003 = vmatpush1.bf16.msra.mxu0 %v5704_v3 }
0x1a87   : > { %4004 = vmatprep.subr.bf16.mxu0 %v5709_v4  ;;  %v5040_v4 = vld [vmem:[%s1557_s2] ss:$0 sm:$0xff]  ;;  %s6671_s2 = smov [#allocation41]  }
0x1a88   : > { %s6468_s12 = sshll.u32 %s6671_s2, 4  ;;  %s6469_s12 = int_to_ptr.vmem [resolvable:$false] %s6468_s12 }
0x1a89   : > { %s6470_s19 = scalar_lea.vmem %s6469_s12, 256  ;;  %p6471_p10 = scmp.lt.s32.totalorder %s8268_s15, %s6469_s12 }
0x1a8a   : > { %4005 = vmatpush1.bf16.msra.mxu0 %v5707_v5  ;;  %p6472_p2 = scmp.lt.s32.totalorder %s6470_s19, %s6464_s22 }
0x1a8c   : > { %p6473_p13 = por %p6472_p2, %p6471_p10 }
0x1a8e   : > { %p6474_p9 = pnand %p6473_p13, %p6467_p7 }
0x1b40   : > { %v3783_v38 = vpop.f32.mrb[44].mxu0 }
0x1b41   : > { %v3789_v2 = vpack.c.bf16 %v3783_v38, %v3783_v38  ;;  %v5457_v39 = vpop.f32.mrb[45].mxu0  ;;  %v3906_v38 = vsub.s32 1, %v3901_v33 }
0x1b42   : > { %v3786_v40 = vpop.f32.mrb[46].mxu0 }
0x1b43   : > { %v5458_v41 = vpop.f32.mrb[47].mxu0  ;;  %5464 = vmatmul.mubr.msk.bf16.vlgmr.msra.gmra.mrb[68].mxu1 %vm2125_vm1, %v3789_v2  ;;  %v3903_v2 = vrot.slane %v3898_v37, %v3902_v36  ;;  %v3907_v39 = vrot.slane %v3898_v37, %v3906_v38 }
0x1b44   : > { %5166 = vmatpush3.bf16.msra.mxu1 %v5711_v7 }
0x1b45   : > { %5167 = vmatprep.subr.bf16.mxu1 %v5712_v29 }
0x1b48   : > { %5168 = vmatpush3.bf16.msra.mxu1 %v5713_v35 }
0x1b49   : > { %5169 = vmatprep.subr.bf16.mxu1 %v5714_v8 }
0x1b4c   : > { %5170 = vmatpush3.bf16.msra.mxu1 %v5715_v9 }
0x1b4d   : > { %5171 = vmatprep.subr.bf16.mxu1 %v5716_v10 }
0x1b50   : > { %5172 = vmatpush3.bf16.msra.mxu1 %v5717_v11 }
0x1b51   : > { %5173 = vmatprep.subr.bf16.mxu1 %v5718_v12 }
0x1b54   : > { %5174 = vmatpush3.bf16.msra.mxu1 %v5719_v13 }
0x1b55   : > { %5175 = vmatprep.subr.bf16.mxu1 %v5720_v14 }
0x1b58   : > { %5176 = vmatpush3.bf16.msra.mxu1 %v5721_v15 }
0x1b59   : > { %5177 = vmatprep.subr.bf16.mxu1 %v5722_v27 }
0x1b5c   : > { %5178 = vmatpush3.bf16.msra.mxu1 %v5723_v28 }
0x1b5d   : > { %5179 = vmatprep.subr.bf16.mxu1 %v5724_v30 }
0x1b60   : > { %5180 = vmatpush3.bf16.msra.mxu1 %v5725_v31 }
0x1c16   : > { %v3839_v43 = vpop.f32.mrb[68].mxu1 }
0x1c17   : > { %v3845_v44 = vadd.f32 %v3839_v43, %v3678_v59  ;;  %v5465_v45 = vpop.f32.mrb[69].mxu1 }
0x1c18   : > { %v3842_v46 = vpop.f32.mrb[70].mxu1 }
0x1c19   : > { %v3852_v47 = vadd.f32 %v5003_v42, %v3845_v44  ;;  %v5466_v48 = vpop.f32.mrb[71].mxu1 }
0x1c1b   : > { %v3853_v49 = vadd.f32 %v3852_v47, %v8084_v16 }
0x1c1d   : > { %3856 = vadd.xlane.f32.xlu0 %v3853_v49 }
0x1caa   : > { %v3857_v16 = vpop.xlane.xlu0 %3856 }
0x1cab   : > { %v3858_v17 = vmul.f32 0.0078125, %v3857_v16 }
0x1cad   : > { %v3859_v56 = vsub.f32 %v3853_v49, %v3858_v17 }
0x1caf   : > { %v3860_v57 = vmul.f32 %v3859_v56, %v3859_v56 }
0x1cb1   : > { %3861 = vadd.xlane.f32.xlu0 %v3860_v57 }
0x1d3e   : > { %v3862_v18 = vpop.xlane.xlu0 %3861 }
0x1d3f   : > { %v3863_v19 = vmul.f32 0.0078125, %v3862_v18 }
0x1d41   : > { %v3864_v20 = vadd.f32 1e-05, %v3863_v19 }
0x1d43   : > { %5760 = vrsqrt.f32 %v3864_v20 }
0x1d4d   : > { %v5761_v21 = vpop.eup %5760 }
0x1d4e   : > { %v3866_v23 = vmul.f32 %v5761_v21, %v3859_v56 }
0x1d50   : > { %v3873_v26 = vmul.f32 %v5004_v22, %v3866_v23 }
0x1d52   : > { %v3880_v60 = vadd.f32 %v5005_v24, %v3873_v26 }
0x1d54   : > { %v3881_v59 = vpack.c.bf16 %v3880_v60, %v3880_v60 }
0x1d56   : > { %4023 = vmatmul.mubr.bf16.vlgmr.msra.gmra.mrb[48].mxu0 %v3881_v59 }
0x1e29   : > { %v4024_v40 = vpop.f32.mrb[48].mxu0 }
0x1e2a   : > { %v4025_v41 = vadd.f32 %v4024_v40, %v3903_v2  ;;  %v4026_v42 = vpop.f32.mrb[49].mxu0 }
0x1e2b   : > { %v4027_v43 = vadd.f32 %v4026_v42, %v3907_v39  ;;  %v4028_v44 = vpop.f32.mrb[50].mxu0 }
0x1e2c   : > { %v4031_v45 = vmax.f32 %v4025_v41, 0.0  ;;  %v4029_v46 = vpop.f32.mrb[51].mxu0 }
0x1e2d   : > { %v4032_v47 = vmax.f32 %v4027_v43, 0.0 }
0x1e2e   : > { %v4033_v49 = vpack.c.bf16 %v4031_v45, %v4031_v45 }
0x1e2f   : > { %v4034_v48 = vpack.c.bf16 %v4032_v47, %v4032_v47 }
0x1e31   : > { %4202 = vmatprep.mubr.bf16.mxu1 %v4034_v48 }
0x1e32   : > { %4203 = vmatmul.mubr.bf16.vlgmr.msra.gmra.mrb[72].mxu1 %v4033_v49 }
0x1f05   : > { %v5181_v50 = vpop.f32.mrb[72].mxu1 }
0x1f06   : > { %v5182_v52 = vpop.f32.mrb[73].mxu1 }
0x1f07   : > { %v5183_v53 = vadd.f32 %v5182_v52, %v5181_v50  ;;  %v5184_v54 = vpop.f32.mrb[74].mxu1 }
0x1f08   : > { %v5185_v55 = vpop.f32.mrb[75].mxu1 }
0x1f09   : > { %v4205_v16 = vadd.f32 %v5183_v53, %v5022_v51 }
0x1f0b   : > { %v4210_v17 = vadd.f32 %v4205_v16, %v3880_v60 }
0x1f0d   : > { %4213 = vadd.xlane.f32.xlu0 %v4210_v17 }
0x1f9a   : > { %v4214_v56 = vpop.xlane.xlu0 %4213 }
0x1f9b   : > { %v4215_v57 = vmul.f32 0.0078125, %v4214_v56 }
0x1f9d   : > { %v4216_v58 = vsub.f32 %v4210_v17, %v4215_v57 }
0x1f9f   : > { %v4217_v61 = vmul.f32 %v4216_v58, %v4216_v58 }
0x1fa1   : > { %4218 = vadd.xlane.f32.xlu0 %v4217_v61 }
0x202e   : > { %v4219_v62 = vpop.xlane.xlu0 %4218 }
0x202f   : > { %v4220_v63 = vmul.f32 0.0078125, %v4219_v62 }
0x2031   : > { %v4221_v0 = vadd.f32 1e-05, %v4220_v63 }
0x2033   : > { %5762 = vrsqrt.f32 %v4221_v0 }
0x203d   : > { %v5763_v34 = vpop.eup %5762 }
0x203e   : > { %v4223_v3 = vmul.f32 %v5763_v34, %v4216_v58 }
0x2040   : > { %v4230_v5 = vmul.f32 %v5039_v1, %v4223_v3 }
0x2042   : > { %v4237_v6 = vadd.f32 %v5040_v4, %v4230_v5 }
0x2044   : > { %4238 = vst [vmem:[%s7857_s20] sm:$0xff] %v4237_v6 }
0x2045   : > { %6477 = shalt.err (!%p6474_p9)
}
0x2046   : > { %s6478_s27 = scalar_lea.hbm %s8266_s4, 128  ;;  %s6482_s25 = scalar_lea.hbm %s8572_s23, 256 }
0x2047   : > { %p6479_p8 = scmp.ne.s32.totalorder %s8266_s4, %s6478_s27  ;;  %p6483_p12 = scmp.lt.u32.totalorder %s8266_s4, %s8572_s23 }
0x2048   : > { %p6484_p11 = scmp.lt.u32.totalorder %s6482_s25, %s6478_s27  ;;  %p6486_p6 = scmp.lt.u32.totalorder %s6478_s27, %s8266_s4 }
0x2049   : > { %p6480_p0 = pnand %p6479_p8, %p8573_p3 }
0x204a   : > { %p6485_p5 = por %p6484_p11, %p6483_p12 }
0x204b   : > { %p6481_p4 = pneg %p6480_p0 }
0x204c   : > { %p6487_p1 = por %p6486_p6, %p6485_p5 }
0x204e   : > { %p6488_p7 = pnand %p6487_p1, %p6481_p4 }
0x2050   : > { %6491 = shalt.err (!%p6488_p7)
}
0x2051   : > { %5517 = dma.vmem_to_hbm [thread:$0]  (%p8573_p3), %s8268_s15, 128, %s8266_s4, %s4240_s9  }
0x2052 PF: > { %s8574_s13 = sld [smem:[#allocation65_spill]]  ;;  %s8575_s29 = sld [smem:[#allocation58_spill]] }
0x2053   : > { %s8576_s8 = sld [smem:[#allocation74_spill]] }
0x2058   : > { %p5523_p10 = scmp.ge.s32.totalorder %s8574_s13, 2  ;;  %s4265_s17 = sand.u32 1, %s8575_s29  }
0x2059   : > { %p8577_p2 = scmp.ne.s32.totalorder %s8576_s8, 0  ;;  %s4266_s30 = scalar_lea.sflag [#allocation4], %s4265_s17 }
0x205b   : > { %p5520_p13 = pnand %p5523_p10, %p8577_p2 }
0x205d   : > { %6589 = dma.done.wait (!%p5520_p13), %s4266_s30, 128  }
0x205e   : > { %6591 = vsyncadd (!%p5520_p13), %s4266_s30, 4294967168  ;;  %s80_s2 = sadd.s32 1, %s8574_s13   ;;  %s8578_s8 = sld [smem:[#allocation56_spill]] }
0x205f   : > { %p77_p9 = scmp.ge.s32.totalorder %s80_s2, 6   ;;  %s8579_s5 = sld [smem:[#allocation57_spill]] }
0x2060   : > { %s8580_s9 = sld [smem:[#allocation70_spill]]  ;;  %s8581_s30 = sld [smem:[#allocation59_spill]] }
0x2061   : > { %s8582_s3 = sld [smem:[#allocation60_spill]]  ;;  %s8583_s6 = sld [smem:[#allocation71_spill]] }
0x2062   : > { %s8584_s10 = sld [smem:[#allocation63_spill]]  ;;  %s8585_s0 = sld [smem:[#allocation64_spill]] }
0x2063   : > { %s8586_s11 = sld [smem:[#allocation67_spill]]  ;;  %s8587_s29 = sld [smem:[#allocation68_spill]] }
0x2064   :  { %79 = sbr.rel (!%p77_p9) target bundleno = 63 (0x3f), region = 478 }
0x206b   :  { %4271 = vsyncpa [#allocation3], 1 }
0x206c   :  { %4273 = vsyncpa [#allocation3 + $0x1], 1 }
0x206d   :  { %4274 = vsyncpa [#allocation6], 1 }
0x206e   :  { %4276 = vsyncpa [#allocation6 + $0x1], 1 }
0x206f   :  { %4277 = vsyncpa [#allocation9], 1 }
0x2070   :  { %4279 = vsyncpa [#allocation9 + $0x1], 1 }
0x2071   :  { %4280 = vsyncpa [#allocation12], 1 }
0x2072   :  { %4282 = vsyncpa [#allocation12 + $0x1], 1 }
0x2073   :  { %4283 = vsyncpa [#allocation15], 1 }
0x2074   :  { %4285 = vsyncpa [#allocation15 + $0x1], 1 }
0x2075   :  { %4286 = vsyncpa [#allocation18], 1 }
0x2076   :  { %4288 = vsyncpa [#allocation18 + $0x1], 1 }
0x2077   :  { %4289 = vsyncpa [#allocation21], 1 }
0x2078   :  { %4291 = vsyncpa [#allocation21 + $0x1], 1 }
0x2079   :  { %4292 = vsyncpa [#allocation24], 1 }
0x207a   :  { %4294 = vsyncpa [#allocation24 + $0x1], 1 }
0x207b   :  { %4295 = vsyncpa [#allocation27], 1 }
0x207c   :  { %4297 = vsyncpa [#allocation27 + $0x1], 1 }
0x207d   :  { %4298 = vsyncpa [#allocation30], 1 }
0x207e   :  { %4300 = vsyncpa [#allocation30 + $0x1], 1 }
0x207f   :  { %4301 = vsyncpa [#allocation33], 1 }
0x2080   :  { %4303 = vsyncpa [#allocation33 + $0x1], 1 }
0x2081   :  { %4304 = vsyncpa [#allocation36], 1 }
0x2082   :  { %4306 = vsyncpa [#allocation36 + $0x1], 1 }
0x2083   :  { %4307 = vsyncpa [#allocation39], 1 }
0x2084   :  { %4309 = vsyncpa [#allocation39 + $0x1], 1 }
0x2085   :  { %4310 = vsyncpa [#allocation4], 1 }
0x2086   :  { %4312 = vsyncpa [#allocation4 + $0x1], 1 }

</bundles_post_ra>
